<compile_context>
chip_gen: v5e
topology: v5e:2x2
jax: 0.10.0
libtpu: 0.0.40
codegen_flags: <defaults>
</compile_context>

<pallas_src>
import functools

import jax
import jax.numpy as jnp
from jax.experimental import pallas as pl
from jax.experimental.pallas import tpu as pltpu


# ----------------------------- Pallas kernels ------------------------------

def _sepconv3d_q_kernel(L, W, D, xpad_ref, wcomb_ref, bias_ref, o_ref):
    """q = SepConv3d(x) * softmax_scale, with BN/biases folded into the weights.

    xpad_ref : (1, L+2, W+2, D+2, C) zero-padded input volume (one batch elem)
    wcomb_ref: (27*C, C) bf16  combined depthwise*BN*pointwise*scale weight,
               row index = tap*C + c with tap = (kl*3 + kw)*3 + kd
    bias_ref : (1, C) f32      fully folded bias
    o_ref    : (1, N, C) bf16  with N = L*W*D
    """
    xp = xpad_ref[0]                    # (L+2, W+2, D+2, C)
    C = xp.shape[-1]
    N = L * W * D

    # im2col: 27 shifted patches flattened to (N, C) rows, concatenated along
    # the lane axis -> one MXU matmul instead of 27 VALU broadcast-MACs.
    patches = []
    for kl in range(3):
        for kw in range(3):
            for kd in range(3):
                patches.append(
                    xp[kl:kl + L, kw:kw + W, kd:kd + D, :].reshape(N, C))
    pm = jnp.concatenate(patches, axis=-1).astype(jnp.bfloat16)   # (N, 27*C)

    q = jnp.dot(pm, wcomb_ref[...], preferred_element_type=jnp.float32)
    o_ref[0] = (q + bias_ref[0]).astype(o_ref.dtype)


def _attn_proj_kernel(num_heads, q_ref, x_ref, kvw_ref, wp_ref, bp_ref,
                      o_ref, k_scr, v_scr):
    """Fused kv-Linear + multi-head attention + output projection.

    Grid: (B, N // tq).  kv is computed once per batch element (first q-tile)
    into per-head VMEM scratches and reused for every q-tile.

    q_ref : (1, tq, C) bf16  q tile (softmax scale already folded in)
    x_ref : (1, N, C)  f32   tokens of this batch element (for the kv Linear)
    kvw_ref: (C, 2C)   bf16  kv weight (no bias)
    wp_ref: (C, C)     bf16  proj weight (x @ wp)
    bp_ref: (1, C)     f32   proj bias
    o_ref : (1, tq, C)       final module output tile (dropouts are identity)
    k_scr, v_scr: (H, N, dh) bf16 scratch
    """
    qi = pl.program_id(1)
    H = num_heads
    _, N, C = x_ref.shape
    tq = q_ref.shape[1]
    dh = C // H

    @pl.when(qi == 0)
    def _():
        xb = x_ref[0].astype(jnp.bfloat16)                       # (N, C)
        kv = jnp.dot(xb, kvw_ref[...],
                     preferred_element_type=jnp.float32)          # (N, 2C)
        # k = cols [h*dh:(h+1)*dh], v = cols [C + h*dh : C + (h+1)*dh]
        k = jnp.transpose(kv[:, :C].reshape(N, H, dh), (1, 0, 2))  # (H, N, dh)
        v = jnp.transpose(kv[:, C:].reshape(N, H, dh), (1, 0, 2))
        k_scr[...] = k.astype(k_scr.dtype)
        v_scr[...] = v.astype(v_scr.dtype)

    # batched-over-heads attention (single contractions, no per-head matmuls)
    qh = jnp.transpose(q_ref[0].reshape(tq, H, dh), (1, 0, 2))    # (H, tq, dh)
    k = k_scr[...]
    v = v_scr[...]

    s = jnp.einsum('hqd,hkd->hqk', qh, k,
                   preferred_element_type=jnp.float32)            # (H, tq, N)
    m = jnp.max(s, axis=-1, keepdims=True)
    e = jnp.exp(s - m)
    p = e * pl.reciprocal(jnp.sum(e, axis=-1, keepdims=True), approx=True)

    oh = jnp.einsum('hqk,hkd->hqd', p.astype(jnp.bfloat16), v,
                    preferred_element_type=jnp.float32)           # (H, tq, dh)

    # concat heads -> (tq, C), then ONE projection matmul with contraction C
    o2 = jnp.transpose(oh, (1, 0, 2)).reshape(tq, C).astype(jnp.bfloat16)
    out = jnp.dot(o2, wp_ref[...], preferred_element_type=jnp.float32)
    o_ref[0] = (out + bp_ref[0]).astype(o_ref.dtype)


# ------------------------------ JAX wrappers --------------------------------

def _pick_q_tile(N, target=256):
    """Largest divisor of N that is <= target and a multiple of 8 (else N)."""
    if N <= target:
        return N
    for t in range(target - target % 8, 7, -8):
        if N % t == 0:
            return t
    return N


def init_attention_params(key, dim):
    ks = jax.random.split(key, 8)
    s = 0.1
    return {
        # SepConv3d.depthwise: Conv3d(dim, dim, 3, groups=dim) -> (3,3,3,C) + bias
        "dw_w": jax.random.normal(ks[0], (3, 3, 3, dim), jnp.float32) * s,
        "dw_b": jax.random.normal(ks[1], (dim,), jnp.float32) * s,
        # SepConv3d.bn: BatchNorm3d(dim), eval mode
        "bn_gamma": jnp.ones((dim,), jnp.float32),
        "bn_beta": jnp.zeros((dim,), jnp.float32),
        "bn_mean": jnp.zeros((dim,), jnp.float32),
        "bn_var": jnp.ones((dim,), jnp.float32),
        # SepConv3d.pointwise: Conv3d(dim, dim, 1) -> (Cin, Cout) + bias
        "pw_w": jax.random.normal(ks[2], (dim, dim), jnp.float32) * s,
        "pw_b": jax.random.normal(ks[3], (dim,), jnp.float32) * s,
        # kv: Linear(dim, 2*dim, bias=False) -> (C, 2C)
        "kv_w": jax.random.normal(ks[4], (dim, 2 * dim), jnp.float32) * s,
        # proj: Linear(dim, dim)
        "proj_w": jax.random.normal(ks[5], (dim, dim), jnp.float32) * s,
        "proj_b": jax.random.normal(ks[6], (dim,), jnp.float32) * s,
    }


def attention_forward(params, x, image_size, num_heads, q_tile=256):
    B, N, C = x.shape
    L, W, D = image_size
    assert N == L * W * D
    H = num_heads
    dh = C // H
    scale = dh ** -0.5
    eps = 1e-5

    # ---- trace-time folding: depthwise*BN(eval)*pointwise*softmax-scale ----
    bn_scale = params["bn_gamma"] / jnp.sqrt(params["bn_var"] + eps)          # (C,)
    bn_shift = params["bn_beta"] - params["bn_mean"] * bn_scale               # (C,)
    wdw_eff = params["dw_w"].reshape(27, C) * bn_scale[None, :]               # (27, C)
    wpw_eff = params["pw_w"] * scale                                          # (C, C)
    # combined weight for the single im2col matmul: row index = tap*C + c
    wcomb = (wdw_eff[:, :, None] * wpw_eff[None, :, :]).reshape(27 * C, C)
    wcomb = wcomb.astype(jnp.bfloat16)
    pre_bias = params["dw_b"] * bn_scale + bn_shift                           # (C,)
    bias_eff = ((pre_bias @ params["pw_w"] + params["pw_b"]) * scale).reshape(1, C)

    kv_w = params["kv_w"].astype(jnp.bfloat16)                                # (C, 2C)
    proj_w = params["proj_w"].astype(jnp.bfloat16)                            # (C, C)
    proj_b = params["proj_b"].reshape(1, C)

    # ---- q path: SepConv3d as ONE im2col matmul per batch element ----------
    # TODO(synk): avoid the jnp.pad HBM round-trip (in-kernel halo) and L-slab
    #             tile the volume for very large (L,W,D,C).
    xq = x.reshape(B, L, W, D, C)
    xpad = jnp.pad(xq, ((0, 0), (1, 1), (1, 1), (1, 1), (0, 0)))
    qconv = pl.pallas_call(
        functools.partial(_sepconv3d_q_kernel, L, W, D),
        out_shape=jax.ShapeDtypeStruct((B, N, C), jnp.bfloat16),
        grid=(B,),
        in_specs=[
            pl.BlockSpec((1, L + 2, W + 2, D + 2, C), lambda b: (b, 0, 0, 0, 0)),
            pl.BlockSpec((27 * C, C), lambda b: (0, 0)),
            pl.BlockSpec((1, C), lambda b: (0, 0)),
        ],
        out_specs=pl.BlockSpec((1, N, C), lambda b: (b, 0, 0)),
        compiler_params=pltpu.CompilerParams(dimension_semantics=("parallel",)),
    )(xpad, wcomb, bias_eff)                                                  # (B, N, C) bf16

    # ---- fused kv-Linear + multi-head attention + output projection --------
    tq = _pick_q_tile(N, q_tile)
    nq = N // tq
    out = pl.pallas_call(
        functools.partial(_attn_proj_kernel, H),
        out_shape=jax.ShapeDtypeStruct((B, N, C), x.dtype),
        grid=(B, nq),
        in_specs=[
            pl.BlockSpec((1, tq, C), lambda b, qi: (b, qi, 0)),       # q tile
            pl.BlockSpec((1, N, C), lambda b, qi: (b, 0, 0)),         # x (kv input)
            pl.BlockSpec((C, 2 * C), lambda b, qi: (0, 0)),           # kv weight
            pl.BlockSpec((C, C), lambda b, qi: (0, 0)),               # proj weight
            pl.BlockSpec((1, C), lambda b, qi: (0, 0)),               # proj bias
        ],
        out_specs=pl.BlockSpec((1, tq, C), lambda b, qi: (b, qi, 0)),
        scratch_shapes=[pltpu.VMEM((H, N, dh), jnp.bfloat16),         # k
                        pltpu.VMEM((H, N, dh), jnp.bfloat16)],        # v
        compiler_params=pltpu.CompilerParams(
            # q-tile axis carries the kv scratch -> must be sequential
            dimension_semantics=("parallel", "arbitrary")),
    )(qconv, x, kv_w, proj_w, proj_b)
    return out


# ---------------------------------- main -------------------------------------

if __name__ == "__main__":
    B = 2
    dim = 32
    num_heads = 4
    image_size = (4, 4, 4)                 # (L, W, D)
    N = image_size[0] * image_size[1] * image_size[2]

    key = jax.random.PRNGKey(0)
    kx, kp = jax.random.split(key)
    x = jax.random.normal(kx, (B, N, dim), jnp.float32)
    params = init_attention_params(kp, dim)

    out = attention_forward(params, x, image_size, num_heads)
    out = jax.block_until_ready(out)
    assert out.shape == (B, N, dim) and out.dtype == jnp.float32
    assert bool(jnp.all(jnp.isfinite(out)))
    print("KERNEL_OK")
</pallas_src>

<mosaic_0001>
module attributes {stable_mosaic.version = 11 : i64} {
  func.func @_sepconv3d_q_kernel(%arg0: i32, %arg1: memref<1x6x6x6x32xf32, #tpu.memory_space<vmem>>, %arg2: memref<864x32xbf16, #tpu.memory_space<vmem>>, %arg3: memref<1x32xf32, #tpu.memory_space<vmem>>, %arg4: memref<1x64x32xbf16, #tpu.memory_space<vmem>>) attributes {dimension_semantics = [#tpu.dimension_semantics<parallel>], iteration_bounds = array<i64: 2>, scalar_prefetch = 0 : i64, scratch_operands = 0 : i64, tpu.core_type = #tpu.core_type<tc>, window_params = [{transform_indices = @transform_0, window_bounds = array<i64: 1, 6, 6, 6, 32>}, {pipeline_mode = #tpu.pipeline_mode<synchronous>, transform_indices = @transform_1, window_bounds = array<i64: 864, 32>}, {pipeline_mode = #tpu.pipeline_mode<synchronous>, transform_indices = @transform_2, window_bounds = array<i64: 1, 32>}, {transform_indices = @transform_3, window_bounds = array<i64: 1, 64, 32>}]} {
    %c0 = arith.constant 0 : index
    %c0_0 = arith.constant 0 : index
    %c0_1 = arith.constant 0 : index
    %c0_2 = arith.constant 0 : index
    %c0_3 = arith.constant 0 : index
    %0 = vector.load %arg1[%c0, %c0_0, %c0_1, %c0_2, %c0_3] : memref<1x6x6x6x32xf32, #tpu.memory_space<vmem>>, vector<1x6x6x6x32xf32>
    %1 = vector.shape_cast %0 : vector<1x6x6x6x32xf32> to vector<6x6x6x32xf32>
    %2 = vector.extract_strided_slice %1 {offsets = [0, 0, 0, 0], sizes = [4, 4, 4, 32], strides = [1, 1, 1, 1]} : vector<6x6x6x32xf32> to vector<4x4x4x32xf32>
    %3 = vector.shape_cast %2 : vector<4x4x4x32xf32> to vector<64x32xf32>
    %4 = vector.extract_strided_slice %1 {offsets = [0, 0, 1, 0], sizes = [4, 4, 4, 32], strides = [1, 1, 1, 1]} : vector<6x6x6x32xf32> to vector<4x4x4x32xf32>
    %5 = vector.shape_cast %4 : vector<4x4x4x32xf32> to vector<64x32xf32>
    %6 = vector.extract_strided_slice %1 {offsets = [0, 0, 2, 0], sizes = [4, 4, 4, 32], strides = [1, 1, 1, 1]} : vector<6x6x6x32xf32> to vector<4x4x4x32xf32>
    %7 = vector.shape_cast %6 : vector<4x4x4x32xf32> to vector<64x32xf32>
    %8 = vector.extract_strided_slice %1 {offsets = [0, 1, 0, 0], sizes = [4, 4, 4, 32], strides = [1, 1, 1, 1]} : vector<6x6x6x32xf32> to vector<4x4x4x32xf32>
    %9 = vector.shape_cast %8 : vector<4x4x4x32xf32> to vector<64x32xf32>
    %10 = vector.extract_strided_slice %1 {offsets = [0, 1, 1, 0], sizes = [4, 4, 4, 32], strides = [1, 1, 1, 1]} : vector<6x6x6x32xf32> to vector<4x4x4x32xf32>
    %11 = vector.shape_cast %10 : vector<4x4x4x32xf32> to vector<64x32xf32>
    %12 = vector.extract_strided_slice %1 {offsets = [0, 1, 2, 0], sizes = [4, 4, 4, 32], strides = [1, 1, 1, 1]} : vector<6x6x6x32xf32> to vector<4x4x4x32xf32>
    %13 = vector.shape_cast %12 : vector<4x4x4x32xf32> to vector<64x32xf32>
    %14 = vector.extract_strided_slice %1 {offsets = [0, 2, 0, 0], sizes = [4, 4, 4, 32], strides = [1, 1, 1, 1]} : vector<6x6x6x32xf32> to vector<4x4x4x32xf32>
    %15 = vector.shape_cast %14 : vector<4x4x4x32xf32> to vector<64x32xf32>
    %16 = vector.extract_strided_slice %1 {offsets = [0, 2, 1, 0], sizes = [4, 4, 4, 32], strides = [1, 1, 1, 1]} : vector<6x6x6x32xf32> to vector<4x4x4x32xf32>
    %17 = vector.shape_cast %16 : vector<4x4x4x32xf32> to vector<64x32xf32>
    %18 = vector.extract_strided_slice %1 {offsets = [0, 2, 2, 0], sizes = [4, 4, 4, 32], strides = [1, 1, 1, 1]} : vector<6x6x6x32xf32> to vector<4x4x4x32xf32>
    %19 = vector.shape_cast %18 : vector<4x4x4x32xf32> to vector<64x32xf32>
    %20 = vector.extract_strided_slice %1 {offsets = [1, 0, 0, 0], sizes = [4, 4, 4, 32], strides = [1, 1, 1, 1]} : vector<6x6x6x32xf32> to vector<4x4x4x32xf32>
    %21 = vector.shape_cast %20 : vector<4x4x4x32xf32> to vector<64x32xf32>
    %22 = vector.extract_strided_slice %1 {offsets = [1, 0, 1, 0], sizes = [4, 4, 4, 32], strides = [1, 1, 1, 1]} : vector<6x6x6x32xf32> to vector<4x4x4x32xf32>
    %23 = vector.shape_cast %22 : vector<4x4x4x32xf32> to vector<64x32xf32>
    %24 = vector.extract_strided_slice %1 {offsets = [1, 0, 2, 0], sizes = [4, 4, 4, 32], strides = [1, 1, 1, 1]} : vector<6x6x6x32xf32> to vector<4x4x4x32xf32>
    %25 = vector.shape_cast %24 : vector<4x4x4x32xf32> to vector<64x32xf32>
    %26 = vector.extract_strided_slice %1 {offsets = [1, 1, 0, 0], sizes = [4, 4, 4, 32], strides = [1, 1, 1, 1]} : vector<6x6x6x32xf32> to vector<4x4x4x32xf32>
    %27 = vector.shape_cast %26 : vector<4x4x4x32xf32> to vector<64x32xf32>
    %28 = vector.extract_strided_slice %1 {offsets = [1, 1, 1, 0], sizes = [4, 4, 4, 32], strides = [1, 1, 1, 1]} : vector<6x6x6x32xf32> to vector<4x4x4x32xf32>
    %29 = vector.shape_cast %28 : vector<4x4x4x32xf32> to vector<64x32xf32>
    %30 = vector.extract_strided_slice %1 {offsets = [1, 1, 2, 0], sizes = [4, 4, 4, 32], strides = [1, 1, 1, 1]} : vector<6x6x6x32xf32> to vector<4x4x4x32xf32>
    %31 = vector.shape_cast %30 : vector<4x4x4x32xf32> to vector<64x32xf32>
    %32 = vector.extract_strided_slice %1 {offsets = [1, 2, 0, 0], sizes = [4, 4, 4, 32], strides = [1, 1, 1, 1]} : vector<6x6x6x32xf32> to vector<4x4x4x32xf32>
    %33 = vector.shape_cast %32 : vector<4x4x4x32xf32> to vector<64x32xf32>
    %34 = vector.extract_strided_slice %1 {offsets = [1, 2, 1, 0], sizes = [4, 4, 4, 32], strides = [1, 1, 1, 1]} : vector<6x6x6x32xf32> to vector<4x4x4x32xf32>
    %35 = vector.shape_cast %34 : vector<4x4x4x32xf32> to vector<64x32xf32>
    %36 = vector.extract_strided_slice %1 {offsets = [1, 2, 2, 0], sizes = [4, 4, 4, 32], strides = [1, 1, 1, 1]} : vector<6x6x6x32xf32> to vector<4x4x4x32xf32>
    %37 = vector.shape_cast %36 : vector<4x4x4x32xf32> to vector<64x32xf32>
    %38 = vector.extract_strided_slice %1 {offsets = [2, 0, 0, 0], sizes = [4, 4, 4, 32], strides = [1, 1, 1, 1]} : vector<6x6x6x32xf32> to vector<4x4x4x32xf32>
    %39 = vector.shape_cast %38 : vector<4x4x4x32xf32> to vector<64x32xf32>
    %40 = vector.extract_strided_slice %1 {offsets = [2, 0, 1, 0], sizes = [4, 4, 4, 32], strides = [1, 1, 1, 1]} : vector<6x6x6x32xf32> to vector<4x4x4x32xf32>
    %41 = vector.shape_cast %40 : vector<4x4x4x32xf32> to vector<64x32xf32>
    %42 = vector.extract_strided_slice %1 {offsets = [2, 0, 2, 0], sizes = [4, 4, 4, 32], strides = [1, 1, 1, 1]} : vector<6x6x6x32xf32> to vector<4x4x4x32xf32>
    %43 = vector.shape_cast %42 : vector<4x4x4x32xf32> to vector<64x32xf32>
    %44 = vector.extract_strided_slice %1 {offsets = [2, 1, 0, 0], sizes = [4, 4, 4, 32], strides = [1, 1, 1, 1]} : vector<6x6x6x32xf32> to vector<4x4x4x32xf32>
    %45 = vector.shape_cast %44 : vector<4x4x4x32xf32> to vector<64x32xf32>
    %46 = vector.extract_strided_slice %1 {offsets = [2, 1, 1, 0], sizes = [4, 4, 4, 32], strides = [1, 1, 1, 1]} : vector<6x6x6x32xf32> to vector<4x4x4x32xf32>
    %47 = vector.shape_cast %46 : vector<4x4x4x32xf32> to vector<64x32xf32>
    %48 = vector.extract_strided_slice %1 {offsets = [2, 1, 2, 0], sizes = [4, 4, 4, 32], strides = [1, 1, 1, 1]} : vector<6x6x6x32xf32> to vector<4x4x4x32xf32>
    %49 = vector.shape_cast %48 : vector<4x4x4x32xf32> to vector<64x32xf32>
    %50 = vector.extract_strided_slice %1 {offsets = [2, 2, 0, 0], sizes = [4, 4, 4, 32], strides = [1, 1, 1, 1]} : vector<6x6x6x32xf32> to vector<4x4x4x32xf32>
    %51 = vector.shape_cast %50 : vector<4x4x4x32xf32> to vector<64x32xf32>
    %52 = vector.extract_strided_slice %1 {offsets = [2, 2, 1, 0], sizes = [4, 4, 4, 32], strides = [1, 1, 1, 1]} : vector<6x6x6x32xf32> to vector<4x4x4x32xf32>
    %53 = vector.shape_cast %52 : vector<4x4x4x32xf32> to vector<64x32xf32>
    %54 = vector.extract_strided_slice %1 {offsets = [2, 2, 2, 0], sizes = [4, 4, 4, 32], strides = [1, 1, 1, 1]} : vector<6x6x6x32xf32> to vector<4x4x4x32xf32>
    %55 = vector.shape_cast %54 : vector<4x4x4x32xf32> to vector<64x32xf32>
    %56 = tpu.concatenate %3, %5, %7, %9, %11, %13, %15, %17, %19, %21, %23, %25, %27, %29, %31, %33 in 1 : vector<64x32xf32>, vector<64x32xf32>, vector<64x32xf32>, vector<64x32xf32>, vector<64x32xf32>, vector<64x32xf32>, vector<64x32xf32>, vector<64x32xf32>, vector<64x32xf32>, vector<64x32xf32>, vector<64x32xf32>, vector<64x32xf32>, vector<64x32xf32>, vector<64x32xf32>, vector<64x32xf32>, vector<64x32xf32> -> vector<64x512xf32>
    %57 = tpu.concatenate %35, %37, %39, %41, %43, %45, %47, %49, %51, %53, %55 in 1 : vector<64x32xf32>, vector<64x32xf32>, vector<64x32xf32>, vector<64x32xf32>, vector<64x32xf32>, vector<64x32xf32>, vector<64x32xf32>, vector<64x32xf32>, vector<64x32xf32>, vector<64x32xf32>, vector<64x32xf32> -> vector<64x352xf32>
    %58 = tpu.concatenate %56, %57 in 1 : vector<64x512xf32>, vector<64x352xf32> -> vector<64x864xf32>
    %59 = arith.truncf %58 : vector<64x864xf32> to vector<64x864xbf16>
    %c0_4 = arith.constant 0 : index
    %c0_5 = arith.constant 0 : index
    %60 = vector.load %arg2[%c0_4, %c0_5] : memref<864x32xbf16, #tpu.memory_space<vmem>>, vector<864x32xbf16>
    %cst = arith.constant dense<0.000000e+00> : vector<64x32xf32>
    %61 = tpu.matmul %59, %60, %cst {dimension_numbers = #tpu.dot_dimension_numbers<[1], [0], [0], [1], [0, 0, 1, 1], [], []>} : vector<64x864xbf16>, vector<864x32xbf16>, vector<64x32xf32> -> vector<64x32xf32>
    %c0_6 = arith.constant 0 : index
    %c0_7 = arith.constant 0 : index
    %62 = vector.load %arg3[%c0_6, %c0_7] : memref<1x32xf32, #tpu.memory_space<vmem>>, vector<1x32xf32>
    %63 = vector.shape_cast %62 : vector<1x32xf32> to vector<32xf32>
    %64 = vector.shape_cast %63 : vector<32xf32> to vector<1x32xf32>
    %65 = vector.broadcast %64 : vector<1x32xf32> to vector<64x32xf32>
    %66 = arith.addf %61, %65 : vector<64x32xf32>
    %67 = arith.truncf %66 : vector<64x32xf32> to vector<64x32xbf16>
    %c0_8 = arith.constant 0 : index
    %c0_9 = arith.constant 0 : index
    %c0_10 = arith.constant 0 : index
    %68 = vector.load %arg4[%c0_8, %c0_9, %c0_10] : memref<1x64x32xbf16, #tpu.memory_space<vmem>>, vector<1x64x32xbf16>
    %69 = vector.shape_cast %68 : vector<1x64x32xbf16> to vector<64x32xbf16>
    %70 = vector.shape_cast %67 : vector<64x32xbf16> to vector<1x64x32xbf16>
    tpu.vector_store %arg4[%c0_8, %c0_9, %c0_10], %70 {strides = array<i32>} : memref<1x64x32xbf16, #tpu.memory_space<vmem>>, vector<1x64x32xbf16>,
    return
  }
  func.func @transform_0(%arg0: i32) -> (i32, i32, i32, i32, i32) {
    %c0_i32 = arith.constant 0 : i32
    %c0_i32_0 = arith.constant 0 : i32
    %c0_i32_1 = arith.constant 0 : i32
    %c0_i32_2 = arith.constant 0 : i32
    %c0_i32_3 = arith.constant 0 : i32
    return %arg0, %c0_i32, %c0_i32_0, %c0_i32_1, %c0_i32_2 : i32, i32, i32, i32, i32
  }
  func.func @transform_1(%arg0: i32) -> (i32, i32) {
    %c0_i32 = arith.constant 0 : i32
    %c0_i32_0 = arith.constant 0 : i32
    %c0_i32_1 = arith.constant 0 : i32
    return %c0_i32, %c0_i32_0 : i32, i32
  }
  func.func @transform_2(%arg0: i32) -> (i32, i32) {
    %c0_i32 = arith.constant 0 : i32
    %c0_i32_0 = arith.constant 0 : i32
    %c0_i32_1 = arith.constant 0 : i32
    return %c0_i32, %c0_i32_0 : i32, i32
  }
  func.func @transform_3(%arg0: i32) -> (i32, i32, i32) {
    %c0_i32 = arith.constant 0 : i32
    %c0_i32_0 = arith.constant 0 : i32
    %c0_i32_1 = arith.constant 0 : i32
    return %arg0, %c0_i32, %c0_i32_0 : i32, i32, i32
  }
}

</mosaic_0001>

<bundles_post_ra>
// kernel: tpu_custom_call.1
= control target key start
LH: loop header
LB: loop body
LE: loop exit
PB: predicated region body
PF: predicated region fallthrough
CT: control target
= control target key end

     0   :  { %s3684_s12 = smov 0   ;;  %s5669_s0 = inlined_call_operand.vmem [shape: f32[2,6,6,6,32], index: 0, kind: input, shape index: {}]   ;;  %s5670_s1 = inlined_call_operand.vmem [shape: bf16[864,32], index: 1, kind: input, shape index: {}]   ;;  %s5671_s2 = inlined_call_operand.vmem [shape: f32[1,32], index: 2, kind: input, shape index: {}]   ;;  %s5672_s3 = inlined_call_operand.vmem [shape: bf16[2,64,32], index: 3, kind: output, shape index: {}]  }
   0x1 LB: > { %s2861_s13 = sadd.s32 4294967295, %s3659_s12   ;;  %p2865_p0 = scmp.ge.s32.totalorder %s3659_s12, 1  ;;  %s3659_s12 = sphi %s3684_s12, %s13_s12  }
   0x2   : > { %p137_p1 = scmp.lt.s32.totalorder %s3659_s12, 3 }
   0x4   : > { %p138_p2 = pnand %p2865_p0, %p137_p1 }
   0x6   : > { %141 = sbr.rel (%p138_p2) target bundleno = 878 (0x36e), region = 32 }
   0xb   : > { %p161_p3 = scmp.lt.s32.totalorder %s2861_s13, 1  ;;  %vm240_vm0 = vcmask 1042432   ;;  %vm241_vm1 = vcmask 1046532   ;;  %vm307_vm3 = vcmask 1041408   ;;  %vm308_vm4 = vcmask 1045508   ;;  %s3661_s18 = smov 32  }
   0xc   : > { %vm3751_vm2 = vmor %vm240_vm0, %vm241_vm1  ;;  %s3662_s19 = smov 64   ;;  %s3663_s20 = smov 96   ;;  %vm1390_vm6 = vcmask 261120   ;;  %vm1399_vm7 = vcmask 523264   ;;  %vm1408_vm8 = vcmask 785408   ;;  %vm2797_vm9 = vcmask 257024  }
   0xd   : > { %s6043_s13 = smov (!%p161_p3, %s2861_s13), 1  ;;  %vm3890_vm5 = vmor %vm307_vm3, %vm308_vm4 }
   0xe   : > { %s3240_s14 = smul.u32 288, %s6043_s13  ;;  %s3163_s21 = sshll.u32 %s6043_s13, 5 }
   0xf   : > { %s5636_s24 = scalar_lea.vmem %s5672_s3, %s3163_s21 }
  0x10   : > { %s3698_s17 = scalar_lea.vmem %s5669_s0, %s3240_s14 }
  0x11   : > { %v3701_v0 = vld [vmem:[%s3698_s17] sm:$0x3f]  ;;  %v3704_v1 = vld [vmem:[%s3698_s17 + $0x8] sm:$0x3f]  ;;  %v3707_v2 = vld [vmem:[%s3698_s17 + $0x10] sm:$0x3f] }
  0x12   : > { %v3710_v3 = vld [vmem:[%s3698_s17 + $0x18] sm:$0x3f]  ;;  %574 = vst [vmem:[#allocation1] ss:$2 sm:$0xff] %v3701_v0  ;;  %v3717_v4 = vld [vmem:[%s3698_s17 + $0x60] sm:$0x3f] }
  0x13   : > { %576 = vst [vmem:[#allocation1 + $0x1] ss:$2 sm:$0xff] %v3704_v1  ;;  %v3720_v5 = vld [vmem:[%s3698_s17 + $0x68] sm:$0x3f]  ;;  %v3723_v6 = vld [vmem:[%s3698_s17 + $0x70] sm:$0x3f] }
  0x14   : > { %578 = vst [vmem:[#allocation1 + $0x10] ss:$2 sm:$0xff] %v3707_v2  ;;  %v3726_v7 = vld [vmem:[%s3698_s17 + $0x78] sm:$0x3f]  ;;  %v224_v8 = vrot.slane %v3701_v0, 4  ;;  %v225_v9 = vrot.slane %v3704_v1, 4 }
  0x15   : > { %580 = vst [vmem:[#allocation1 + $0x11] ss:$2 sm:$0xff] %v3710_v3  ;;  %v226_v10 = vrot.slane %v3707_v2, 4  ;;  %v227_v12 = vrot.slane %v3710_v3, 4  ;;  %v232_v13 = vrot.slane %v3717_v4, 4  ;;  %v233_v15 = vrot.slane %v3720_v5, 4 }
  0x16   : > { %5772 = vst [vmem:[#allocation2_spill] sm:$0xff] %v3717_v4  ;;  %v3737_v14 = vld [vmem:[%s3698_s17 + $0x30] sm:$0x3f]  ;;  %v2869_v17 = vrot.slane %v3701_v0, 9  ;;  %v245_v18 = vrot.slane %v224_v8, 5  ;;  %v2870_v21 = vrot.slane %v3704_v1, 9 }
  0x17   : > { %5773 = vst [vmem:[#allocation3_spill] sm:$0xff] %v3720_v5  ;;  %v3748_v19 = vld [vmem:[%s3698_s17 + $0x38] sm:$0x3f]  ;;  %v249_v22 = vrot.slane %v225_v9, 5  ;;  %v3760_v23 = vld [vmem:[%s3698_s17 + $0x40] sm:$0x3f] }
  0x18   : > { %5774 = vst [vmem:[#allocation4_spill] sm:$0xff] %v3723_v6  ;;  %v2871_v24 = vrot.slane %v3707_v2, 9  ;;  %v253_v25 = vrot.slane %v226_v10, 5  ;;  %v3766_v26 = vld [vmem:[%s3698_s17 + $0x48] sm:$0x3f]  ;;  %v2872_v27 = vrot.slane %v3710_v3, 9  ;;  %v246_v30 = vsel %vm3751_vm2, %v2869_v17, %v245_v18 }
  0x19   : > { %5775 = vst [vmem:[#allocation5_spill] sm:$0xff] %v3726_v7  ;;  %v257_v28 = vrot.slane %v227_v12, 5  ;;  %v234_v29 = vrot.slane %v3723_v6, 4  ;;  %v235_v31 = vrot.slane %v3726_v7, 4  ;;  %v3780_v32 = vsel %vm3751_vm2, %v2870_v21, %v249_v22  ;;  %v3801_v41 = vld [vmem:[%s3698_s17 + $0x90] sm:$0x3f] }
  0x1a   : > { %v3731_v11 = vld.sshfl [vmem:[#allocation1] sm:$0xff pattern:$0x75316420]  ;;  %582 = vst [vmem:[#allocation1 + $0x20] ss:$2 sm:$0xff] %v3737_v14  ;;  %v2877_v33 = vrot.slane %v3717_v4, 9  ;;  %v3788_v35 = vsel %vm3751_vm2, %v2871_v24, %v253_v25 }
  0x1b   : > { %5776 = vst [vmem:[#allocation6_spill] sm:$0xff] %v3731_v11  ;;  %v277_v34 = vrot.slane %v232_v13, 5  ;;  %v2878_v36 = vrot.slane %v3720_v5, 9  ;;  %v281_v37 = vrot.slane %v233_v15, 5  ;;  %v2879_v38 = vrot.slane %v3723_v6, 9 }
  0x1c   : > { %593 = vst [vmem:[#allocation1] ss:$2 sm:$0xff] %v3717_v4  ;;  %v3740_v16 = vld.sshfl [vmem:[#allocation1 + $0x10] sm:$0xff pattern:$0x75316420]  ;;  %v3798_v40 = vsel %vm3751_vm2, %v2872_v27, %v257_v28  ;;  %v285_v43 = vrot.slane %v234_v29, 5 }
  0x1d   : > { %5777 = vst [vmem:[#allocation7_spill] sm:$0xff] %v3740_v16  ;;  %v3804_v42 = vld [vmem:[%s3698_s17 + $0x98] sm:$0x3f]  ;;  %v3813_v45 = vld [vmem:[%s3698_s17 + $0xa0] sm:$0x3f]  ;;  %v228_v46 = vrot.slane %v3737_v14, 4  ;;  %v3830_v53 = vsel %vm3751_vm2, %v2877_v33, %v277_v34  ;;  %v3834_v54 = vsel %vm3751_vm2, %v2878_v36, %v281_v37 }
  0x1e   : > { %594 = vst [vmem:[#allocation1 + $0x1] ss:$2 sm:$0xff] %v3720_v5  ;;  %v229_v47 = vrot.slane %v3748_v19, 4  ;;  %v2880_v48 = vrot.slane %v3726_v7, 9  ;;  %v289_v50 = vrot.slane %v235_v31, 5  ;;  %v230_v52 = vrot.slane %v3760_v23, 4 }
  0x1f   : > { %595 = vst [vmem:[#allocation1 + $0x10] ss:$2 sm:$0xff] %v3723_v6  ;;  %v3824_v51 = vld [vmem:[%s3698_s17 + $0xa8] sm:$0x3f]  ;;  %v5675_v55 = vrot.slane %v3766_v26, 4  ;;  %v2873_v57 = vrot.slane %v3737_v14, 9  ;;  %v3849_v61 = vsel %vm3751_vm2, %v2879_v38, %v285_v43 }
  0x20   : > { %596 = vst [vmem:[#allocation1 + $0x11] ss:$2 sm:$0xff] %v3726_v7  ;;  %v261_v58 = vrot.slane %v228_v46, 5  ;;  %v2874_v59 = vrot.slane %v3748_v19, 9  ;;  %v265_v60 = vrot.slane %v229_v47, 5  ;;  %v5673_v62 = vrot.slane %v3801_v41, 4 }
  0x21   : > { %584 = vst [vmem:[#allocation1 + $0x21] ss:$2 sm:$0xff] %v3748_v19  ;;  %v5674_v63 = vrot.slane %v3804_v42, 4  ;;  %v5676_v17 = vrot.slane %v3813_v45, 4  ;;  %v3857_v18 = vsel %vm3751_vm2, %v2880_v48, %v289_v50  ;;  %v5677_v22 = vrot.slane %v3824_v51, 4 }
  0x22   : > { %586 = vst [vmem:[#allocation1 + $0x30] ss:$2 sm:$0xff] %v3760_v23  ;;  %v2875_v24 = vrot.slane %v3760_v23, 9  ;;  %v269_v25 = vrot.slane %v230_v52, 5  ;;  %v2876_v27 = vrot.slane %v3766_v26, 9  ;;  %v273_v28 = vrot.slane %v5675_v55, 5 }
  0x23   : > { %588 = vst [vmem:[#allocation1 + $0x31] ss:$2 sm:$0xff] %v3766_v26  ;;  %v3870_v33 = vsel %vm3751_vm2, %v2873_v57, %v261_v58  ;;  %v3874_v34 = vsel %vm3751_vm2, %v2874_v59, %v265_v60  ;;  %v2881_v36 = vrot.slane %v3801_v41, 9  ;;  %v2885_v38 = vrot.slane %v3701_v0, 10 }
  0x24   : > { %5781 = vst [vmem:[#allocation9_spill] sm:$0xff] %v3801_v41  ;;  %v312_v43 = vrot.slane %v224_v8, 6  ;;  %v2886_v48 = vrot.slane %v3704_v1, 10  ;;  %v3885_v50 = vsel %vm3751_vm2, %v2875_v24, %v269_v25  ;;  %v5791_v58 = vmov 0 }
  0x25   : > { %v3794_v39 = vld.sshfl [vmem:[#allocation1] sm:$0xff pattern:$0x75316420]  ;;  %5782 = vst [vmem:[#allocation10_spill] sm:$0xff] %v3804_v42  ;;  %v5792_v58 = vsel %vm3890_vm5, 4294967295, %v5791_v58  ;;  %v316_v59 = vrot.slane %v225_v9, 6  ;;  %v3899_v0 = vsel %vm3751_vm2, %v2876_v27, %v273_v28 }
  0x26   : > { %5780 = vst [vmem:[#allocation8_spill] sm:$0xff] %v3794_v39  ;;  %v2887_v8 = vrot.slane %v3707_v2, 10  ;;  %v320_v60 = vrot.slane %v226_v10, 6  ;;  %v324_v9 = vrot.slane %v227_v12, 6  ;;  %v293_v25 = vrot.slane %v5673_v62, 5 }
  0x27   : > { %613 = vst [vmem:[#allocation1] ss:$2 sm:$0xff] %v246_v30  ;;  %v3808_v44 = vld.sshfl [vmem:[#allocation1 + $0x10] sm:$0xff pattern:$0x75316420]  ;;  %v2882_v27 = vrot.slane %v3804_v42, 9  ;;  %v313_v10 = vsel %vm3890_vm5, %v2885_v38, %v312_v43 }
  0x28   : > { %5783 = vst [vmem:[#allocation11_spill] sm:$0xff] %v3808_v44  ;;  %v3819_v49 = vld.sshfl [vmem:[#allocation1 + $0x20] sm:$0xff pattern:$0x75316420]  ;;  %v297_v28 = vrot.slane %v5674_v63, 5  ;;  %v301_v62 = vrot.slane %v5676_v17, 5  ;;  %v3929_v63 = vsel %vm3890_vm5, %v2887_v8, %v320_v60 }
  0x29   : > { %615 = vst [vmem:[#allocation1 + $0x1] ss:$2 sm:$0xff] %v3780_v32  ;;  %v2884_v55 = vrot.slane %v3824_v51, 9  ;;  %v305_v38 = vrot.slane %v5677_v22, 5  ;;  %v2893_v60 = vrot.slane %v3717_v4, 10 }
  0x2a   : > { %617 = vst [vmem:[#allocation1 + $0x10] ss:$2 sm:$0xff] %v3788_v35  ;;  %v3837_v56 = vld.sshfl [vmem:[#allocation1 + $0x30] sm:$0xff pattern:$0x75316420]  ;;  %v3944_v17 = vsel %vm3751_vm2, %v2882_v27, %v297_v28  ;;  %v348_v27 = vrot.slane %v233_v15, 6 }
  0x2b   : > { %5784 = vst [vmem:[#allocation12_spill] sm:$0xff] %v3813_v45  ;;  %v3962_v28 = vsel %vm3751_vm2, %v2884_v55, %v305_v38  ;;  %v356_v15 = vrot.slane %v235_v31, 6  ;;  %v2889_v55 = vrot.slane %v3737_v14, 10  ;;  %v328_v38 = vrot.slane %v228_v46, 6 }
  0x2c   : > { %619 = vst [vmem:[#allocation1 + $0x11] ss:$2 sm:$0xff] %v3798_v40  ;;  %v336_v46 = vrot.slane %v230_v52, 6 }
  0x2d   : > { %5785 = vst [vmem:[#allocation13_spill] sm:$0xff] %v3819_v49  ;;  %v4043_v49 = vld [vmem:[%s3698_s17 + $0x20] sm:$0x3f] }
  0x2e   : > { %5786 = vst [vmem:[#allocation14_spill] sm:$0xff] %v3824_v51 }
  0x2f   : > { %597 = vst [vmem:[#allocation1 + $0x20] ss:$2 sm:$0xff] %v3801_v41 }
  0x30   : > { %5787 = vst [vmem:[#allocation15_spill] sm:$0xff] %v3830_v53  ;;  %v628_v21 = vld.sshfl [vmem:[#allocation1] sm:$0xff pattern:$0x75316420] }
  0x31   : > { %5788 = vst [vmem:[#allocation16_spill] sm:$0xff] %v3834_v54 }
  0x32   : > { %5789 = vst [vmem:[#allocation17_spill] sm:$0xff] %v3837_v56 }
  0x33   : > { %598 = vst [vmem:[#allocation1 + $0x21] ss:$2 sm:$0xff] %v3804_v42  ;;  %v629_v30 = vld.sshfl [vmem:[#allocation1 + $0x10] sm:$0xff pattern:$0x75316420] }
  0x34   : > { %599 = vst [vmem:[#allocation1 + $0x30] ss:$2 sm:$0xff] %v3813_v45  ;;  %v3252_v37 = vpack.i.bf16 %v629_v30, %v628_v21  ;;  %v2888_v21 = vrot.slane %v3710_v3, 10  ;;  %v3922_v30 = vsel %vm3890_vm5, %v2886_v48, %v316_v59  ;;  %v3940_v59 = vsel %vm3751_vm2, %v2881_v36, %v293_v25 }
  0x35   : > { %600 = vst [vmem:[#allocation1 + $0x31] ss:$2 sm:$0xff] %v3824_v51 }
  0x36   : > { %632 = vst [vmem:[#allocation1] ss:$2 sm:$0xff] %v3830_v53  ;;  %3253 = vrot.lane.b32.xlu0 %v3252_v37, %s3661_s18  ;;  %v2883_v37 = vrot.slane %v3813_v45, 9  ;;  %v3936_v43 = vsel %vm3890_vm5, %v2888_v21, %v324_v9  ;;  %v344_v21 = vrot.slane %v232_v13, 6  ;;  %v2894_v9 = vrot.slane %v3720_v5, 10 }
  0x37   : > { %633 = vst [vmem:[#allocation1 + $0x1] ss:$2 sm:$0xff] %v3834_v54  ;;  %v2895_v13 = vrot.slane %v3723_v6, 10 }
  0x38   : > { %634 = vst [vmem:[#allocation1 + $0x10] ss:$2 sm:$0xff] %v3849_v61  ;;  %v3954_v36 = vsel %vm3751_vm2, %v2883_v37, %v301_v62  ;;  %v352_v62 = vrot.slane %v234_v29, 6  ;;  %v2890_v29 = vrot.slane %v3748_v19, 10  ;;  %v3986_v31 = vsel %vm3890_vm5, %v2894_v9, %v348_v27 }
  0x39   : > { %635 = vst [vmem:[#allocation1 + $0x11] ss:$2 sm:$0xff] %v3857_v18  ;;  %v4006_v27 = vsel %vm3890_vm5, %v2889_v55, %v328_v38 }
  0x3a   : > { %v3887_v57 = vld.sshfl [vmem:[#allocation1 + $0x20] sm:$0xff pattern:$0x75316420]  ;;  %5793 = vst [vmem:[#allocation19_spill] sm:$0xff] %v5792_v58 }
  0x3b   : > { %5790 = vst [vmem:[#allocation18_spill] sm:$0xff] %v3887_v57 }
  0x3c   : > { %621 = vst [vmem:[#allocation1 + $0x20] ss:$2 sm:$0xff] %v3870_v33  ;;  %v3906_v24 = vld.sshfl [vmem:[#allocation1 + $0x30] sm:$0xff pattern:$0x75316420] }
  0x3d   : > { %5794 = vst [vmem:[#allocation20_spill] sm:$0xff] %v3906_v24 }
  0x3e   : > { %623 = vst [vmem:[#allocation1 + $0x21] ss:$2 sm:$0xff] %v3874_v34  ;;  %v640_v12 = vld.sshfl [vmem:[#allocation1] sm:$0xff pattern:$0x75316420] }
  0x3f   : > { %625 = vst [vmem:[#allocation1 + $0x30] ss:$2 sm:$0xff] %v3885_v50 }
  0x40   : > { %627 = vst [vmem:[#allocation1 + $0x31] ss:$2 sm:$0xff] %v3899_v0  ;;  %v641_v48 = vld.sshfl [vmem:[#allocation1 + $0x10] sm:$0xff pattern:$0x75316420] }
  0x41   : > { %668 = vst [vmem:[#allocation1] ss:$2 sm:$0xff] %v313_v10  ;;  %v3262_v8 = vpack.i.bf16 %v641_v48, %v640_v12  ;;  %v2896_v10 = vrot.slane %v3726_v7, 10  ;;  %v3978_v48 = vsel %vm3890_vm5, %v2893_v60, %v344_v21  ;;  %v3994_v21 = vsel %vm3890_vm5, %v2895_v13, %v352_v62 }
  0x42   : > { %5795 = vst [vmem:[#allocation21_spill] sm:$0xff] %v3940_v59 }
  0x43   : > { %5796 = vst [vmem:[#allocation22_spill] sm:$0xff] %v3944_v17  ;;  %3263 = vrot.lane.b32.xlu1 %v3262_v8, %s3661_s18  ;;  %v332_v8 = vrot.slane %v229_v47, 6  ;;  %v5801_v47 = vrot.slane %v3766_v26, 4  ;;  %v4001_v9 = vsel %vm3890_vm5, %v2896_v10, %v356_v15 }
  0x44   : > { %670 = vst [vmem:[#allocation1 + $0x1] ss:$2 sm:$0xff] %v3922_v30 }
  0x45   : > { %672 = vst [vmem:[#allocation1 + $0x10] ss:$2 sm:$0xff] %v3929_v63  ;;  %v630_v25 = vld.sshfl [vmem:[#allocation1 + $0x20] sm:$0xff pattern:$0x75316420]  ;;  %v340_v22 = vrot.slane %v5801_v47, 6  ;;  %v4011_v13 = vsel %vm3890_vm5, %v2890_v29, %v332_v8 }
  0x46   : > { %5797 = vst [vmem:[#allocation23_spill] sm:$0xff] %v3954_v36  ;;  %v2897_v29 = vrot.slane %v3801_v41, 10  ;;  %v5802_v8 = vrot.slane %v3801_v41, 4  ;;  %v5804_v47 = vrot.slane %v3813_v45, 4 }
  0x47   : > { %674 = vst [vmem:[#allocation1 + $0x11] ss:$2 sm:$0xff] %v3936_v43  ;;  %v631_v12 = vld.sshfl [vmem:[#allocation1 + $0x30] sm:$0xff pattern:$0x75316420] }
  0x48   : > { %5798 = vst [vmem:[#allocation24_spill] sm:$0xff] %v3962_v28  ;;  %v3257_v37 = vpack.i.bf16 %v631_v12, %v630_v25  ;;  %v2891_v25 = vrot.slane %v3760_v23, 10  ;;  %v2892_v12 = vrot.slane %v3766_v26, 10 }
  0x49   : > { %636 = vst [vmem:[#allocation1 + $0x20] ss:$2 sm:$0xff] %v3940_v59 }
  0x4a   : > { %637 = vst [vmem:[#allocation1 + $0x21] ss:$2 sm:$0xff] %v3944_v17  ;;  %3258 = vrot.lane.b32.xlu0 %v3257_v37, %s3661_s18  ;;  %v4016_v10 = vsel %vm3890_vm5, %v2891_v25, %v336_v46  ;;  %v4021_v15 = vsel %vm3890_vm5, %v2892_v12, %v340_v22  ;;  %v360_v25 = vrot.slane %v5802_v8, 6  ;;  %v2898_v22 = vrot.slane %v3804_v42, 10 }
  0x4b   : > { %638 = vst [vmem:[#allocation1 + $0x30] ss:$2 sm:$0xff] %v3954_v36  ;;  %v683_v60 = vld.sshfl [vmem:[#allocation1] sm:$0xff pattern:$0x75316420]  ;;  %v5803_v46 = vrot.slane %v3804_v42, 4 }
  0x4c   : > { %5799 = vst [vmem:[#allocation25_spill] sm:$0xff] %v3978_v48  ;;  %v2899_v12 = vrot.slane %v3813_v45, 10 }
  0x4d   : > { %639 = vst [vmem:[#allocation1 + $0x31] ss:$2 sm:$0xff] %v3962_v28 }
  0x4e   : > { %5800 = vst [vmem:[#allocation26_spill] sm:$0xff] %v3986_v31  ;;  %v684_v52 = vld.sshfl [vmem:[#allocation1 + $0x10] sm:$0xff pattern:$0x75316420] }
  0x4f   : > { %687 = vst [vmem:[#allocation1] ss:$2 sm:$0xff] %v3978_v48  ;;  %v3272_v62 = vpack.i.bf16 %v684_v52, %v683_v60  ;;  %v364_v60 = vrot.slane %v5803_v46, 6  ;;  %v368_v52 = vrot.slane %v5804_v47, 6  ;;  %v4047_v46 = vsel %vm3890_vm5, %v2897_v29, %v360_v25 }
  0x50   : > { %688 = vst [vmem:[#allocation1 + $0x1] ss:$2 sm:$0xff] %v3986_v31 }
  0x51   : > { %689 = vst [vmem:[#allocation1 + $0x10] ss:$2 sm:$0xff] %v3994_v21  ;;  %v642_v37 = vld.sshfl [vmem:[#allocation1 + $0x20] sm:$0xff pattern:$0x75316420]  ;;  %3273 = vrot.lane.b32.xlu2 %v3272_v62, %s3662_s19  ;;  %v4052_v47 = vsel %vm3890_vm5, %v2898_v22, %v364_v60 }
  0x52   : > { %690 = vst [vmem:[#allocation1 + $0x11] ss:$2 sm:$0xff] %v4001_v9 }
  0x53   : > { %676 = vst [vmem:[#allocation1 + $0x20] ss:$2 sm:$0xff] %v4006_v27 }
  0x54   : > { %v643_v55 = vld.sshfl [vmem:[#allocation1 + $0x30] sm:$0xff pattern:$0x75316420]  ;;  %678 = vst [vmem:[#allocation1 + $0x21] ss:$2 sm:$0xff] %v4011_v13 }
  0x55   : > { %v3267_v38 = vpack.i.bf16 %v643_v55, %v642_v37  ;;  %680 = vst [vmem:[#allocation1 + $0x30] ss:$2 sm:$0xff] %v4016_v10  ;;  %v2900_v37 = vrot.slane %v3824_v51, 10  ;;  %v5805_v55 = vrot.slane %v3824_v51, 4 }
  0x56   : > { %682 = vst [vmem:[#allocation1 + $0x31] ss:$2 sm:$0xff] %v4021_v15 }
  0x57   : > { %3268 = vrot.lane.b32.xlu1 %v3267_v38, %s3661_s18  ;;  %v695_v62 = vld.sshfl [vmem:[#allocation1] sm:$0xff pattern:$0x75316420]  ;;  %v372_v8 = vrot.slane %v5805_v55, 6  ;;  %5806 = vst [vmem:[#allocation27_spill] sm:$0xff] %v4047_v46 }
  0x58   : > { %723 = vst [vmem:[#allocation1] ss:$2 sm:$0xff] %v3704_v1  ;;  %v4057_v1 = vsel %vm3890_vm5, %v2899_v12, %v368_v52  ;;  %v4071_v12 = vld [vmem:[%s3698_s17 + $0x80] sm:$0x3f] }
  0x59   : > { %v696_v38 = vld.sshfl [vmem:[#allocation1 + $0x10] sm:$0xff pattern:$0x75316420]  ;;  %725 = vst [vmem:[#allocation1 + $0x1] ss:$2 sm:$0xff] %v3707_v2  ;;  %v4062_v29 = vsel %vm3890_vm5, %v2900_v37, %v372_v8  ;;  %v2901_v8 = vrot.slane %v4043_v49, 9 }
  0x5a   : > { %5807 = vst [vmem:[#allocation28_spill] sm:$0xff] %v4052_v47  ;;  %v3282_v56 = vpack.i.bf16 %v696_v38, %v695_v62  ;;  %v4080_v37 = vld [vmem:[%s3698_s17 + $0x50] sm:$0x3f]  ;;  %v380_v11 = vrot.slane %v4071_v12, 4 }
  0x5b   : > { %727 = vst [vmem:[#allocation1 + $0x10] ss:$2 sm:$0xff] %v3710_v3  ;;  %v685_v55 = vld.sshfl [vmem:[#allocation1 + $0x20] sm:$0xff pattern:$0x75316420] }
  0x5c   : > { %729 = vst [vmem:[#allocation1 + $0x11] ss:$2 sm:$0xff] %v4043_v49  ;;  %3283 = vrot.lane.b32.xlu0 %v3282_v56, %s3662_s19  ;;  %v378_v56 = vrot.slane %v4043_v49, 4  ;;  %v392_v16 = vrot.slane %v380_v11, 5 }
  0x5d   : > { %691 = vst [vmem:[#allocation1 + $0x20] ss:$2 sm:$0xff] %v4047_v46  ;;  %v686_v25 = vld.sshfl [vmem:[#allocation1 + $0x30] sm:$0xff pattern:$0x75316420] }
  0x5e   : > { %692 = vst [vmem:[#allocation1 + $0x21] ss:$2 sm:$0xff] %v4052_v47  ;;  %v3277_v22 = vpack.i.bf16 %v686_v25, %v685_v55  ;;  %v384_v55 = vrot.slane %v378_v56, 5 }
  0x5f   : > { %693 = vst [vmem:[#allocation1 + $0x30] ss:$2 sm:$0xff] %v4057_v1 }
  0x60   : > { %694 = vst [vmem:[#allocation1 + $0x31] ss:$2 sm:$0xff] %v4062_v29  ;;  %v738_v60 = vld.sshfl [vmem:[#allocation1] sm:$0xff pattern:$0x75316420]  ;;  %3278 = vrot.lane.b32.xlu2 %v3277_v22, %s3662_s19  ;;  %v4090_v57 = vsel %vm3751_vm2, %v2901_v8, %v384_v55  ;;  %v2903_v8 = vrot.slane %v4071_v12, 9 }
  0x61   : > { %5808 = vst [vmem:[#allocation29_spill] sm:$0xff] %v4071_v12 }
  0x62   : > { %742 = vst [vmem:[#allocation1] ss:$2 sm:$0xff] %v3720_v5  ;;  %v4112_v48 = vsel %vm3751_vm2, %v2903_v8, %v392_v16  ;;  %v2905_v16 = vrot.slane %v4043_v49, 10 }
  0x63   : > { %v739_v52 = vld.sshfl [vmem:[#allocation1 + $0x10] sm:$0xff pattern:$0x75316420]  ;;  %743 = vst [vmem:[#allocation1 + $0x1] ss:$2 sm:$0xff] %v3723_v6 }
  0x64   : > { %744 = vst [vmem:[#allocation1 + $0x10] ss:$2 sm:$0xff] %v3726_v7 }
  0x65   : > { %v697_v62 = vld.sshfl [vmem:[#allocation1 + $0x20] sm:$0xff pattern:$0x75316420]  ;;  %745 = vst [vmem:[#allocation1 + $0x11] ss:$2 sm:$0xff] %v4071_v12 }
  0x66   : > { %731 = vst [vmem:[#allocation1 + $0x20] ss:$2 sm:$0xff] %v3748_v19 }
  0x67   : > { %5809 = vst [vmem:[#allocation30_spill] sm:$0xff] %v4080_v37  ;;  %v698_v38 = vld.sshfl [vmem:[#allocation1 + $0x30] sm:$0xff pattern:$0x75316420] }
  0x68   : > { %733 = vst [vmem:[#allocation1 + $0x21] ss:$2 sm:$0xff] %v3760_v23  ;;  %v3287_v25 = vpack.i.bf16 %v698_v38, %v697_v62 }
  0x69   : > { %735 = vst [vmem:[#allocation1 + $0x30] ss:$2 sm:$0xff] %v3766_v26 }
  0x6a   : > { %737 = vst [vmem:[#allocation1 + $0x31] ss:$2 sm:$0xff] %v4080_v37  ;;  %3288 = vrot.lane.b32.xlu1 %v3287_v25, %s3662_s19  ;;  %v750_v22 = vld.sshfl [vmem:[#allocation1] sm:$0xff pattern:$0x75316420] }
  0x6b   : > { %778 = vst [vmem:[#allocation1] ss:$2 sm:$0xff] %v3780_v32  ;;  %v4098_v25 = vld [vmem:[%s3698_s17 + $0xb0] sm:$0x3f]  ;;  %v379_v32 = vrot.slane %v4080_v37, 4 }
  0x6c   : > { %v751_v24 = vld.sshfl [vmem:[#allocation1 + $0x10] sm:$0xff pattern:$0x75316420]  ;;  %780 = vst [vmem:[#allocation1 + $0x1] ss:$2 sm:$0xff] %v3788_v35 }
  0x6d   : > { %782 = vst [vmem:[#allocation1 + $0x10] ss:$2 sm:$0xff] %v3798_v40  ;;  %v3302_v62 = vpack.i.bf16 %v751_v24, %v750_v22  ;;  %v2902_v22 = vrot.slane %v4080_v37, 9  ;;  %v388_v44 = vrot.slane %v379_v32, 5 }
  0x6e   : > { %784 = vst [vmem:[#allocation1 + $0x11] ss:$2 sm:$0xff] %v4090_v57 }
  0x6f   : > { %v740_v38 = vld.sshfl [vmem:[#allocation1 + $0x20] sm:$0xff pattern:$0x75316420]  ;;  %5810 = vst [vmem:[#allocation31_spill] sm:$0xff] %v4098_v25 }
  0x70   : > { %746 = vst [vmem:[#allocation1 + $0x20] ss:$2 sm:$0xff] %v3804_v42 }
  0x71   : > { %v741_v55 = vld.sshfl [vmem:[#allocation1 + $0x30] sm:$0xff pattern:$0x75316420]  ;;  %747 = vst [vmem:[#allocation1 + $0x21] ss:$2 sm:$0xff] %v3813_v45 }
  0x72   : > { %v3297_v39 = vpack.i.bf16 %v741_v55, %v740_v38  ;;  %748 = vst [vmem:[#allocation1 + $0x30] ss:$2 sm:$0xff] %v3824_v51  ;;  %3303 = vrot.lane.b32.xlu1 %v3302_v62, %s3663_s20  ;;  %v3292_v55 = vpack.i.bf16 %v739_v52, %v738_v60  ;;  %v2904_v52 = vrot.slane %v4098_v25, 9 }
  0x73   : > { %749 = vst [vmem:[#allocation1 + $0x31] ss:$2 sm:$0xff] %v4098_v25  ;;  %v4107_v24 = vld.sshfl [vmem:[#allocation1] sm:$0xff pattern:$0x75316420] }
  0x74   : > { %3298 = vrot.lane.b32.xlu0 %v3297_v39, %s3663_s20  ;;  %5811 = vst [vmem:[#allocation32_spill] sm:$0xff] %v4107_v24  ;;  %v381_v39 = vrot.slane %v4098_v25, 4  ;;  %v4123_v24 = vsel %vm3751_vm2, %v2902_v22, %v388_v44  ;;  %3293 = vrot.lane.b32.xlu2 %v3292_v55, %s3663_s20 }
  0x75   : > { %5812 = vst [vmem:[#allocation33_spill] sm:$0xff] %v4112_v48  ;;  %v4115_v38 = vld.sshfl [vmem:[#allocation1 + $0x10] sm:$0xff pattern:$0x75316420] }
  0x76   : > { %797 = vst [vmem:[#allocation1] ss:$2 sm:$0xff] %v3834_v54  ;;  %v396_v44 = vrot.slane %v381_v39, 5 }
  0x77   : > { %5813 = vst [vmem:[#allocation34_spill] sm:$0xff] %v4115_v38  ;;  %v400_v38 = vrot.slane %v378_v56, 6 }
  0x78   : > { %798 = vst [vmem:[#allocation1 + $0x1] ss:$2 sm:$0xff] %v3849_v61  ;;  %v752_v62 = vld.sshfl [vmem:[#allocation1 + $0x20] sm:$0xff pattern:$0x75316420] }
  0x79   : > { %799 = vst [vmem:[#allocation1 + $0x10] ss:$2 sm:$0xff] %v3857_v18  ;;  %v4136_v22 = vsel %vm3890_vm5, %v2905_v16, %v400_v38  ;;  %v2907_v38 = vrot.slane %v4071_v12, 10  ;;  %v408_v16 = vrot.slane %v380_v11, 6 }
  0x7a   : > { %800 = vst [vmem:[#allocation1 + $0x11] ss:$2 sm:$0xff] %v4112_v48  ;;  %v753_v8 = vld.sshfl [vmem:[#allocation1 + $0x30] sm:$0xff pattern:$0x75316420] }
  0x7b   : > { %786 = vst [vmem:[#allocation1 + $0x20] ss:$2 sm:$0xff] %v3874_v34  ;;  %v3307_v56 = vpack.i.bf16 %v753_v8, %v752_v62  ;;  %v2906_v8 = vrot.slane %v4080_v37, 10 }
  0x7c   : > { %788 = vst [vmem:[#allocation1 + $0x21] ss:$2 sm:$0xff] %v3885_v50 }
  0x7d   : > { %790 = vst [vmem:[#allocation1 + $0x30] ss:$2 sm:$0xff] %v3899_v0  ;;  %3308 = vrot.lane.b32.xlu2 %v3307_v56, %s3663_s20 }
  0x7e   : > { %792 = vst [vmem:[#allocation1 + $0x31] ss:$2 sm:$0xff] %v4123_v24 }
  0x7f   : > { %v4131_v60 = vld.sshfl [vmem:[#allocation1] sm:$0xff pattern:$0x75316420] }
  0x80   : > { %5814 = vst [vmem:[#allocation35_spill] sm:$0xff] %v4131_v60  ;;  %v4148_v60 = vsel %vm3751_vm2, %v2904_v52, %v396_v44  ;;  %v404_v52 = vrot.slane %v379_v32, 6  ;;  %v4162_v44 = vsel %vm3890_vm5, %v2907_v38, %v408_v16 }
  0x81   : > { %817 = vst [vmem:[#allocation1] ss:$2 sm:$0xff] %v3922_v30  ;;  %v4139_v46 = vld.sshfl [vmem:[#allocation1 + $0x10] sm:$0xff pattern:$0x75316420] }
  0x82   : > { %5815 = vst [vmem:[#allocation36_spill] sm:$0xff] %v4139_v46  ;;  %v4171_v32 = vsel %vm3890_vm5, %v2906_v8, %v404_v52  ;;  %v2908_v8 = vrot.slane %v4098_v25, 10  ;;  %v412_v52 = vrot.slane %v381_v39, 6  ;;  %v4200_v39 = vld [vmem:[%s3698_s17 + $0x88] sm:$0x3f] }
  0x83   : > { %819 = vst [vmem:[#allocation1 + $0x1] ss:$2 sm:$0xff] %v3929_v63  ;;  %v4143_v55 = vld.sshfl [vmem:[#allocation1 + $0x20] sm:$0xff pattern:$0x75316420] }
  0x84   : > { %821 = vst [vmem:[#allocation1 + $0x10] ss:$2 sm:$0xff] %v3936_v43 }
  0x85   : > { %5816 = vst [vmem:[#allocation37_spill] sm:$0xff] %v4143_v55  ;;  %v4153_v30 = vld.sshfl [vmem:[#allocation1 + $0x30] sm:$0xff pattern:$0x75316420] }
  0x86   : > { %823 = vst [vmem:[#allocation1 + $0x11] ss:$2 sm:$0xff] %v4136_v22 }
  0x87   : > { %5817 = vst [vmem:[#allocation38_spill] sm:$0xff] %v4148_v60 }
  0x88   : > { %801 = vst [vmem:[#allocation1 + $0x20] ss:$2 sm:$0xff] %v3944_v17 }
  0x89   : > { %5818 = vst [vmem:[#allocation39_spill] sm:$0xff] %v4153_v30 }
  0x8a   : > { %802 = vst [vmem:[#allocation1 + $0x21] ss:$2 sm:$0xff] %v3954_v36  ;;  %v832_v62 = vld.sshfl [vmem:[#allocation1] sm:$0xff pattern:$0x75316420] }
  0x8b   : > { %803 = vst [vmem:[#allocation1 + $0x30] ss:$2 sm:$0xff] %v3962_v28 }
  0x8c   : > { %804 = vst [vmem:[#allocation1 + $0x31] ss:$2 sm:$0xff] %v4148_v60 }
  0x8d   : > { %836 = vst [vmem:[#allocation1] ss:$2 sm:$0xff] %v3986_v31  ;;  %v833_v56 = vld.sshfl [vmem:[#allocation1 + $0x10] sm:$0xff pattern:$0x75316420] }
  0x8e   : > { %5819 = vst [vmem:[#allocation40_spill] sm:$0xff] %v4162_v44  ;;  %v3312_v46 = vpack.i.bf16 %v833_v56, %v832_v62  ;;  %v4181_v62 = vld [vmem:[%s3698_s17 + $0x28] sm:$0x3f] }
  0x8f   : > { %837 = vst [vmem:[#allocation1 + $0x1] ss:$2 sm:$0xff] %v3994_v21 }
  0x90   : > { %838 = vst [vmem:[#allocation1 + $0x10] ss:$2 sm:$0xff] %v4001_v9  ;;  %3313 = vrot.lane.b32.xlu0 %v3312_v46, %s3661_s18 }
  0x91   : > { %v4166_v11 = vld.sshfl [vmem:[#allocation1 + $0x20] sm:$0xff pattern:$0x75316420]  ;;  %839 = vst [vmem:[#allocation1 + $0x11] ss:$2 sm:$0xff] %v4162_v44 }
  0x92   : > { %5820 = vst [vmem:[#allocation41_spill] sm:$0xff] %v4166_v11 }
  0x93   : > { %825 = vst [vmem:[#allocation1 + $0x20] ss:$2 sm:$0xff] %v4011_v13  ;;  %v4175_v38 = vld.sshfl [vmem:[#allocation1 + $0x30] sm:$0xff pattern:$0x75316420] }
  0x94   : > { %5821 = vst [vmem:[#allocation42_spill] sm:$0xff] %v4175_v38  ;;  %v4191_v38 = vsel %vm3890_vm5, %v2908_v8, %v412_v52  ;;  %v418_v8 = vrot.slane %v4181_v62, 4 }
  0x95   : > { %827 = vst [vmem:[#allocation1 + $0x21] ss:$2 sm:$0xff] %v4016_v10 }
  0x96   : > { %829 = vst [vmem:[#allocation1 + $0x30] ss:$2 sm:$0xff] %v4021_v15  ;;  %v844_v16 = vld.sshfl [vmem:[#allocation1] sm:$0xff pattern:$0x75316420] }
  0x97   : > { %831 = vst [vmem:[#allocation1 + $0x31] ss:$2 sm:$0xff] %v4171_v32 }
  0x98   : > { %872 = vst [vmem:[#allocation1] ss:$2 sm:$0xff] %v3707_v2  ;;  %v845_v56 = vld.sshfl [vmem:[#allocation1 + $0x10] sm:$0xff pattern:$0x75316420] }
  0x99   : > { %874 = vst [vmem:[#allocation1 + $0x1] ss:$2 sm:$0xff] %v3710_v3  ;;  %v3322_v11 = vpack.i.bf16 %v845_v56, %v844_v16  ;;  %v4208_v56 = vld [vmem:[%s3698_s17 + $0x58] sm:$0x3f] }
  0x9a   : > { %876 = vst [vmem:[#allocation1 + $0x10] ss:$2 sm:$0xff] %v4043_v49 }
  0x9b   : > { %878 = vst [vmem:[#allocation1 + $0x11] ss:$2 sm:$0xff] %v4181_v62  ;;  %3323 = vrot.lane.b32.xlu2 %v3322_v11, %s3661_s18 }
  0x9c   : > { %v834_v46 = vld.sshfl [vmem:[#allocation1 + $0x20] sm:$0xff pattern:$0x75316420]  ;;  %5822 = vst [vmem:[#allocation43_spill] sm:$0xff] %v4191_v38 }
  0x9d   : > { %840 = vst [vmem:[#allocation1 + $0x20] ss:$2 sm:$0xff] %v4052_v47 }
  0x9e   : > { %v835_v2 = vld.sshfl [vmem:[#allocation1 + $0x30] sm:$0xff pattern:$0x75316420]  ;;  %841 = vst [vmem:[#allocation1 + $0x21] ss:$2 sm:$0xff] %v4057_v1 }
  0x9f   : > { %v3317_v3 = vpack.i.bf16 %v835_v2, %v834_v46  ;;  %842 = vst [vmem:[#allocation1 + $0x30] ss:$2 sm:$0xff] %v4062_v29  ;;  %v2909_v46 = vrot.slane %v4181_v62, 9 }
  0xa0   : > { %843 = vst [vmem:[#allocation1 + $0x31] ss:$2 sm:$0xff] %v4191_v38  ;;  %v887_v49 = vld.sshfl [vmem:[#allocation1] sm:$0xff pattern:$0x75316420] }
  0xa1   : > { %3318 = vrot.lane.b32.xlu1 %v3317_v3, %s3661_s18  ;;  %891 = vst [vmem:[#allocation1] ss:$2 sm:$0xff] %v3723_v6  ;;  %v424_v3 = vrot.slane %v418_v8, 5 }
  0xa2   : > { %5823 = vst [vmem:[#allocation44_spill] sm:$0xff] %v4200_v39  ;;  %v888_v16 = vld.sshfl [vmem:[#allocation1 + $0x10] sm:$0xff pattern:$0x75316420] }
  0xa3   : > { %892 = vst [vmem:[#allocation1 + $0x1] ss:$2 sm:$0xff] %v3726_v7  ;;  %v3332_v11 = vpack.i.bf16 %v888_v16, %v887_v49  ;;  %v425_v16 = vsel %vm3751_vm2, %v2909_v46, %v424_v3  ;;  %v2910_v3 = vrot.slane %v4208_v56, 9 }
  0xa4   : > { %893 = vst [vmem:[#allocation1 + $0x10] ss:$2 sm:$0xff] %v4071_v12  ;;  %v420_v12 = vrot.slane %v4200_v39, 4 }
  0xa5   : > { %v846_v52 = vld.sshfl [vmem:[#allocation1 + $0x20] sm:$0xff pattern:$0x75316420]  ;;  %894 = vst [vmem:[#allocation1 + $0x11] ss:$2 sm:$0xff] %v4200_v39 }
  0xa6   : > { %880 = vst [vmem:[#allocation1 + $0x20] ss:$2 sm:$0xff] %v3760_v23  ;;  %v432_v46 = vrot.slane %v420_v12, 5 }
  0xa7   : > { %v847_v2 = vld.sshfl [vmem:[#allocation1 + $0x30] sm:$0xff pattern:$0x75316420]  ;;  %882 = vst [vmem:[#allocation1 + $0x21] ss:$2 sm:$0xff] %v3766_v26 }
  0xa8   : > { %v3327_v55 = vpack.i.bf16 %v847_v2, %v846_v52  ;;  %884 = vst [vmem:[#allocation1 + $0x30] ss:$2 sm:$0xff] %v4080_v37 }
  0xa9   : > { %3333 = vrot.lane.b32.xlu1 %v3332_v11, %s3662_s19  ;;  %886 = vst [vmem:[#allocation1 + $0x31] ss:$2 sm:$0xff] %v4208_v56  ;;  %v4223_v11 = vld [vmem:[%s3698_s17 + $0xb8] sm:$0x3f] }
  0xaa   : > { %3328 = vrot.lane.b32.xlu0 %v3327_v55, %s3661_s18  ;;  %v899_v49 = vld.sshfl [vmem:[#allocation1] sm:$0xff pattern:$0x75316420]  ;;  %5824 = vst [vmem:[#allocation45_spill] sm:$0xff] %v4223_v11  ;;  %v2911_v55 = vrot.slane %v4200_v39, 9 }
  0xab   : > { %927 = vst [vmem:[#allocation1] ss:$2 sm:$0xff] %v3788_v35  ;;  %v419_v35 = vrot.slane %v4208_v56, 4 }
  0xac   : > { %v900_v30 = vld.sshfl [vmem:[#allocation1 + $0x10] sm:$0xff pattern:$0x75316420]  ;;  %929 = vst [vmem:[#allocation1 + $0x1] ss:$2 sm:$0xff] %v3798_v40 }
  0xad   : > { %931 = vst [vmem:[#allocation1 + $0x10] ss:$2 sm:$0xff] %v4090_v57  ;;  %v3342_v2 = vpack.i.bf16 %v900_v30, %v899_v49  ;;  %v4235_v30 = vsel %vm3751_vm2, %v2911_v55, %v432_v46  ;;  %v428_v49 = vrot.slane %v419_v35, 5  ;;  %v2913_v55 = vrot.slane %v4181_v62, 10 }
  0xae   : > { %v889_v52 = vld.sshfl [vmem:[#allocation1 + $0x20] sm:$0xff pattern:$0x75316420]  ;;  %933 = vst [vmem:[#allocation1 + $0x11] ss:$2 sm:$0xff] %v425_v16 }
  0xaf   : > { %895 = vst [vmem:[#allocation1 + $0x20] ss:$2 sm:$0xff] %v3813_v45 }
  0xb0   : > { %v890_v37 = vld.sshfl [vmem:[#allocation1 + $0x30] sm:$0xff pattern:$0x75316420]  ;;  %896 = vst [vmem:[#allocation1 + $0x21] ss:$2 sm:$0xff] %v3824_v51 }
  0xb1   : > { %897 = vst [vmem:[#allocation1 + $0x30] ss:$2 sm:$0xff] %v4098_v25  ;;  %v3337_v40 = vpack.i.bf16 %v890_v37, %v889_v52  ;;  %v4245_v52 = vsel %vm3751_vm2, %v2910_v3, %v428_v49  ;;  %v2912_v3 = vrot.slane %v4223_v11, 9 }
  0xb2   : > { %898 = vst [vmem:[#allocation1 + $0x31] ss:$2 sm:$0xff] %v4223_v11  ;;  %3343 = vrot.lane.b32.xlu0 %v3342_v2, %s3662_s19  ;;  %v421_v2 = vrot.slane %v4223_v11, 4 }
  0xb3   : > { %v942_v57 = vld.sshfl [vmem:[#allocation1] sm:$0xff pattern:$0x75316420]  ;;  %3338 = vrot.lane.b32.xlu2 %v3337_v40, %s3662_s19  ;;  %5825 = vst [vmem:[#allocation46_spill] sm:$0xff] %v4235_v30  ;;  %v440_v40 = vrot.slane %v418_v8, 6 }
  0xb4   : > { %946 = vst [vmem:[#allocation1] ss:$2 sm:$0xff] %v3849_v61  ;;  %v436_v49 = vrot.slane %v421_v2, 5 }
  0xb5   : > { %v943_v16 = vld.sshfl [vmem:[#allocation1 + $0x10] sm:$0xff pattern:$0x75316420]  ;;  %947 = vst [vmem:[#allocation1 + $0x1] ss:$2 sm:$0xff] %v3857_v18  ;;  %v441_v62 = vsel %vm3890_vm5, %v2913_v55, %v440_v40  ;;  %v448_v55 = vrot.slane %v420_v12, 6 }
  0xb6   : > { %948 = vst [vmem:[#allocation1 + $0x10] ss:$2 sm:$0xff] %v4112_v48 }
  0xb7   : > { %v901_v37 = vld.sshfl [vmem:[#allocation1 + $0x20] sm:$0xff pattern:$0x75316420]  ;;  %949 = vst [vmem:[#allocation1 + $0x11] ss:$2 sm:$0xff] %v4235_v30 }
  0xb8   : > { %935 = vst [vmem:[#allocation1 + $0x20] ss:$2 sm:$0xff] %v3885_v50 }
  0xb9   : > { %v902_v46 = vld.sshfl [vmem:[#allocation1 + $0x30] sm:$0xff pattern:$0x75316420]  ;;  %937 = vst [vmem:[#allocation1 + $0x21] ss:$2 sm:$0xff] %v3899_v0 }
  0xba   : > { %v3347_v25 = vpack.i.bf16 %v902_v46, %v901_v37  ;;  %939 = vst [vmem:[#allocation1 + $0x30] ss:$2 sm:$0xff] %v4123_v24 }
  0xbb   : > { %941 = vst [vmem:[#allocation1 + $0x31] ss:$2 sm:$0xff] %v4245_v52 }
  0xbc   : > { %3348 = vrot.lane.b32.xlu1 %v3347_v25, %s3662_s19  ;;  %v954_v30 = vld.sshfl [vmem:[#allocation1] sm:$0xff pattern:$0x75316420]  ;;  %v4262_v25 = vsel %vm3751_vm2, %v2912_v3, %v436_v49  ;;  %v3352_v49 = vpack.i.bf16 %v943_v16, %v942_v57  ;;  %v2916_v57 = vrot.slane %v4223_v11, 10  ;;  %v452_v16 = vrot.slane %v421_v2, 6 }
  0xbd   : > { %982 = vst [vmem:[#allocation1] ss:$2 sm:$0xff] %v3929_v63  ;;  %v2915_v63 = vrot.slane %v4200_v39, 10 }
  0xbe   : > { %v955_v48 = vld.sshfl [vmem:[#allocation1 + $0x10] sm:$0xff pattern:$0x75316420]  ;;  %984 = vst [vmem:[#allocation1 + $0x1] ss:$2 sm:$0xff] %v3936_v43  ;;  %3353 = vrot.lane.b32.xlu2 %v3352_v49, %s3663_s20 }
  0xbf   : > { %986 = vst [vmem:[#allocation1 + $0x10] ss:$2 sm:$0xff] %v4136_v22  ;;  %v3362_v8 = vpack.i.bf16 %v955_v48, %v954_v30  ;;  %v2914_v48 = vrot.slane %v4208_v56, 10  ;;  %v444_v22 = vrot.slane %v419_v35, 6  ;;  %v4275_v30 = vsel %vm3890_vm5, %v2915_v63, %v448_v55 }
  0xc0   : > { %v944_v37 = vld.sshfl [vmem:[#allocation1 + $0x20] sm:$0xff pattern:$0x75316420]  ;;  %988 = vst [vmem:[#allocation1 + $0x11] ss:$2 sm:$0xff] %v441_v62  ;;  %v4305_v55 = vsel %vm3890_vm5, %v2916_v57, %v452_v16 }
  0xc1   : > { %950 = vst [vmem:[#allocation1 + $0x20] ss:$2 sm:$0xff] %v3954_v36  ;;  %v4285_v62 = vsel %vm3890_vm5, %v2914_v48, %v444_v22  ;;  %v4334_v16 = vld [vmem:[%s3698_s17 + $0xc8] sm:$0x3f] }
  0xc2   : > { %5826 = vst [vmem:[#allocation47_spill] sm:$0xff] %v4262_v25  ;;  %v945_v46 = vld.sshfl [vmem:[#allocation1 + $0x30] sm:$0xff pattern:$0x75316420] }
  0xc3   : > { %951 = vst [vmem:[#allocation1 + $0x21] ss:$2 sm:$0xff] %v3962_v28  ;;  %v3357_v40 = vpack.i.bf16 %v945_v46, %v944_v37 }
  0xc4   : > { %952 = vst [vmem:[#allocation1 + $0x30] ss:$2 sm:$0xff] %v4148_v60  ;;  %3363 = vrot.lane.b32.xlu1 %v3362_v8, %s3663_s20 }
  0xc5   : > { %953 = vst [vmem:[#allocation1 + $0x31] ss:$2 sm:$0xff] %v4262_v25  ;;  %3358 = vrot.lane.b32.xlu0 %v3357_v40, %s3663_s20  ;;  %v4270_v43 = vld.sshfl [vmem:[#allocation1] sm:$0xff pattern:$0x75316420] }
  0xc6   : > { %5827 = vst [vmem:[#allocation48_spill] sm:$0xff] %v4270_v43 }
  0xc7   : > { %5828 = vst [vmem:[#allocation49_spill] sm:$0xff] %v4275_v30  ;;  %v4278_v12 = vld.sshfl [vmem:[#allocation1 + $0x10] sm:$0xff pattern:$0x75316420] }
  0xc8   : > { %1001 = vst [vmem:[#allocation1] ss:$2 sm:$0xff] %v3994_v21 }
  0xc9   : > { %5829 = vst [vmem:[#allocation50_spill] sm:$0xff] %v4278_v12 }
  0xca   : > { %1002 = vst [vmem:[#allocation1 + $0x1] ss:$2 sm:$0xff] %v4001_v9  ;;  %v956_v3 = vld.sshfl [vmem:[#allocation1 + $0x20] sm:$0xff pattern:$0x75316420] }
  0xcb   : > { %1003 = vst [vmem:[#allocation1 + $0x10] ss:$2 sm:$0xff] %v4162_v44 }
  0xcc   : > { %1004 = vst [vmem:[#allocation1 + $0x11] ss:$2 sm:$0xff] %v4275_v30  ;;  %v957_v35 = vld.sshfl [vmem:[#allocation1 + $0x30] sm:$0xff pattern:$0x75316420] }
  0xcd   : > { %5830 = vst [vmem:[#allocation51_spill] sm:$0xff] %v4285_v62  ;;  %v3367_v63 = vpack.i.bf16 %v957_v35, %v956_v3  ;;  %v4329_v35 = vld [vmem:[%s3698_s17 + $0xc0] sm:$0x3f] }
  0xce   : > { %990 = vst [vmem:[#allocation1 + $0x20] ss:$2 sm:$0xff] %v4016_v10 }
  0xcf   : > { %992 = vst [vmem:[#allocation1 + $0x21] ss:$2 sm:$0xff] %v4021_v15  ;;  %3368 = vrot.lane.b32.xlu2 %v3367_v63, %s3663_s20  ;;  %v4337_v63 = vld [vmem:[%s3698_s17 + $0xd0] sm:$0x3f] }
  0xd0   : > { %994 = vst [vmem:[#allocation1 + $0x30] ss:$2 sm:$0xff] %v4171_v32 }
  0xd1   : > { %996 = vst [vmem:[#allocation1 + $0x31] ss:$2 sm:$0xff] %v4285_v62  ;;  %v4292_v8 = vld.sshfl [vmem:[#allocation1] sm:$0xff pattern:$0x75316420] }
  0xd2   : > { %5831 = vst [vmem:[#allocation52_spill] sm:$0xff] %v4292_v8 }
  0xd3   : > { %1021 = vst [vmem:[#allocation1] ss:$2 sm:$0xff] %v3737_v14  ;;  %v4296_v37 = vld.sshfl [vmem:[#allocation1 + $0x10] sm:$0xff pattern:$0x75316420] }
  0xd4   : > { %5832 = vst [vmem:[#allocation53_spill] sm:$0xff] %v4296_v37 }
  0xd5   : > { %1023 = vst [vmem:[#allocation1 + $0x1] ss:$2 sm:$0xff] %v3748_v19 }
  0xd6   : > { %1025 = vst [vmem:[#allocation1 + $0x10] ss:$2 sm:$0xff] %v3760_v23  ;;  %v4300_v46 = vld.sshfl [vmem:[#allocation1 + $0x20] sm:$0xff pattern:$0x75316420] }
  0xd7   : > { %5833 = vst [vmem:[#allocation54_spill] sm:$0xff] %v4300_v46  ;;  %v2917_v46 = vrot.slane %v4329_v35, 9 }
  0xd8   : > { %1027 = vst [vmem:[#allocation1 + $0x11] ss:$2 sm:$0xff] %v3766_v26  ;;  %v4309_v14 = vld.sshfl [vmem:[#allocation1 + $0x30] sm:$0xff pattern:$0x75316420] }
  0xd9   : > { %5834 = vst [vmem:[#allocation55_spill] sm:$0xff] %v4305_v55 }
  0xda   : > { %1005 = vst [vmem:[#allocation1 + $0x20] ss:$2 sm:$0xff] %v4057_v1 }
  0xdb   : > { %5835 = vst [vmem:[#allocation56_spill] sm:$0xff] %v4309_v14 }
  0xdc   : > { %1006 = vst [vmem:[#allocation1 + $0x21] ss:$2 sm:$0xff] %v4062_v29  ;;  %v1036_v2 = vld.sshfl [vmem:[#allocation1] sm:$0xff pattern:$0x75316420] }
  0xdd   : > { %1007 = vst [vmem:[#allocation1 + $0x30] ss:$2 sm:$0xff] %v4191_v38 }
  0xde   : > { %1008 = vst [vmem:[#allocation1 + $0x31] ss:$2 sm:$0xff] %v4305_v55 }
  0xdf   : > { %1040 = vst [vmem:[#allocation1] ss:$2 sm:$0xff] %v3801_v41  ;;  %v1037_v40 = vld.sshfl [vmem:[#allocation1 + $0x10] sm:$0xff pattern:$0x75316420] }
  0xe0   : > { %1041 = vst [vmem:[#allocation1 + $0x1] ss:$2 sm:$0xff] %v3804_v42  ;;  %v3372_v48 = vpack.i.bf16 %v1037_v40, %v1036_v2 }
  0xe1   : > { %1042 = vst [vmem:[#allocation1 + $0x10] ss:$2 sm:$0xff] %v3813_v45 }
  0xe2   : > { %1043 = vst [vmem:[#allocation1 + $0x11] ss:$2 sm:$0xff] %v3824_v51  ;;  %3373 = vrot.lane.b32.xlu0 %v3372_v48, %s3661_s18  ;;  %v4341_v48 = vld [vmem:[%s3698_s17 + $0xd8] sm:$0x3f] }
  0xe3   : > { %v4317_v22 = vld.sshfl [vmem:[#allocation1 + $0x20] sm:$0xff pattern:$0x75316420]  ;;  %5838 = vst [vmem:[#allocation59_spill] sm:$0xff] %v4334_v16  ;;  %v461_v37 = vrot.slane %v4341_v48, 4 }
  0xe4   : > { %5836 = vst [vmem:[#allocation57_spill] sm:$0xff] %v4317_v22 }
  0xe5   : > { %1029 = vst [vmem:[#allocation1 + $0x20] ss:$2 sm:$0xff] %v3717_v4  ;;  %v4322_v3 = vld.sshfl [vmem:[#allocation1 + $0x30] sm:$0xff pattern:$0x75316420]  ;;  %v492_v62 = vrot.slane %v461_v37, 6 }
  0xe6   : > { %5837 = vst [vmem:[#allocation58_spill] sm:$0xff] %v4322_v3 }
  0xe7   : > { %1031 = vst [vmem:[#allocation1 + $0x21] ss:$2 sm:$0xff] %v3720_v5  ;;  %v1048_v49 = vld.sshfl [vmem:[#allocation1] sm:$0xff pattern:$0x75316420] }
  0xe8   : > { %1033 = vst [vmem:[#allocation1 + $0x30] ss:$2 sm:$0xff] %v3723_v6 }
  0xe9   : > { %1035 = vst [vmem:[#allocation1 + $0x31] ss:$2 sm:$0xff] %v3726_v7  ;;  %v1049_v57 = vld.sshfl [vmem:[#allocation1 + $0x10] sm:$0xff pattern:$0x75316420] }
  0xea   : > { %1076 = vst [vmem:[#allocation1] ss:$2 sm:$0xff] %v3870_v33  ;;  %v3382_v40 = vpack.i.bf16 %v1049_v57, %v1048_v49  ;;  %v458_v57 = vrot.slane %v4329_v35, 4 }
  0xeb   : > { %1078 = vst [vmem:[#allocation1 + $0x1] ss:$2 sm:$0xff] %v3874_v34 }
  0xec   : > { %1080 = vst [vmem:[#allocation1 + $0x10] ss:$2 sm:$0xff] %v3885_v50  ;;  %3383 = vrot.lane.b32.xlu2 %v3382_v40, %s3661_s18  ;;  %v459_v40 = vrot.slane %v4334_v16, 4 }
  0xed   : > { %5839 = vst [vmem:[#allocation60_spill] sm:$0xff] %v4337_v63 }
  0xee   : > { %v1038_v2 = vld.sshfl [vmem:[#allocation1 + $0x20] sm:$0xff pattern:$0x75316420]  ;;  %1082 = vst [vmem:[#allocation1 + $0x11] ss:$2 sm:$0xff] %v3899_v0  ;;  %v468_v14 = vrot.slane %v459_v40, 5 }
  0xef   : > { %5840 = vst [vmem:[#allocation61_spill] sm:$0xff] %v4341_v48 }
  0xf0   : > { %1044 = vst [vmem:[#allocation1 + $0x20] ss:$2 sm:$0xff] %v4329_v35  ;;  %v1039_v33 = vld.sshfl [vmem:[#allocation1 + $0x30] sm:$0xff pattern:$0x75316420] }
  0xf1   : > { %1045 = vst [vmem:[#allocation1 + $0x21] ss:$2 sm:$0xff] %v4334_v16  ;;  %v3377_v22 = vpack.i.bf16 %v1039_v33, %v1038_v2 }
  0xf2   : > { %1046 = vst [vmem:[#allocation1 + $0x30] ss:$2 sm:$0xff] %v4337_v63  ;;  %v1091_v3 = vld.sshfl [vmem:[#allocation1] sm:$0xff pattern:$0x75316420] }
  0xf3   : > { %1047 = vst [vmem:[#allocation1 + $0x31] ss:$2 sm:$0xff] %v4341_v48  ;;  %3378 = vrot.lane.b32.xlu1 %v3377_v22, %s3661_s18  ;;  %v460_v22 = vrot.slane %v4337_v63, 4 }
  0xf4   : > { %1095 = vst [vmem:[#allocation1] ss:$2 sm:$0xff] %v3940_v59 }
  0xf5   : > { %v1092_v49 = vld.sshfl [vmem:[#allocation1 + $0x10] sm:$0xff pattern:$0x75316420]  ;;  %1096 = vst [vmem:[#allocation1 + $0x1] ss:$2 sm:$0xff] %v3944_v17  ;;  %v472_v43 = vrot.slane %v460_v22, 5 }
  0xf6   : > { %1097 = vst [vmem:[#allocation1 + $0x10] ss:$2 sm:$0xff] %v3954_v36  ;;  %v3392_v8 = vpack.i.bf16 %v1092_v49, %v1091_v3  ;;  %v464_v3 = vrot.slane %v458_v57, 5  ;;  %v2918_v49 = vrot.slane %v4334_v16, 9 }
  0xf7   : > { %1098 = vst [vmem:[#allocation1 + $0x11] ss:$2 sm:$0xff] %v3962_v28 }
  0xf8   : > { %v1050_v2 = vld.sshfl [vmem:[#allocation1 + $0x20] sm:$0xff pattern:$0x75316420]  ;;  %v4370_v41 = vsel %vm3751_vm2, %v2917_v46, %v464_v3  ;;  %v4375_v4 = vsel %vm3751_vm2, %v2918_v49, %v468_v14 }
  0xf9   : > { %1084 = vst [vmem:[#allocation1 + $0x20] ss:$2 sm:$0xff] %v3830_v53  ;;  %v2919_v53 = vrot.slane %v4337_v63, 9  ;;  %v5846_v49 = vld [vmem:[#allocation25_spill] sm:$0xff] }
  0xfa   : > { %v1051_v33 = vld.sshfl [vmem:[#allocation1 + $0x30] sm:$0xff pattern:$0x75316420]  ;;  %1086 = vst [vmem:[#allocation1 + $0x21] ss:$2 sm:$0xff] %v3834_v54 }
  0xfb   : > { %v3387_v59 = vpack.i.bf16 %v1051_v33, %v1050_v2  ;;  %1088 = vst [vmem:[#allocation1 + $0x30] ss:$2 sm:$0xff] %v3849_v61  ;;  %3393 = vrot.lane.b32.xlu1 %v3392_v8, %s3662_s19  ;;  %v2920_v2 = vrot.slane %v4341_v48, 9  ;;  %v476_v33 = vrot.slane %v461_v37, 5  ;;  %v5848_v37 = vld [vmem:[#allocation30_spill] sm:$0xff] }
  0xfc   : > { %1090 = vst [vmem:[#allocation1 + $0x31] ss:$2 sm:$0xff] %v3857_v18  ;;  %v1103_v12 = vld.sshfl [vmem:[#allocation1] sm:$0xff pattern:$0x75316420] }
  0xfd   : > { %3388 = vrot.lane.b32.xlu0 %v3387_v59, %s3661_s18  ;;  %1131 = vst [vmem:[#allocation1] ss:$2 sm:$0xff] %v4006_v27  ;;  %v4380_v59 = vsel %vm3751_vm2, %v2919_v53, %v472_v43  ;;  %v4385_v27 = vsel %vm3751_vm2, %v2920_v2, %v476_v33  ;;  %v5845_v43 = vld [vmem:[#allocation27_spill] sm:$0xff]  ;;  %v480_v2 = vrot.slane %v458_v57, 6 }
  0xfe   : > { %5841 = vst [vmem:[#allocation62_spill] sm:$0xff] %v4370_v41  ;;  %v1104_v8 = vld.sshfl [vmem:[#allocation1 + $0x10] sm:$0xff pattern:$0x75316420] }
  0xff   : > { %1133 = vst [vmem:[#allocation1 + $0x1] ss:$2 sm:$0xff] %v4011_v13  ;;  %v3402_v55 = vpack.i.bf16 %v1104_v8, %v1103_v12  ;;  %v2922_v8 = vrot.slane %v4334_v16, 10 }
 0x100   : > { %5842 = vst [vmem:[#allocation63_spill] sm:$0xff] %v4375_v4 }
 0x101   : > { %1135 = vst [vmem:[#allocation1 + $0x10] ss:$2 sm:$0xff] %v4016_v10  ;;  %v1093_v30 = vld.sshfl [vmem:[#allocation1 + $0x20] sm:$0xff pattern:$0x75316420] }
 0x102   : > { %5843 = vst [vmem:[#allocation64_spill] sm:$0xff] %v4380_v59 }
 0x103   : > { %1137 = vst [vmem:[#allocation1 + $0x11] ss:$2 sm:$0xff] %v4021_v15  ;;  %v1094_v46 = vld.sshfl [vmem:[#allocation1 + $0x30] sm:$0xff pattern:$0x75316420] }
 0x104   : > { %5844 = vst [vmem:[#allocation65_spill] sm:$0xff] %v4385_v27  ;;  %v3397_v14 = vpack.i.bf16 %v1094_v46, %v1093_v30  ;;  %v484_v46 = vrot.slane %v459_v40, 6 }
 0x105   : > { %1099 = vst [vmem:[#allocation1 + $0x20] ss:$2 sm:$0xff] %v4370_v41  ;;  %3403 = vrot.lane.b32.xlu0 %v3402_v55, %s3662_s19  ;;  %v2921_v55 = vrot.slane %v4329_v35, 10  ;;  %v2924_v41 = vrot.slane %v4341_v48, 10 }
 0x106   : > { %1100 = vst [vmem:[#allocation1 + $0x21] ss:$2 sm:$0xff] %v4375_v4  ;;  %v1146_v53 = vld.sshfl [vmem:[#allocation1] sm:$0xff pattern:$0x75316420]  ;;  %3398 = vrot.lane.b32.xlu2 %v3397_v14, %s3662_s19  ;;  %v2923_v14 = vrot.slane %v4337_v63, 10  ;;  %v4414_v40 = vsel %vm3890_vm5, %v2922_v8, %v484_v46 }
 0x107   : > { %1101 = vst [vmem:[#allocation1 + $0x30] ss:$2 sm:$0xff] %v4380_v59  ;;  %v4409_v57 = vsel %vm3890_vm5, %v2921_v55, %v480_v2  ;;  %v4424_v55 = vsel %vm3890_vm5, %v2924_v41, %v492_v62  ;;  %v5851_v62 = vld [vmem:[#allocation31_spill] sm:$0xff]  ;;  %v5852_v46 = vld [vmem:[#allocation29_spill] sm:$0xff] }
 0x108   : > { %1102 = vst [vmem:[#allocation1 + $0x31] ss:$2 sm:$0xff] %v4385_v27 }
 0x109   : > { %1150 = vst [vmem:[#allocation1] ss:$2 sm:$0xff] %v5845_v43  ;;  %v488_v43 = vrot.slane %v460_v22, 6 }
 0x10a   : > { %v1147_v12 = vld.sshfl [vmem:[#allocation1 + $0x10] sm:$0xff pattern:$0x75316420]  ;;  %1151 = vst [vmem:[#allocation1 + $0x1] ss:$2 sm:$0xff] %v4052_v47 }
 0x10b   : > { %1152 = vst [vmem:[#allocation1 + $0x10] ss:$2 sm:$0xff] %v4057_v1  ;;  %v4419_v22 = vsel %vm3890_vm5, %v2923_v14, %v488_v43 }
 0x10c   : > { %1153 = vst [vmem:[#allocation1 + $0x11] ss:$2 sm:$0xff] %v4062_v29 }
 0x10d   : > { %v1105_v3 = vld.sshfl [vmem:[#allocation1 + $0x20] sm:$0xff pattern:$0x75316420]  ;;  %5847 = vst [vmem:[#allocation66_spill] sm:$0xff] %v4409_v57 }
 0x10e   : > { %1139 = vst [vmem:[#allocation1 + $0x20] ss:$2 sm:$0xff] %v5846_v49 }
 0x10f   : > { %v1106_v30 = vld.sshfl [vmem:[#allocation1 + $0x30] sm:$0xff pattern:$0x75316420]  ;;  %1141 = vst [vmem:[#allocation1 + $0x21] ss:$2 sm:$0xff] %v3986_v31 }
 0x110   : > { %v3407_v33 = vpack.i.bf16 %v1106_v30, %v1105_v3  ;;  %1143 = vst [vmem:[#allocation1 + $0x30] ss:$2 sm:$0xff] %v3994_v21 }
 0x111   : > { %1145 = vst [vmem:[#allocation1 + $0x31] ss:$2 sm:$0xff] %v4001_v9  ;;  %v1158_v49 = vld.sshfl [vmem:[#allocation1] sm:$0xff pattern:$0x75316420] }
 0x112   : > { %3408 = vrot.lane.b32.xlu1 %v3407_v33, %s3662_s19  ;;  %1186 = vst [vmem:[#allocation1] ss:$2 sm:$0xff] %v3748_v19 }
 0x113   : > { %v1159_v3 = vld.sshfl [vmem:[#allocation1 + $0x10] sm:$0xff pattern:$0x75316420]  ;;  %1188 = vst [vmem:[#allocation1 + $0x1] ss:$2 sm:$0xff] %v3760_v23 }
 0x114   : > { %1190 = vst [vmem:[#allocation1 + $0x10] ss:$2 sm:$0xff] %v3766_v26  ;;  %v3422_v19 = vpack.i.bf16 %v1159_v3, %v1158_v49  ;;  %v3412_v3 = vpack.i.bf16 %v1147_v12, %v1146_v53 }
 0x115   : > { %1192 = vst [vmem:[#allocation1 + $0x11] ss:$2 sm:$0xff] %v5848_v37 }
 0x116   : > { %v1148_v30 = vld.sshfl [vmem:[#allocation1 + $0x20] sm:$0xff pattern:$0x75316420]  ;;  %3413 = vrot.lane.b32.xlu2 %v3412_v3, %s3663_s20 }
 0x117   : > { %1154 = vst [vmem:[#allocation1 + $0x20] ss:$2 sm:$0xff] %v4409_v57 }
 0x118   : > { %v1149_v2 = vld.sshfl [vmem:[#allocation1 + $0x30] sm:$0xff pattern:$0x75316420]  ;;  %1155 = vst [vmem:[#allocation1 + $0x21] ss:$2 sm:$0xff] %v4414_v40 }
 0x119   : > { %1156 = vst [vmem:[#allocation1 + $0x30] ss:$2 sm:$0xff] %v4419_v22  ;;  %v3417_v33 = vpack.i.bf16 %v1149_v2, %v1148_v30  ;;  %v4460_v2 = vld [vmem:[%s3698_s17 + $0xe0] sm:$0x3f] }
 0x11a   : > { %3423 = vrot.lane.b32.xlu1 %v3422_v19, %s3663_s20  ;;  %1157 = vst [vmem:[#allocation1 + $0x31] ss:$2 sm:$0xff] %v4424_v55  ;;  %v4431_v43 = vld.sshfl [vmem:[#allocation1] sm:$0xff pattern:$0x75316420] }
 0x11b   : > { %5849 = vst [vmem:[#allocation30_spill] sm:$0xff] %v4431_v43  ;;  %3418 = vrot.lane.b32.xlu0 %v3417_v33, %s3663_s20 }
 0x11c   : > { %1205 = vst [vmem:[#allocation1] ss:$2 sm:$0xff] %v3804_v42  ;;  %v4435_v41 = vld.sshfl [vmem:[#allocation1 + $0x10] sm:$0xff pattern:$0x75316420] }
 0x11d   : > { %5850 = vst [vmem:[#allocation67_spill] sm:$0xff] %v4435_v41 }
 0x11e   : > { %1206 = vst [vmem:[#allocation1 + $0x1] ss:$2 sm:$0xff] %v3813_v45 }
 0x11f   : > { %1207 = vst [vmem:[#allocation1 + $0x10] ss:$2 sm:$0xff] %v3824_v51  ;;  %v4440_v49 = vld.sshfl [vmem:[#allocation1 + $0x20] sm:$0xff pattern:$0x75316420] }
 0x120   : > { %1208 = vst [vmem:[#allocation1 + $0x11] ss:$2 sm:$0xff] %v5851_v62 }
 0x121   : > { %1194 = vst [vmem:[#allocation1 + $0x20] ss:$2 sm:$0xff] %v3720_v5  ;;  %v4443_v8 = vld.sshfl [vmem:[#allocation1 + $0x30] sm:$0xff pattern:$0x75316420] }
 0x122   : > { %1196 = vst [vmem:[#allocation1 + $0x21] ss:$2 sm:$0xff] %v3723_v6 }
 0x123   : > { %1198 = vst [vmem:[#allocation1 + $0x30] ss:$2 sm:$0xff] %v3726_v7 }
 0x124   : > { %1200 = vst [vmem:[#allocation1 + $0x31] ss:$2 sm:$0xff] %v5852_v46 }
 0x125   : > { %v4448_v14 = vld.sshfl [vmem:[#allocation1] sm:$0xff pattern:$0x75316420]  ;;  %5856 = vst [vmem:[#allocation71_spill] sm:$0xff] %v4460_v2 }
 0x126   : > { %5853 = vst [vmem:[#allocation68_spill] sm:$0xff] %v4448_v14  ;;  %v495_v14 = vrot.slane %v4460_v2, 4 }
 0x127   : > { %1225 = vst [vmem:[#allocation1] ss:$2 sm:$0xff] %v3874_v34  ;;  %v4451_v19 = vld.sshfl [vmem:[#allocation1 + $0x10] sm:$0xff pattern:$0x75316420] }
 0x128   : > { %5854 = vst [vmem:[#allocation69_spill] sm:$0xff] %v4451_v19 }
 0x129   : > { %1227 = vst [vmem:[#allocation1 + $0x1] ss:$2 sm:$0xff] %v3885_v50  ;;  %v4456_v30 = vld.sshfl [vmem:[#allocation1 + $0x20] sm:$0xff pattern:$0x75316420] }
 0x12a   : > { %1229 = vst [vmem:[#allocation1 + $0x10] ss:$2 sm:$0xff] %v3899_v0 }
 0x12b   : > { %5855 = vst [vmem:[#allocation70_spill] sm:$0xff] %v4456_v30  ;;  %v4463_v33 = vld.sshfl [vmem:[#allocation1 + $0x30] sm:$0xff pattern:$0x75316420]  ;;  %v5860_v30 = vld [vmem:[#allocation33_spill] sm:$0xff] }
 0x12c   : > { %1231 = vst [vmem:[#allocation1 + $0x11] ss:$2 sm:$0xff] %v4123_v24 }
 0x12d   : > { %1209 = vst [vmem:[#allocation1 + $0x20] ss:$2 sm:$0xff] %v4334_v16 }
 0x12e   : > { %5857 = vst [vmem:[#allocation72_spill] sm:$0xff] %v4463_v33 }
 0x12f   : > { %1210 = vst [vmem:[#allocation1 + $0x21] ss:$2 sm:$0xff] %v4337_v63 }
 0x130   : > { %1211 = vst [vmem:[#allocation1 + $0x30] ss:$2 sm:$0xff] %v4341_v48  ;;  %v1240_v34 = vld.sshfl [vmem:[#allocation1] sm:$0xff pattern:$0x75316420] }
 0x131   : > { %1212 = vst [vmem:[#allocation1 + $0x31] ss:$2 sm:$0xff] %v4460_v2 }
 0x132   : > { %1244 = vst [vmem:[#allocation1] ss:$2 sm:$0xff] %v3944_v17  ;;  %v4502_v17 = vpop.permute.xlu1 %3263 }
 0x133   : > { %v1241_v53 = vld.sshfl [vmem:[#allocation1 + $0x10] sm:$0xff pattern:$0x75316420]  ;;  %1245 = vst [vmem:[#allocation1 + $0x1] ss:$2 sm:$0xff] %v3954_v36 }
 0x134   : > { %1246 = vst [vmem:[#allocation1 + $0x10] ss:$2 sm:$0xff] %v3962_v28  ;;  %v3432_v12 = vpack.i.bf16 %v1241_v53, %v1240_v34  ;;  %v4484_v34 = vpop.permute.xlu2 %3273  ;;  %v2925_v53 = vrot.slane %v4460_v2, 9 }
 0x135   : > { %1247 = vst [vmem:[#allocation1 + $0x11] ss:$2 sm:$0xff] %v4148_v60 }
 0x136   : > { %v4471_v3 = vld.sshfl [vmem:[#allocation1 + $0x20] sm:$0xff pattern:$0x75316420]  ;;  %3433 = vrot.lane.b32.xlu0 %v3432_v12, %s3661_s18  ;;  %5861 = vst [vmem:[#allocation75_spill] sm:$0xff] %v4484_v34  ;;  %v3427_v34 = vpack.i.bf16 %v4443_v8, %v4440_v49 }
 0x137   : > { %5858 = vst [vmem:[#allocation73_spill] sm:$0xff] %v4471_v3  ;;  %v498_v3 = vrot.slane %v495_v14, 5 }
 0x138   : > { %1233 = vst [vmem:[#allocation1 + $0x20] ss:$2 sm:$0xff] %v3834_v54  ;;  %v4476_v19 = vld.sshfl [vmem:[#allocation1 + $0x30] sm:$0xff pattern:$0x75316420]  ;;  %v4504_v54 = vpop.permute.xlu0 %3253  ;;  %3428 = vrot.lane.b32.xlu2 %v3427_v34, %s3663_s20 }
 0x139   : > { %5859 = vst [vmem:[#allocation74_spill] sm:$0xff] %v4476_v19  ;;  %v4496_v43 = vsel %vm3751_vm2, %v2925_v53, %v498_v3 }
 0x13a   : > { %1235 = vst [vmem:[#allocation1 + $0x21] ss:$2 sm:$0xff] %v3849_v61  ;;  %v4482_v33 = vld.sshfl [vmem:[#allocation1] sm:$0xff pattern:$0x75316420] }
 0x13b   : > { %1237 = vst [vmem:[#allocation1 + $0x30] ss:$2 sm:$0xff] %v3857_v18 }
 0x13c   : > { %1239 = vst [vmem:[#allocation1 + $0x31] ss:$2 sm:$0xff] %v5860_v30  ;;  %v4488_v12 = vld.sshfl [vmem:[#allocation1 + $0x10] sm:$0xff pattern:$0x75316420] }
 0x13d   : > { %1280 = vst [vmem:[#allocation1] ss:$2 sm:$0xff] %v4011_v13 }
 0x13e   : > { %1282 = vst [vmem:[#allocation1 + $0x1] ss:$2 sm:$0xff] %v4016_v10 }
 0x13f   : > { %1284 = vst [vmem:[#allocation1 + $0x10] ss:$2 sm:$0xff] %v4021_v15 }
 0x140   : > { %1286 = vst [vmem:[#allocation1 + $0x11] ss:$2 sm:$0xff] %v4171_v32 }
 0x141   : > { %v1242_v19 = vld.sshfl [vmem:[#allocation1 + $0x20] sm:$0xff pattern:$0x75316420]  ;;  %5862 = vst [vmem:[#allocation76_spill] sm:$0xff] %v4496_v43 }
 0x142   : > { %1248 = vst [vmem:[#allocation1 + $0x20] ss:$2 sm:$0xff] %v4375_v4  ;;  %v4507_v4 = vpop.permute.xlu2 %3278 }
 0x143   : > { %v1243_v41 = vld.sshfl [vmem:[#allocation1 + $0x30] sm:$0xff pattern:$0x75316420]  ;;  %1249 = vst [vmem:[#allocation1 + $0x21] ss:$2 sm:$0xff] %v4380_v59 }
 0x144   : > { %1250 = vst [vmem:[#allocation1 + $0x30] ss:$2 sm:$0xff] %v4385_v27  ;;  %v3437_v13 = vpack.i.bf16 %v1243_v41, %v1242_v19 }
 0x145   : > { %1251 = vst [vmem:[#allocation1 + $0x31] ss:$2 sm:$0xff] %v4496_v43  ;;  %v1295_v57 = vld.sshfl [vmem:[#allocation1] sm:$0xff pattern:$0x75316420] }
 0x146   : > { %3438 = vrot.lane.b32.xlu1 %v3437_v13, %s3661_s18  ;;  %1299 = vst [vmem:[#allocation1] ss:$2 sm:$0xff] %v4052_v47  ;;  %v4521_v47 = vpop.permute.xlu0 %3258 }
 0x147   : > { %5863 = vst [vmem:[#allocation77_spill] sm:$0xff] %v4507_v4  ;;  %v1296_v3 = vld.sshfl [vmem:[#allocation1 + $0x10] sm:$0xff pattern:$0x75316420]  ;;  %v2926_v4 = vrot.slane %v4460_v2, 10 }
 0x148   : > { %1300 = vst [vmem:[#allocation1 + $0x1] ss:$2 sm:$0xff] %v4057_v1  ;;  %v3447_v53 = vpack.i.bf16 %v1296_v3, %v1295_v57  ;;  %v502_v57 = vrot.slane %v495_v14, 6  ;;  %v4519_v3 = vpop.permute.xlu1 %3268 }
 0x149   : > { %1301 = vst [vmem:[#allocation1 + $0x10] ss:$2 sm:$0xff] %v4062_v29 }
 0x14a   : > { %v1254_v41 = vld.sshfl [vmem:[#allocation1 + $0x20] sm:$0xff pattern:$0x75316420]  ;;  %1302 = vst [vmem:[#allocation1 + $0x11] ss:$2 sm:$0xff] %v4191_v38  ;;  %3448 = vrot.lane.b32.xlu0 %v3447_v53, %s3662_s19  ;;  %v4524_v53 = vpop.permute.xlu2 %3293  ;;  %v4535_v14 = vsel %vm3890_vm5, %v2926_v4, %v502_v57 }
 0x14b   : > { %1288 = vst [vmem:[#allocation1 + $0x20] ss:$2 sm:$0xff] %v3986_v31 }
 0x14c   : > { %1290 = vst [vmem:[#allocation1 + $0x21] ss:$2 sm:$0xff] %v3994_v21  ;;  %v1255_v19 = vld.sshfl [vmem:[#allocation1 + $0x30] sm:$0xff pattern:$0x75316420] }
 0x14d   : > { %1292 = vst [vmem:[#allocation1 + $0x30] ss:$2 sm:$0xff] %v4001_v9 }
 0x14e   : > { %1294 = vst [vmem:[#allocation1 + $0x31] ss:$2 sm:$0xff] %v4162_v44 }
 0x14f   : > { %v1307_v13 = vld.sshfl [vmem:[#allocation1] sm:$0xff pattern:$0x75316420]  ;;  %5864 = vst [vmem:[#allocation78_spill] sm:$0xff] %v4521_v47 }
 0x150   : > { %1335 = vst [vmem:[#allocation1] ss:$2 sm:$0xff] %v3760_v23  ;;  %v4544_v4 = vpop.permute.xlu1 %3288 }
 0x151   : > { %v1308_v31 = vld.sshfl [vmem:[#allocation1 + $0x10] sm:$0xff pattern:$0x75316420]  ;;  %1337 = vst [vmem:[#allocation1 + $0x1] ss:$2 sm:$0xff] %v3766_v26 }
 0x152   : > { %v3457_v42 = vpack.i.bf16 %v1308_v31, %v1307_v13  ;;  %1339 = vst [vmem:[#allocation1 + $0x10] ss:$2 sm:$0xff] %v5848_v37  ;;  %v4546_v37 = vpop.permute.xlu0 %3283  ;;  %v4549_v8 = vpop.permute.xlu2 %3308 }
 0x153   : > { %1341 = vst [vmem:[#allocation1 + $0x11] ss:$2 sm:$0xff] %v4208_v56  ;;  %v4530_v23 = vld.sshfl [vmem:[#allocation1 + $0x20] sm:$0xff pattern:$0x75316420]  ;;  %v3442_v56 = vpack.i.bf16 %v1255_v19, %v1254_v41 }
 0x154   : > { %3458 = vrot.lane.b32.xlu1 %v3457_v42, %s3662_s19  ;;  %5865 = vst [vmem:[#allocation79_spill] sm:$0xff] %v4535_v14 }
 0x155   : > { %1303 = vst [vmem:[#allocation1 + $0x20] ss:$2 sm:$0xff] %v4414_v40  ;;  %v1298_v26 = vld.sshfl [vmem:[#allocation1 + $0x30] sm:$0xff pattern:$0x75316420]  ;;  %3443 = vrot.lane.b32.xlu2 %v3442_v56, %s3661_s18 }
 0x156   : > { %1304 = vst [vmem:[#allocation1 + $0x21] ss:$2 sm:$0xff] %v4419_v22 }
 0x157   : > { %1305 = vst [vmem:[#allocation1 + $0x30] ss:$2 sm:$0xff] %v4424_v55 }
 0x158   : > { %1306 = vst [vmem:[#allocation1 + $0x31] ss:$2 sm:$0xff] %v4535_v14  ;;  %v1350_v31 = vld.sshfl [vmem:[#allocation1] sm:$0xff pattern:$0x75316420] }
 0x159   : > { %1354 = vst [vmem:[#allocation1] ss:$2 sm:$0xff] %v3813_v45 }
 0x15a   : > { %v1351_v42 = vld.sshfl [vmem:[#allocation1 + $0x10] sm:$0xff pattern:$0x75316420]  ;;  %1355 = vst [vmem:[#allocation1 + $0x1] ss:$2 sm:$0xff] %v3824_v51  ;;  %v4563_v56 = vpop.permute.xlu0 %3298 }
 0x15b   : > { %v3467_v49 = vpack.i.bf16 %v1351_v42, %v1350_v31  ;;  %1356 = vst [vmem:[#allocation1 + $0x10] ss:$2 sm:$0xff] %v5851_v62  ;;  %v4561_v31 = vpop.permute.xlu1 %3303 }
 0x15c   : > { %1357 = vst [vmem:[#allocation1 + $0x11] ss:$2 sm:$0xff] %v4223_v11  ;;  %v3452_v11 = vpack.i.bf16 %v1298_v26, %v4530_v23 }
 0x15d   : > { %v1309_v34 = vld.sshfl [vmem:[#allocation1 + $0x20] sm:$0xff pattern:$0x75316420]  ;;  %3468 = vrot.lane.b32.xlu1 %v3467_v49, %s3663_s20  ;;  %5866 = vst [vmem:[#allocation80_spill] sm:$0xff] %v4563_v56  ;;  %v4566_v49 = vpop.permute.xlu2 %3323  ;;  %v3183_v56 = vld [vmem:[%s5670_s1 + $0x98] sm:$0xff] }
 0x15e   : > { %1343 = vst [vmem:[#allocation1 + $0x20] ss:$2 sm:$0xff] %v3723_v6  ;;  %3453 = vrot.lane.b32.xlu2 %v3452_v11, %s3662_s19 }
 0x15f   : > { %v1310_v41 = vld.sshfl [vmem:[#allocation1 + $0x30] sm:$0xff pattern:$0x75316420]  ;;  %1345 = vst [vmem:[#allocation1 + $0x21] ss:$2 sm:$0xff] %v3726_v7 }
 0x160   : > { %v3462_v19 = vpack.i.bf16 %v1310_v41, %v1309_v34  ;;  %1347 = vst [vmem:[#allocation1 + $0x30] ss:$2 sm:$0xff] %v5852_v46  ;;  %v4570_v34 = vld [vmem:[%s3698_s17 + $0xe8] sm:$0x3f]  ;;  %v3285_v46 = vunpack.i.l.bf16 %v4546_v37 }
 0x161   : > { %1349 = vst [vmem:[#allocation1 + $0x31] ss:$2 sm:$0xff] %v4200_v39  ;;  %v1362_v13 = vld.sshfl [vmem:[#allocation1] sm:$0xff pattern:$0x75316420]  ;;  %v505_v39 = vrot.slane %v4570_v34, 4 }
 0x162   : > { %3463 = vrot.lane.b32.xlu0 %v3462_v19, %s3662_s19  ;;  %1489 = vst [vmem:[#allocation1] ss:$2 sm:$0xff] %v3885_v50  ;;  %v2927_v26 = vrot.slane %v4570_v34, 9 }
 0x163   : > { %v1363_v57 = vld.sshfl [vmem:[#allocation1 + $0x10] sm:$0xff pattern:$0x75316420]  ;;  %1491 = vst [vmem:[#allocation1 + $0x1] ss:$2 sm:$0xff] %v3899_v0 }
 0x164   : > { %1493 = vst [vmem:[#allocation1 + $0x10] ss:$2 sm:$0xff] %v4123_v24  ;;  %v3477_v19 = vpack.i.bf16 %v1363_v57, %v1362_v13  ;;  %v5870_v13 = vld [vmem:[#allocation46_spill] sm:$0xff]  ;;  %v508_v57 = vrot.slane %v505_v39, 5 }
 0x165   : > { %1495 = vst [vmem:[#allocation1 + $0x11] ss:$2 sm:$0xff] %v4245_v52  ;;  %v4584_v52 = vpop.permute.xlu1 %3318 }
 0x166   : > { %v1352_v42 = vld.sshfl [vmem:[#allocation1 + $0x20] sm:$0xff pattern:$0x75316420]  ;;  %5867 = vst [vmem:[#allocation81_spill] sm:$0xff] %v4570_v34 }
 0x167   : > { %1358 = vst [vmem:[#allocation1 + $0x20] ss:$2 sm:$0xff] %v4337_v63 }
 0x168   : > { %v1353_v41 = vld.sshfl [vmem:[#allocation1 + $0x30] sm:$0xff pattern:$0x75316420]  ;;  %1359 = vst [vmem:[#allocation1 + $0x21] ss:$2 sm:$0xff] %v4341_v48 }
 0x169   : > { %1360 = vst [vmem:[#allocation1 + $0x30] ss:$2 sm:$0xff] %v4460_v2  ;;  %v3472_v50 = vpack.i.bf16 %v1353_v41, %v1352_v42  ;;  %v4587_v42 = vpop.permute.xlu0 %3313 }
 0x16a   : > { %1361 = vst [vmem:[#allocation1 + $0x31] ss:$2 sm:$0xff] %v4570_v34  ;;  %v4577_v0 = vld.sshfl [vmem:[#allocation1] sm:$0xff pattern:$0x75316420]  ;;  %v3316_v62 = vunpack.i.h.bf16 %v4587_v42 }
 0x16b   : > { %3473 = vrot.lane.b32.xlu0 %v3472_v50, %s3663_s20  ;;  %5868 = vst [vmem:[#allocation82_spill] sm:$0xff] %v4577_v0  ;;  %v4590_v50 = vpop.permute.xlu2 %3338 }
 0x16c   : > { %1508 = vst [vmem:[#allocation1] ss:$2 sm:$0xff] %v3954_v36  ;;  %v4581_v24 = vld.sshfl [vmem:[#allocation1 + $0x10] sm:$0xff pattern:$0x75316420] }
 0x16d   : > { %1509 = vst [vmem:[#allocation1 + $0x1] ss:$2 sm:$0xff] %v3962_v28  ;;  %v4606_v11 = vpop.permute.xlu1 %3333 }
 0x16e   : > { %5869 = vst [vmem:[#allocation83_spill] sm:$0xff] %v4581_v24 }
 0x16f   : > { %1510 = vst [vmem:[#allocation1 + $0x10] ss:$2 sm:$0xff] %v4148_v60  ;;  %v1364_v41 = vld.sshfl [vmem:[#allocation1 + $0x20] sm:$0xff pattern:$0x75316420] }
 0x170   : > { %1511 = vst [vmem:[#allocation1 + $0x11] ss:$2 sm:$0xff] %v4262_v25 }
 0x171   : > { %1497 = vst [vmem:[#allocation1 + $0x20] ss:$2 sm:$0xff] %v3849_v61  ;;  %v1365_v0 = vld.sshfl [vmem:[#allocation1 + $0x30] sm:$0xff pattern:$0x75316420]  ;;  %v4608_v60 = vpop.permute.xlu0 %3328 }
 0x172   : > { %1499 = vst [vmem:[#allocation1 + $0x21] ss:$2 sm:$0xff] %v3857_v18  ;;  %v3482_v24 = vpack.i.bf16 %v1365_v0, %v1364_v41  ;;  %v3187_v0 = vld [vmem:[%s5670_s1 + $0xb8] sm:$0xff]  ;;  %v5875_v41 = vld [vmem:[#allocation51_spill] sm:$0xff] }
 0x173   : > { %1501 = vst [vmem:[#allocation1 + $0x30] ss:$2 sm:$0xff] %v5860_v30  ;;  %3478 = vrot.lane.b32.xlu0 %v3477_v19, %s3663_s20  ;;  %2644 = vmatpush.bf16.msra.mxu2 %v3187_v0  ;;  %v3171_v0 = vld [vmem:[%s5670_s1 + $0x38] sm:$0xff] }
 0x174   : > { %1503 = vst [vmem:[#allocation1 + $0x31] ss:$2 sm:$0xff] %v5870_v13  ;;  %v4599_v23 = vld.sshfl [vmem:[#allocation1] sm:$0xff pattern:$0x75316420]  ;;  %v4611_v13 = vpop.permute.xlu2 %3353  ;;  %3483 = vrot.lane.b32.xlu2 %v3482_v24, %s3663_s20  ;;  %3218 = vmatpush.bf16.msra.mxu3 %v3171_v0 }
 0x175   : > { %5871 = vst [vmem:[#allocation84_spill] sm:$0xff] %v4599_v23  ;;  %2586 = vmatpush.bf16.msra.mxu0 %v3171_v0 }
 0x176   : > { %1528 = vst [vmem:[#allocation1] ss:$2 sm:$0xff] %v4016_v10  ;;  %v4621_v10 = vsel %vm3751_vm2, %v2927_v26, %v508_v57  ;;  %v4632_v26 = vpop.permute.xlu1 %3348 }
 0x177   : > { %1530 = vst [vmem:[#allocation1 + $0x1] ss:$2 sm:$0xff] %v4021_v15  ;;  %v4604_v25 = vld.sshfl [vmem:[#allocation1 + $0x10] sm:$0xff pattern:$0x75316420] }
 0x178   : > { %5872 = vst [vmem:[#allocation85_spill] sm:$0xff] %v4604_v25 }
 0x179   : > { %5873 = vst [vmem:[#allocation86_spill] sm:$0xff] %v4608_v60  ;;  %v4613_v19 = vld.sshfl [vmem:[#allocation1 + $0x20] sm:$0xff pattern:$0x75316420]  ;;  %v4634_v57 = vpop.permute.xlu0 %3343 }
 0x17a   : > { %1532 = vst [vmem:[#allocation1 + $0x10] ss:$2 sm:$0xff] %v4171_v32 }
 0x17b   : > { %5874 = vst [vmem:[#allocation87_spill] sm:$0xff] %v4613_v19  ;;  %v4625_v15 = vld.sshfl [vmem:[#allocation1 + $0x30] sm:$0xff pattern:$0x75316420] }
 0x17c   : > { %1534 = vst [vmem:[#allocation1 + $0x11] ss:$2 sm:$0xff] %v5875_v41  ;;  %v4639_v23 = vpop.permute.xlu2 %3368  ;;  %v5881_v19 = vld [vmem:[#allocation55_spill] sm:$0xff] }
 0x17d   : > { %5876 = vst [vmem:[#allocation51_spill] sm:$0xff] %v4621_v10 }
 0x17e   : > { %1512 = vst [vmem:[#allocation1 + $0x20] ss:$2 sm:$0xff] %v4380_v59  ;;  %v1543_v32 = vld.sshfl [vmem:[#allocation1] sm:$0xff pattern:$0x75316420] }
 0x17f   : > { %5877 = vst [vmem:[#allocation88_spill] sm:$0xff] %v4625_v15  ;;  %v3487_v41 = vpack.i.bf16 %v1543_v32, %v4482_v33  ;;  %v3179_v33 = vld [vmem:[%s5670_s1 + $0x78] sm:$0xff]  ;;  %v3186_v32 = vld [vmem:[%s5670_s1 + $0xb0] sm:$0xff] }
 0x180   : > { %1513 = vst [vmem:[#allocation1 + $0x21] ss:$2 sm:$0xff] %v4385_v27  ;;  %2615 = vmatpush.bf16.msra.mxu1 %v3179_v33  ;;  %v3170_v15 = vld [vmem:[%s5670_s1 + $0x30] sm:$0xff]  ;;  %2645 = vmatpush.bf16.msra.mxu2 %v3186_v32  ;;  %v5883_v33 = vld [vmem:[#allocation49_spill] sm:$0xff] }
 0x181   : > { %1514 = vst [vmem:[#allocation1 + $0x30] ss:$2 sm:$0xff] %v4496_v43  ;;  %3488 = vrot.lane.b32.xlu2 %v3487_v41, %s3661_s18  ;;  %v3185_v41 = vld [vmem:[%s5670_s1 + $0xa8] sm:$0xff]  ;;  %3219 = vmatpush.bf16.msra.mxu3 %v3170_v15  ;;  %v4674_v43 = vpop.permute.xlu1 %3363  ;;  %v4676_v32 = vpop.permute.xlu0 %3358 }
 0x182   : > { %1515 = vst [vmem:[#allocation1 + $0x31] ss:$2 sm:$0xff] %v4621_v10  ;;  %v3178_v10 = vld [vmem:[%s5670_s1 + $0x70] sm:$0xff]  ;;  %2587 = vmatpush.bf16.msra.mxu0 %v3170_v15 }
 0x183   : > { %1547 = vst [vmem:[#allocation1] ss:$2 sm:$0xff] %v4057_v1  ;;  %v4637_v24 = vld.sshfl [vmem:[#allocation1 + $0x10] sm:$0xff pattern:$0x75316420] }
 0x184   : > { %5878 = vst [vmem:[#allocation89_spill] sm:$0xff] %v4632_v26  ;;  %2616 = vmatpush.bf16.msra.mxu1 %v3178_v10  ;;  %2646 = vmatpush.bf16.msra.mxu2 %v3185_v41  ;;  %v3169_v10 = vld [vmem:[%s5670_s1 + $0x28] sm:$0xff]  ;;  %v3168_v41 = vld [vmem:[%s5670_s1 + $0x20] sm:$0xff] }
 0x185   : > { %1548 = vst [vmem:[#allocation1 + $0x1] ss:$2 sm:$0xff] %v4062_v29  ;;  %3220 = vmatpush.bf16.msra.mxu3 %v3169_v10 }
 0x186   : > { %5879 = vst [vmem:[#allocation90_spill] sm:$0xff] %v4639_v23  ;;  %v512_v23 = vrot.slane %v505_v39, 6  ;;  %v3184_v39 = vld [vmem:[%s5670_s1 + $0xa0] sm:$0xff]  ;;  %2588 = vmatpush.bf16.msra.mxu0 %v3169_v10  ;;  %v3265_v10 = vunpack.i.l.bf16 %v4502_v17 }
 0x187   : > { %1549 = vst [vmem:[#allocation1 + $0x10] ss:$2 sm:$0xff] %v4191_v38  ;;  %v4651_v25 = vld.sshfl [vmem:[#allocation1 + $0x20] sm:$0xff pattern:$0x75316420] }
 0x188   : > { %5880 = vst [vmem:[#allocation91_spill] sm:$0xff] %v4651_v25  ;;  %2647 = vmatpush.bf16.msra.mxu2 %v3184_v39  ;;  %v3167_v39 = vld [vmem:[%s5670_s1 + $0x18] sm:$0xff] }
 0x189   : > { %1550 = vst [vmem:[#allocation1 + $0x11] ss:$2 sm:$0xff] %v5881_v19  ;;  %v4662_v38 = vld.sshfl [vmem:[#allocation1 + $0x30] sm:$0xff pattern:$0x75316420]  ;;  %v2928_v19 = vrot.slane %v4570_v34, 10  ;;  %3221 = vmatpush.bf16.msra.mxu3 %v3168_v41 }
 0x18a   : > { %1536 = vst [vmem:[#allocation1 + $0x20] ss:$2 sm:$0xff] %v3994_v21  ;;  %2589 = vmatpush.bf16.msra.mxu0 %v3168_v41  ;;  %v3315_v41 = vunpack.i.l.bf16 %v4587_v42 }
 0x18b   : > { %5882 = vst [vmem:[#allocation92_spill] sm:$0xff] %v4662_v38  ;;  %v5884_v38 = vld [vmem:[#allocation2_spill] sm:$0xff]  ;;  %v4701_v34 = vsel %vm3890_vm5, %v2928_v19, %v512_v23  ;;  %v4715_v19 = vpop.permute.xlu1 %3378 }
 0x18c   : > { %1538 = vst [vmem:[#allocation1 + $0x21] ss:$2 sm:$0xff] %v4001_v9  ;;  %v4670_v25 = vld.sshfl [vmem:[#allocation1] sm:$0xff pattern:$0x75316420]  ;;  %2648 = vmatpush.bf16.msra.mxu2 %v3183_v56  ;;  %v5886_v56 = vld [vmem:[#allocation75_spill] sm:$0xff] }
 0x18d   : > { %1540 = vst [vmem:[#allocation1 + $0x30] ss:$2 sm:$0xff] %v4162_v44  ;;  %v3176_v44 = vld [vmem:[%s5670_s1 + $0x60] sm:$0xff]  ;;  %3222 = vmatpush.bf16.msra.mxu3 %v3167_v39 }
 0x18e   : > { %1542 = vst [vmem:[#allocation1 + $0x31] ss:$2 sm:$0xff] %v5883_v33  ;;  %v4681_v33 = vpop.permute.xlu2 %3383  ;;  %2590 = vmatpush.bf16.msra.mxu0 %v3167_v39 }
 0x18f   : > { %1583 = vst [vmem:[#allocation1] ss:$2 sm:$0xff] %v5884_v38  ;;  %v3177_v38 = vld [vmem:[%s5670_s1 + $0x68] sm:$0xff] }
 0x190   : > { %v4678_v0 = vld.sshfl [vmem:[#allocation1 + $0x10] sm:$0xff pattern:$0x75316420]  ;;  %1585 = vst [vmem:[#allocation1 + $0x1] ss:$2 sm:$0xff] %v3720_v5  ;;  %2617 = vmatpush.bf16.msra.mxu1 %v3177_v38  ;;  %v3374_v38 = vpop.permute.xlu0 %3373  ;;  %v5899_v5 = vld [vmem:[#allocation16_spill] sm:$0xff] }
 0x191   : > { %1587 = vst [vmem:[#allocation1 + $0x10] ss:$2 sm:$0xff] %v3723_v6  ;;  %v3376_v42 = vunpack.i.h.bf16 %v3374_v38 }
 0x192   : > { %1589 = vst [vmem:[#allocation1 + $0x11] ss:$2 sm:$0xff] %v3726_v7  ;;  %v5890_v7 = vld [vmem:[#allocation7_spill] sm:$0xff] }
 0x193   : > { %v4693_v15 = vld.sshfl [vmem:[#allocation1 + $0x20] sm:$0xff pattern:$0x75316420]  ;;  %5885 = vst [vmem:[#allocation2_spill] sm:$0xff] %v4701_v34 }
 0x194   : > { %1551 = vst [vmem:[#allocation1 + $0x20] ss:$2 sm:$0xff] %v4419_v22  ;;  %2618 = vmatpush.bf16.msra.mxu1 %v3176_v44  ;;  %v3182_v44 = vld [vmem:[%s5670_s1 + $0x90] sm:$0xff] }
 0x195   : > { %v1546_v26 = vld.sshfl [vmem:[#allocation1 + $0x30] sm:$0xff pattern:$0x75316420]  ;;  %1552 = vst [vmem:[#allocation1 + $0x21] ss:$2 sm:$0xff] %v4424_v55  ;;  %2649 = vmatpush.bf16.msra.mxu2 %v3182_v44 }
 0x196   : > { %v3497_v60 = vpack.i.bf16 %v4488_v12, %v1546_v26  ;;  %1553 = vst [vmem:[#allocation1 + $0x30] ss:$2 sm:$0xff] %v4535_v14  ;;  %v3175_v12 = vld [vmem:[%s5670_s1 + $0x58] sm:$0xff]  ;;  %v3266_v26 = vunpack.i.h.bf16 %v4502_v17  ;;  %v3255_v14 = vunpack.i.l.bf16 %v4504_v54 }
 0x197   : > { %1554 = vst [vmem:[#allocation1 + $0x31] ss:$2 sm:$0xff] %v4701_v34  ;;  %v1598_v23 = vld.sshfl [vmem:[#allocation1] sm:$0xff pattern:$0x75316420]  ;;  %v3256_v34 = vunpack.i.h.bf16 %v4504_v54  ;;  %v3174_v54 = vld [vmem:[%s5670_s1 + $0x50] sm:$0xff] }
 0x198   : > { %3498 = vrot.lane.b32.xlu1 %v3497_v60, %s3661_s18  ;;  %1602 = vst [vmem:[#allocation1] ss:$2 sm:$0xff] %v4329_v35  ;;  %v4726_v60 = vpop.permute.xlu2 %3398  ;;  %v3166_v35 = vld [vmem:[%s5670_s1 + $0x10] sm:$0xff]  ;;  %2619 = vmatpush.bf16.msra.mxu1 %v3175_v12  ;;  %v3181_v12 = vld [vmem:[%s5670_s1 + $0x88] sm:$0xff]  ;;  %v4781_v39 = vpop.permute.xlu0 %3388 }
 0x199   : > { %v1599_v47 = vld.sshfl [vmem:[#allocation1 + $0x10] sm:$0xff pattern:$0x75316420]  ;;  %1603 = vst [vmem:[#allocation1 + $0x1] ss:$2 sm:$0xff] %v4334_v16  ;;  %v5889_v16 = vld [vmem:[#allocation9_spill] sm:$0xff]  ;;  %3223 = vmatpush.bf16.msra.mxu3 %v3166_v35  ;;  %2650 = vmatpush.bf16.msra.mxu2 %v3181_v12  ;;  %v3356_v12 = vunpack.i.h.bf16 %v4611_v13 }
 0x19a   : > { %1604 = vst [vmem:[#allocation1 + $0x10] ss:$2 sm:$0xff] %v4337_v63  ;;  %v3512_v17 = vpack.i.bf16 %v1599_v47, %v1598_v23  ;;  %v5887_v47 = vld [vmem:[#allocation11_spill] sm:$0xff]  ;;  %v5888_v63 = vld [vmem:[#allocation8_spill] sm:$0xff]  ;;  %2591 = vmatpush.bf16.msra.mxu0 %v3166_v35 }
 0x19b   : > { %1605 = vst [vmem:[#allocation1 + $0x11] ss:$2 sm:$0xff] %v4341_v48  ;;  %v4747_v23 = vsel %vm1390_vm6, %v5887_v47, %v3266_v26  ;;  %v4751_v30 = vsel %vm1390_vm6, %v5888_v63, %v3265_v10  ;;  %v3375_v48 = vunpack.i.l.bf16 %v3374_v38  ;;  %v4761_v26 = vsel %vm1390_vm6, %v5890_v7, %v3256_v34  ;;  %v5891_v47 = vld [vmem:[#allocation6_spill] sm:$0xff] }
 0x19c   : > { %v1557_v2 = vld.sshfl [vmem:[#allocation1 + $0x20] sm:$0xff pattern:$0x75316420]  ;;  %3513 = vrot.lane.b32.xlu0 %v3512_v17, %s3662_s19  ;;  %v4765_v63 = vsel %vm1390_vm6, %v5891_v47, %v3255_v14  ;;  %v5892_v10 = vld [vmem:[#allocation10_spill] sm:$0xff]  ;;  %v3492_v38 = vpack.i.bf16 %v4693_v15, %v4637_v24  ;;  %v3286_v17 = vunpack.i.h.bf16 %v4546_v37  ;;  %v3305_v14 = vunpack.i.l.bf16 %v4561_v31  ;;  %v3394_v15 = vpop.permute.xlu1 %3393  ;;  %2620 = vmatpush.bf16.msra.mxu1 %v3174_v54  ;;  %5895 = vst [vmem:[#allocation75_spill] sm:$0xff] %v4781_v39  ;;  %v5897_v54 = vld [vmem:[#allocation48_spill] sm:$0xff] }
 0x19d   : > { %1591 = vst [vmem:[#allocation1 + $0x20] ss:$2 sm:$0xff] %v5889_v16  ;;  %v5893_v34 = vld [vmem:[#allocation34_spill] sm:$0xff]  ;;  %v3395_v44 = vunpack.i.l.bf16 %v3394_v15  ;;  %v3180_v39 = vld [vmem:[%s5670_s1 + $0x80] sm:$0xff] }
 0x19e   : > { %v1558_v16 = vld.sshfl [vmem:[#allocation1 + $0x30] sm:$0xff pattern:$0x75316420]  ;;  %1593 = vst [vmem:[#allocation1 + $0x21] ss:$2 sm:$0xff] %v5892_v10  ;;  %v1418_v47 = vsel %vm1390_vm6, %v5893_v34, %v3316_v62  ;;  %v5894_v10 = vld [vmem:[#allocation32_spill] sm:$0xff]  ;;  %v3396_v34 = vunpack.i.h.bf16 %v3394_v15  ;;  %3493 = vrot.lane.b32.xlu2 %v3492_v38, %s3661_s18  ;;  %v3355_v15 = vunpack.i.l.bf16 %v4611_v13  ;;  %2651 = vmatpush.bf16.msra.mxu2 %v3180_v39 }
 0x19f   : > { %v3507_v6 = vpack.i.bf16 %v1558_v16, %v1557_v2  ;;  %1595 = vst [vmem:[#allocation1 + $0x30] ss:$2 sm:$0xff] %v3813_v45  ;;  %v1417_v24 = vsel %vm1390_vm6, %v5894_v10, %v3315_v41  ;;  %v3165_v2 = vld [vmem:[%s5670_s1 + $0x8] sm:$0xff]  ;;  %v1441_v10 = vsel %vm1390_vm6, %v5897_v54, %v3375_v48  ;;  %v5898_v45 = vld [vmem:[#allocation15_spill] sm:$0xff]  ;;  %v4806_v48 = vld [vmem:[%s3698_s17 + $0xf8] sm:$0x3f] }
 0x1a0   : > { %1597 = vst [vmem:[#allocation1 + $0x31] ss:$2 sm:$0xff] %v3824_v51  ;;  %v3173_v37 = vld [vmem:[%s5670_s1 + $0x48] sm:$0xff]  ;;  %v4790_v62 = vld.sshfl [vmem:[#allocation1] sm:$0xff pattern:$0x75316420]  ;;  %v3414_v7 = vpop.permute.xlu2 %3413  ;;  %v3336_v51 = vunpack.i.h.bf16 %v4606_v11  ;;  %3224 = vmatpush.bf16.msra.mxu3 %v3165_v2  ;;  %v1449_v35 = vsel %vm1399_vm7, %v1441_v10, %v3395_v44  ;;  %v1404_v44 = vsel %vm1399_vm7, %v4751_v30, %v3285_v46  ;;  %v5900_v46 = vunpack.i.h.bf16 %v4561_v31  ;;  %2592 = vmatpush.bf16.msra.mxu0 %v3165_v2 }
 0x1a1   : > { %3508 = vrot.lane.b32.xlu1 %v3507_v6, %s3661_s18  ;;  %v5896_v41 = vld [vmem:[#allocation50_spill] sm:$0xff]  ;;  %v3335_v6 = vunpack.i.l.bf16 %v4606_v11  ;;  %1638 = vst [vmem:[#allocation1] ss:$2 sm:$0xff] %v5898_v45  ;;  %v3416_v58 = vunpack.i.h.bf16 %v3414_v7  ;;  %v3502_v45 = vpack.i.bf16 %v4678_v0, %v4670_v25  ;;  %2621 = vmatpush.bf16.msra.mxu1 %v3173_v37  ;;  %v3164_v13 = vld [vmem:[%s5670_s1] sm:$0xff]  ;;  %v3270_v25 = vunpack.i.l.bf16 %v4519_v3 }
 0x1a2   : > { %v1442_v16 = vsel %vm1390_vm6, %v5896_v41, %v3376_v42  ;;  %v3415_v42 = vunpack.i.l.bf16 %v3414_v7  ;;  %v4803_v41 = vld [vmem:[%s3698_s17 + $0xf0] sm:$0x3f]  ;;  %1640 = vst [vmem:[#allocation1 + $0x1] ss:$2 sm:$0xff] %v5899_v5  ;;  %v4817_v7 = vld [vmem:[%s3698_s17 + $0x100] sm:$0x3f]  ;;  %v1413_v39 = vsel %vm1408_vm8, %v1404_v44, %v3305_v14 }
 0x1a3   : > { %v1611_v54 = vld.sshfl [vmem:[#allocation1 + $0x10] sm:$0xff pattern:$0x75316420]  ;;  %v1450_v38 = vsel %vm1399_vm7, %v1442_v16, %v3396_v34  ;;  %v4836_v10 = vld [vmem:[%s3698_s17 + $0x108] sm:$0x3f]  ;;  %v1405_v34 = vsel %vm1399_vm7, %v4747_v23, %v3286_v17  ;;  %v1426_v23 = vsel %vm1399_vm7, %v1418_v47, %v3336_v51  ;;  %v5902_v44 = vld [vmem:[#allocation20_spill] sm:$0xff] }
 0x1a4   : > { %v3522_v11 = vpack.i.bf16 %v1611_v54, %v4790_v62  ;;  %1642 = vst [vmem:[#allocation1 + $0x10] ss:$2 sm:$0xff] %v3849_v61  ;;  %v1457_v62 = vsel %vm1408_vm8, %v1449_v35, %v3415_v42  ;;  %v1458_v37 = vsel %vm1408_vm8, %v1450_v38, %v3416_v58  ;;  %v3172_v54 = vld [vmem:[%s5670_s1 + $0x40] sm:$0xff]  ;;  %v3195_v58 = vld [vmem:[%s5670_s1 + $0xf8] sm:$0xff]  ;;  %v1425_v42 = vsel %vm1399_vm7, %v1417_v24, %v3335_v6  ;;  %v4858_v6 = vpop.permute.xlu0 %3403  ;;  %v5903_v47 = vld [vmem:[#allocation18_spill] sm:$0xff] }
 0x1a5   : > { %1644 = vst [vmem:[#allocation1 + $0x11] ss:$2 sm:$0xff] %v3857_v18  ;;  %v4826_v0 = vld.sshfl [vmem:[#allocation1 + $0x20] sm:$0xff pattern:$0x75316420]  ;;  %v2112_v16 = vpack.c.bf16 %v1458_v37, %v1457_v62  ;;  %v1414_v30 = vsel %vm1408_vm8, %v1405_v34, %v5900_v46  ;;  %v1433_v17 = vsel %vm1408_vm8, %v1425_v42, %v3355_v15  ;;  %v5760_v62 = vrot.slane %v4803_v41, 4  ;;  %3225 = vmatpush.bf16.msra.mxu3 %v3164_v13 }
 0x1a6   : > { %1606 = vst [vmem:[#allocation1 + $0x20] ss:$2 sm:$0xff] %v4803_v41  ;;  %v2124_v24 = vpack.c.bf16 %v1414_v30, %v1413_v39  ;;  %v1434_v31 = vsel %vm1408_vm8, %v1426_v23, %v3356_v12  ;;  %v5901_v37 = vunpack.i.h.bf16 %v4519_v3  ;;  %v4869_v2 = vsel %vm1390_vm6, %v5903_v47, %v3270_v25  ;;  %2622 = vmatpush.bf16.msra.mxu1 %v3172_v54  ;;  %v3194_v25 = vld [vmem:[%s5670_s1 + $0xf0] sm:$0xff]  ;;  %v5904_v46 = vld [vmem:[#allocation62_spill] sm:$0xff] }
 0x1a7   : > { %v4847_v38 = vld.sshfl [vmem:[#allocation1 + $0x30] sm:$0xff pattern:$0x75316420]  ;;  %1607 = vst [vmem:[#allocation1 + $0x21] ss:$2 sm:$0xff] %v4806_v48  ;;  %2652 = vmatmul.bf16.vlgmr.msra.gmra.mxu2 %v2112_v16  ;;  %v3321_v34 = vunpack.i.h.bf16 %v4584_v52  ;;  %v3290_v12 = vunpack.i.l.bf16 %v4544_v4  ;;  %v3320_v3 = vunpack.i.l.bf16 %v4584_v52  ;;  %v5761_v39 = vrot.slane %v4806_v48, 4  ;;  %3503 = vrot.lane.b32.xlu2 %v3502_v45, %s3661_s18 }
 0x1a8   : > { %1608 = vst [vmem:[#allocation1 + $0x30] ss:$2 sm:$0xff] %v4817_v7  ;;  %v4865_v51 = vsel %vm1390_vm6, %v5902_v44, %v5901_v37  ;;  %v2111_v42 = vpack.c.bf16 %v1434_v31, %v1433_v17  ;;  %v3380_v54 = vunpack.i.l.bf16 %v4715_v19  ;;  %v5762_v30 = vrot.slane %v4817_v7, 4  ;;  %2604 = vmatmul.bf16.vlgmr.msra.gmra.mxu3 %v2124_v24  ;;  %2593 = vmatpush.bf16.msra.mxu0 %v3164_v13  ;;  %v5905_v45 = vld [vmem:[#allocation63_spill] sm:$0xff] }
 0x1a9   : > { %3523 = vrot.lane.b32.xlu1 %v3522_v11, %s3662_s19  ;;  %1609 = vst [vmem:[#allocation1 + $0x31] ss:$2 sm:$0xff] %v4836_v10  ;;  %v1653_v16 = vld.sshfl [vmem:[#allocation1] sm:$0xff pattern:$0x75316420]  ;;  %2673 = vmatpush.bf16.msrb.mxu3 %v3195_v58  ;;  %v3381_v11 = vunpack.i.h.bf16 %v4715_v19  ;;  %v2929_v52 = vrot.slane %v4803_v41, 9  ;;  %v3311_v58 = vunpack.i.h.bf16 %v4549_v8  ;;  %v3310_v23 = vunpack.i.l.bf16 %v4549_v8 }
 0x1aa   : > { %1657 = vst [vmem:[#allocation1] ss:$2 sm:$0xff] %v5904_v46  ;;  %v3341_v17 = vunpack.i.h.bf16 %v4590_v50  ;;  %v524_v37 = vrot.slane %v5760_v62, 5  ;;  %2623 = vmatmul.bf16.vlgmr.msra.gmra.mxu1 %v2111_v42  ;;  %v5906_v19 = vld [vmem:[#allocation39_spill] sm:$0xff]  ;;  %v3340_v47 = vunpack.i.l.bf16 %v4590_v50  ;;  %v5763_v13 = vrot.slane %v4836_v10, 4  ;;  %v5907_v8 = vld [vmem:[#allocation37_spill] sm:$0xff] }
 0x1ab   : > { %1658 = vst [vmem:[#allocation1 + $0x1] ss:$2 sm:$0xff] %v5905_v45  ;;  %v1420_v44 = vsel %vm1390_vm6, %v5906_v19, %v3321_v34  ;;  %v1419_v46 = vsel %vm1390_vm6, %v5907_v8, %v3320_v3  ;;  %v3401_v35 = vunpack.i.h.bf16 %v4726_v60  ;;  %v3400_v62 = vunpack.i.l.bf16 %v4726_v60  ;;  %v5909_v50 = vld [vmem:[#allocation56_spill] sm:$0xff]  ;;  %v5911_v8 = vld [vmem:[#allocation21_spill] sm:$0xff] }
 0x1ac   : > { %v1654_v31 = vld.sshfl [vmem:[#allocation1 + $0x10] sm:$0xff pattern:$0x75316420]  ;;  %v2930_v42 = vrot.slane %v4806_v48, 9  ;;  %v1444_v34 = vsel %vm1390_vm6, %v5909_v50, %v3381_v11  ;;  %v528_v3 = vrot.slane %v5761_v39, 5  ;;  %v2931_v19 = vrot.slane %v4817_v7, 9 }
 0x1ad   : > { %v3527_v24 = vpack.i.bf16 %v1654_v31, %v1653_v16  ;;  %1659 = vst [vmem:[#allocation1 + $0x10] ss:$2 sm:$0xff] %v4380_v59  ;;  %2674 = vmatpush.bf16.msrb.mxu3 %v3194_v25  ;;  %v5910_v16 = vld [vmem:[#allocation54_spill] sm:$0xff]  ;;  %v3361_v60 = vunpack.i.h.bf16 %v4676_v32  ;;  %v3360_v15 = vunpack.i.l.bf16 %v4676_v32  ;;  %v525_v25 = vsel %vm3751_vm2, %v2929_v52, %v524_v37  ;;  %v4929_v52 = vpop.permute.xlu1 %3408 }
 0x1ae   : > { %1660 = vst [vmem:[#allocation1 + $0x11] ss:$2 sm:$0xff] %v4385_v27  ;;  %v4904_v14 = vld.sshfl [vmem:[#allocation1 + $0x20] sm:$0xff pattern:$0x75316420]  ;;  %v1443_v31 = vsel %vm1390_vm6, %v5910_v16, %v3380_v54  ;;  %v532_v11 = vrot.slane %v5762_v30, 5  ;;  %v3419_v16 = vpop.permute.xlu0 %3418 }
 0x1af   : > { %5908 = vst [vmem:[#allocation11_spill] sm:$0xff] %v4904_v14  ;;  %v5913_v54 = vld [vmem:[#allocation22_spill] sm:$0xff]  ;;  %v2932_v39 = vrot.slane %v4836_v10, 9  ;;  %v3421_v32 = vunpack.i.h.bf16 %v3419_v16  ;;  %v3420_v14 = vunpack.i.l.bf16 %v3419_v16  ;;  %v1451_v30 = vsel %vm1399_vm7, %v1443_v31, %v3400_v62 }
 0x1b0   : > { %1646 = vst [vmem:[#allocation1 + $0x20] ss:$2 sm:$0xff] %v5911_v8  ;;  %v4920_v50 = vld.sshfl [vmem:[#allocation1 + $0x30] sm:$0xff pattern:$0x75316420]  ;;  %v536_v8 = vrot.slane %v5763_v13, 5  ;;  %v1406_v13 = vsel %vm1399_vm7, %v4869_v2, %v3290_v12  ;;  %v1427_v2 = vsel %vm1399_vm7, %v1419_v46, %v3340_v47  ;;  %v5919_v46 = vunpack.i.h.bf16 %v5886_v56 }
 0x1b1   : > { %5912 = vst [vmem:[#allocation8_spill] sm:$0xff] %v4920_v50  ;;  %3528 = vrot.lane.b32.xlu1 %v3527_v24, %s3663_s20  ;;  %v3193_v37 = vld [vmem:[%s5670_s1 + $0xe8] sm:$0xff]  ;;  %v1452_v24 = vsel %vm1399_vm7, %v1444_v34, %v3401_v35  ;;  %v3517_v50 = vpack.i.bf16 %v4847_v38, %v4826_v0  ;;  %v1459_v16 = vsel %vm1408_vm8, %v1451_v30, %v3420_v14  ;;  %v5916_v35 = vld [vmem:[#allocation25_spill] sm:$0xff]  ;;  %v5920_v34 = vunpack.i.l.bf16 %v4524_v53 }
 0x1b2   : > { %1648 = vst [vmem:[#allocation1 + $0x21] ss:$2 sm:$0xff] %v5913_v54  ;;  %v5915_v54 = vunpack.i.h.bf16 %v4544_v4  ;;  %v1415_v62 = vsel %vm1408_vm8, %v1406_v13, %v3310_v23  ;;  %2675 = vmatpush.bf16.msrb.mxu3 %v3193_v37  ;;  %v3192_v0 = vld [vmem:[%s5670_s1 + $0xe0] sm:$0xff]  ;;  %v4958_v4 = vsel %vm3751_vm2, %v2930_v42, %v528_v3  ;;  %v5917_v12 = vld [vmem:[#allocation26_spill] sm:$0xff]  ;;  %v1428_v23 = vsel %vm1399_vm7, %v1420_v44, %v3341_v17 }
 0x1b3   : > { %1650 = vst [vmem:[#allocation1 + $0x30] ss:$2 sm:$0xff] %v3954_v36  ;;  %v4940_v36 = vld.sshfl [vmem:[#allocation1] sm:$0xff pattern:$0x75316420]  ;;  %3518 = vrot.lane.b32.xlu2 %v3517_v50, %s3662_s19  ;;  %v5918_v13 = vunpack.i.l.bf16 %v5886_v56  ;;  %v1436_v47 = vsel %vm1408_vm8, %v1428_v23, %v3361_v60  ;;  %v1401_v42 = vsel %vm1399_vm7, %v4761_v26, %v5919_v46  ;;  %v3386_v44 = vunpack.i.h.bf16 %v4681_v33  ;;  %v5927_v23 = vld [vmem:[#allocation36_spill] sm:$0xff] }
 0x1b4   : > { %1652 = vst [vmem:[#allocation1 + $0x31] ss:$2 sm:$0xff] %v3962_v28  ;;  %v1460_v28 = vsel %vm1408_vm8, %v1452_v24, %v3421_v32  ;;  %v3385_v31 = vunpack.i.l.bf16 %v4681_v33  ;;  %v5921_v56 = vunpack.i.h.bf16 %v4524_v53  ;;  %v4990_v26 = vsel %vm3751_vm2, %v2932_v39, %v536_v8  ;;  %v3191_v33 = vld [vmem:[%s5670_s1 + $0xd8] sm:$0xff]  ;;  %v3189_v46 = vld [vmem:[%s5670_s1 + $0xc8] sm:$0xff] }
 0x1b5   : > { %5914 = vst [vmem:[#allocation9_spill] sm:$0xff] %v4929_v52  ;;  %v1407_v52 = vsel %vm1399_vm7, %v4865_v51, %v5915_v54  ;;  %v2119_v38 = vpack.c.bf16 %v1460_v28, %v1459_v16  ;;  %v4960_v51 = vld.sshfl [vmem:[#allocation1 + $0x10] sm:$0xff pattern:$0x75316420]  ;;  %v1400_v28 = vsel %vm1399_vm7, %v4765_v63, %v5918_v13  ;;  %v4982_v63 = vsel %vm3751_vm2, %v2931_v19, %v532_v11  ;;  %v5923_v8 = vld [vmem:[#allocation52_spill] sm:$0xff]  ;;  %v3424_v24 = vpop.permute.xlu1 %3423 }
 0x1b6   : > { %1693 = vst [vmem:[#allocation1] ss:$2 sm:$0xff] %v5916_v35  ;;  %v1416_v14 = vsel %vm1408_vm8, %v1407_v52, %v3311_v58  ;;  %v1435_v58 = vsel %vm1408_vm8, %v1427_v2, %v3360_v15  ;;  %v1409_v17 = vsel %vm1408_vm8, %v1400_v28, %v5920_v34  ;;  %v1410_v3 = vsel %vm1408_vm8, %v1401_v42, %v5921_v56  ;;  %v5928_v28 = vld [vmem:[#allocation35_spill] sm:$0xff] }
 0x1b7   : > { %1695 = vst [vmem:[#allocation1 + $0x1] ss:$2 sm:$0xff] %v5917_v12  ;;  %v2131_v30 = vpack.c.bf16 %v1416_v14, %v1415_v62  ;;  %2676 = vmatpush.bf16.msrb.mxu3 %v3192_v0  ;;  %2657 = vmatmul.bf16.gmra.mxu2 %v2119_v38  ;;  %v2110_v19 = vpack.c.bf16 %v1410_v3, %v1409_v17  ;;  %v3406_v53 = vunpack.i.h.bf16 %v4858_v6  ;;  %v3405_v39 = vunpack.i.l.bf16 %v4858_v6  ;;  %v3190_v6 = vld [vmem:[%s5670_s1 + $0xd0] sm:$0xff]  ;;  %v5925_v0 = vld [vmem:[#allocation66_spill] sm:$0xff] }
 0x1b8   : > { %1697 = vst [vmem:[#allocation1 + $0x10] ss:$2 sm:$0xff] %v3994_v21  ;;  %v2118_v11 = vpack.c.bf16 %v1436_v47, %v1435_v58  ;;  %v1445_v32 = vsel %vm1390_vm6, %v5923_v8, %v3385_v31  ;;  %v3326_v52 = vunpack.i.h.bf16 %v4566_v49  ;;  %v3325_v37 = vunpack.i.l.bf16 %v4566_v49  ;;  %v5930_v17 = vld [vmem:[#allocation27_spill] sm:$0xff] }
 0x1b9   : > { %v1655_v15 = vld.sshfl [vmem:[#allocation1 + $0x20] sm:$0xff pattern:$0x75316420]  ;;  %1699 = vst [vmem:[#allocation1 + $0x11] ss:$2 sm:$0xff] %v4001_v9  ;;  %2594 = vmatmul.bf16.vlgmr.msra.gmra.mxu0 %v2110_v19  ;;  %2609 = vmatmul.bf16.gmra.mxu3 %v2131_v30  ;;  %v3426_v62 = vunpack.i.h.bf16 %v3424_v24  ;;  %v3425_v35 = vunpack.i.l.bf16 %v3424_v24  ;;  %v1453_v49 = vsel %vm1399_vm7, %v1445_v32, %v3405_v39  ;;  %v3346_v2 = vunpack.i.h.bf16 %v4634_v57 }
 0x1ba   : > { %1661 = vst [vmem:[#allocation1 + $0x20] ss:$2 sm:$0xff] %v525_v25  ;;  %v5922_v25 = vld [vmem:[#allocation53_spill] sm:$0xff]  ;;  %2628 = vmatmul.bf16.gmra.mxu1 %v2118_v11  ;;  %v3345_v30 = vunpack.i.l.bf16 %v4634_v57  ;;  %v1422_v13 = vsel %vm1390_vm6, %v5927_v23, %v3326_v52  ;;  %v1421_v58 = vsel %vm1390_vm6, %v5928_v28, %v3325_v37  ;;  %v3537_v47 = vpack.i.bf16 %v4960_v51, %v4940_v36  ;;  %v5932_v36 = vld [vmem:[#allocation28_spill] sm:$0xff]  ;;  %v5938_v37 = vld [vmem:[#allocation3_spill] sm:$0xff]  ;;  %v3434_v23 = vpop.permute.xlu0 %3433 }
 0x1bb   : > { %v1656_v60 = vld.sshfl [vmem:[#allocation1 + $0x30] sm:$0xff pattern:$0x75316420]  ;;  %1662 = vst [vmem:[#allocation1 + $0x21] ss:$2 sm:$0xff] %v4958_v4  ;;  %v1446_v54 = vsel %vm1390_vm6, %v5922_v25, %v3386_v44  ;;  %2677 = vmatpush.bf16.msrb.mxu3 %v3191_v33  ;;  %v1461_v57 = vsel %vm1408_vm8, %v1453_v49, %v3425_v35  ;;  %v3366_v44 = vunpack.i.h.bf16 %v4674_v43  ;;  %v3365_v31 = vunpack.i.l.bf16 %v4674_v43  ;;  %v5943_v28 = vld [vmem:[#allocation29_spill] sm:$0xff] }
 0x1bc   : > { %v3532_v50 = vpack.i.bf16 %v1656_v60, %v1655_v15  ;;  %1663 = vst [vmem:[#allocation1 + $0x30] ss:$2 sm:$0xff] %v4982_v63  ;;  %v1454_v14 = vsel %vm1399_vm7, %v1446_v54, %v3406_v53  ;;  %v2933_v51 = vrot.slane %v4803_v41, 10  ;;  %v5933_v56 = vrot.slane %v4803_v41, 4  ;;  %v3211_v35 = vld [vmem:[%s5670_s1 + $0x178] sm:$0xff] }
 0x1bd   : > { %1664 = vst [vmem:[#allocation1 + $0x31] ss:$2 sm:$0xff] %v4990_v26  ;;  %v1462_v34 = vsel %vm1408_vm8, %v1454_v14, %v3426_v62  ;;  %v1429_v33 = vsel %vm1399_vm7, %v1421_v58, %v3345_v30  ;;  %v1430_v19 = vsel %vm1399_vm7, %v1422_v13, %v3346_v2  ;;  %v2934_v60 = vrot.slane %v4806_v48, 10  ;;  %v5064_v24 = vpop.permute.xlu1 %3438  ;;  %v5941_v14 = vld [vmem:[#allocation4_spill] sm:$0xff]  ;;  %v5942_v30 = vld [vmem:[#allocation5_spill] sm:$0xff]  ;;  %3226 = vmatpush.bf16.msrb.mxu1 %v3211_v35 }
 0x1be   : > { %3533 = vrot.lane.b32.xlu0 %v3532_v50, %s3663_s20  ;;  %v5007_v16 = vld.sshfl [vmem:[#allocation1] sm:$0xff pattern:$0x75316420]  ;;  %v540_v3 = vrot.slane %v5933_v56, 6  ;;  %v5934_v11 = vrot.slane %v4806_v48, 4  ;;  %v2126_v41 = vpack.c.bf16 %v1462_v34, %v1461_v57  ;;  %v2935_v53 = vrot.slane %v4817_v7, 10 }
 0x1bf   : > { %5924 = vst [vmem:[#allocation7_spill] sm:$0xff] %v5007_v16  ;;  %2678 = vmatpush.bf16.msrb.mxu3 %v3190_v6  ;;  %v3188_v50 = vld [vmem:[%s5670_s1 + $0xc0] sm:$0xff]  ;;  %v5935_v39 = vrot.slane %v4817_v7, 4  ;;  %v2936_v8 = vrot.slane %v4836_v10, 10  ;;  %v5937_v32 = vrot.slane %v4836_v10, 4  ;;  %v1437_v6 = vsel %vm1408_vm8, %v1429_v33, %v3365_v31  ;;  %v5949_v31 = vld [vmem:[#allocation60_spill] sm:$0xff] }
 0x1c0   : > { %1712 = vst [vmem:[#allocation1] ss:$2 sm:$0xff] %v5925_v0  ;;  %v5013_v38 = vld.sshfl [vmem:[#allocation1 + $0x10] sm:$0xff pattern:$0x75316420]  ;;  %v544_v43 = vrot.slane %v5934_v11, 6  ;;  %v1438_v62 = vsel %vm1408_vm8, %v1430_v19, %v3366_v44  ;;  %v541_v0 = vsel %vm3890_vm5, %v2933_v51, %v540_v3  ;;  %v3436_v33 = vunpack.i.h.bf16 %v3434_v23 }
 0x1c1   : > { %5926 = vst [vmem:[#allocation6_spill] sm:$0xff] %v5013_v38  ;;  %v548_v25 = vrot.slane %v5935_v39, 6  ;;  %v552_v52 = vrot.slane %v5937_v32, 6  ;;  %v2125_v58 = vpack.c.bf16 %v1438_v62, %v1437_v6  ;;  %v5950_v56 = vld [vmem:[#allocation61_spill] sm:$0xff]  ;;  %v5951_v3 = vld [vmem:[#allocation71_spill] sm:$0xff]  ;;  %v3435_v19 = vunpack.i.l.bf16 %v3434_v23 }
 0x1c2   : > { %1713 = vst [vmem:[#allocation1 + $0x1] ss:$2 sm:$0xff] %v4414_v40  ;;  %v5031_v42 = vld.sshfl [vmem:[#allocation1 + $0x20] sm:$0xff pattern:$0x75316420]  ;;  %v5075_v2 = vsel %vm3890_vm5, %v2934_v60, %v544_v43  ;;  %v3449_v60 = vpop.permute.xlu0 %3448  ;;  %v5953_v43 = vld [vmem:[#allocation10_spill] sm:$0xff] }
 0x1c3   : > { %1714 = vst [vmem:[#allocation1 + $0x10] ss:$2 sm:$0xff] %v4419_v22  ;;  %2679 = vmatpush.bf16.msrb.mxu3 %v3189_v46  ;;  %v5080_v13 = vsel %vm3890_vm5, %v2935_v53, %v548_v25  ;;  %v5087_v46 = vsel %vm3890_vm5, %v2936_v8, %v552_v52  ;;  %v5955_v53 = vld [vmem:[#allocation12_spill] sm:$0xff]  ;;  %v3451_v39 = vunpack.i.h.bf16 %v3449_v60  ;;  %v3450_v25 = vunpack.i.l.bf16 %v3449_v60  ;;  %v5956_v8 = vld [vmem:[#allocation14_spill] sm:$0xff]  ;;  %v5957_v32 = vld [vmem:[#allocation67_spill] sm:$0xff] }
 0x1c4   : > { %1715 = vst [vmem:[#allocation1 + $0x11] ss:$2 sm:$0xff] %v4424_v55  ;;  %v5038_v15 = vld.sshfl [vmem:[#allocation1 + $0x30] sm:$0xff pattern:$0x75316420]  ;;  %v1466_v52 = vsel %vm1390_vm6, %v5957_v32, %v3436_v33  ;;  %v5962_v32 = vld [vmem:[#allocation33_spill] sm:$0xff] }
 0x1c5   : > { %5929 = vst [vmem:[#allocation34_spill] sm:$0xff] %v5031_v42  ;;  %v5959_v62 = vld [vmem:[#allocation31_spill] sm:$0xff]  ;;  %v1474_v23 = vsel %vm1399_vm7, %v1466_v52, %v3451_v39  ;;  %v5963_v52 = vld [vmem:[#allocation78_spill] sm:$0xff] }
 0x1c6   : > { %1701 = vst [vmem:[#allocation1 + $0x20] ss:$2 sm:$0xff] %v5930_v17  ;;  %3538 = vrot.lane.b32.xlu0 %v3537_v47, %s3663_s20  ;;  %v5947_v17 = vld [vmem:[#allocation59_spill] sm:$0xff]  ;;  %v5100_v51 = vpop.permute.xlu1 %3458 }
 0x1c7   : > { %5931 = vst [vmem:[#allocation32_spill] sm:$0xff] %v5038_v15  ;;  %2680 = vmatpush.bf16.msrb.mxu3 %v3188_v50  ;;  %2662 = vmatmul.bf16.gmra.mxu2 %v2126_v41  ;;  %v5107_v50 = vpop.permute.xlu2 %3428  ;;  %v5983_v42 = vld [vmem:[#allocation23_spill] sm:$0xff] }
 0x1c8   : > { %1703 = vst [vmem:[#allocation1 + $0x21] ss:$2 sm:$0xff] %v5932_v36 }
 0x1c9   : > { %1705 = vst [vmem:[#allocation1 + $0x30] ss:$2 sm:$0xff] %v4057_v1  ;;  %v5058_v54 = vld.sshfl [vmem:[#allocation1] sm:$0xff pattern:$0x75316420] }
 0x1ca   : > { %1707 = vst [vmem:[#allocation1 + $0x31] ss:$2 sm:$0xff] %v4062_v29  ;;  %2633 = vmatmul.bf16.gmra.mxu1 %v2125_v58 }
 0x1cb   : > { %5936 = vst [vmem:[#allocation50_spill] sm:$0xff] %v5058_v54  ;;  %v5070_v49 = vld.sshfl [vmem:[#allocation1 + $0x10] sm:$0xff pattern:$0x75316420] }
 0x1cc   : > { %1732 = vst [vmem:[#allocation1] ss:$2 sm:$0xff] %v5938_v37  ;;  %v5958_v37 = vld [vmem:[#allocation30_spill] sm:$0xff] }
 0x1cd   : > { %5940 = vst [vmem:[#allocation48_spill] sm:$0xff] %v5070_v49  ;;  %v1465_v6 = vsel %vm1390_vm6, %v5958_v37, %v3435_v19 }
 0x1ce   : > { %1734 = vst [vmem:[#allocation1 + $0x1] ss:$2 sm:$0xff] %v5941_v14  ;;  %v1473_v58 = vsel %vm1399_vm7, %v1465_v6, %v3450_v25  ;;  %v3261_v6 = vunpack.i.h.bf16 %v5963_v52 }
 0x1cf   : > { %1736 = vst [vmem:[#allocation1 + $0x10] ss:$2 sm:$0xff] %v5942_v30  ;;  %v5083_v47 = vld.sshfl [vmem:[#allocation1 + $0x20] sm:$0xff pattern:$0x75316420] }
 0x1d0   : > { %1738 = vst [vmem:[#allocation1 + $0x11] ss:$2 sm:$0xff] %v5943_v28 }
 0x1d1   : > { %5944 = vst [vmem:[#allocation15_spill] sm:$0xff] %v5083_v47  ;;  %v5089_v57 = vld.sshfl [vmem:[#allocation1 + $0x30] sm:$0xff pattern:$0x75316420]  ;;  %v5971_v47 = vld [vmem:[#allocation80_spill] sm:$0xff] }
 0x1d2   : > { %1716 = vst [vmem:[#allocation1 + $0x20] ss:$2 sm:$0xff] %v541_v0 }
 0x1d3   : > { %5945 = vst [vmem:[#allocation16_spill] sm:$0xff] %v5089_v57  ;;  %v3301_v57 = vunpack.i.h.bf16 %v5971_v47 }
 0x1d4   : > { %1717 = vst [vmem:[#allocation1 + $0x21] ss:$2 sm:$0xff] %v5075_v2 }
 0x1d5   : > { %1718 = vst [vmem:[#allocation1 + $0x30] ss:$2 sm:$0xff] %v5080_v13  ;;  %v5094_v34 = vld.sshfl [vmem:[#allocation1] sm:$0xff pattern:$0x75316420] }
 0x1d6   : > { %1719 = vst [vmem:[#allocation1 + $0x31] ss:$2 sm:$0xff] %v5087_v46 }
 0x1d7   : > { %5946 = vst [vmem:[#allocation20_spill] sm:$0xff] %v5094_v34  ;;  %v5097_v44 = vld.sshfl [vmem:[#allocation1 + $0x10] sm:$0xff pattern:$0x75316420]  ;;  %v5975_v34 = vld [vmem:[#allocation89_spill] sm:$0xff] }
 0x1d8   : > { %1751 = vst [vmem:[#allocation1] ss:$2 sm:$0xff] %v5947_v17  ;;  %v3469_v17 = vpop.permute.xlu1 %3468  ;;  %v3351_v15 = vunpack.i.h.bf16 %v5975_v34 }
 0x1d9   : > { %5948 = vst [vmem:[#allocation18_spill] sm:$0xff] %v5097_v44  ;;  %v3471_v33 = vunpack.i.h.bf16 %v3469_v17 }
 0x1da   : > { %1752 = vst [vmem:[#allocation1 + $0x1] ss:$2 sm:$0xff] %v5949_v31 }
 0x1db   : > { %1753 = vst [vmem:[#allocation1 + $0x10] ss:$2 sm:$0xff] %v5950_v56  ;;  %v5104_v11 = vld.sshfl [vmem:[#allocation1 + $0x20] sm:$0xff pattern:$0x75316420] }
 0x1dc   : > { %1754 = vst [vmem:[#allocation1 + $0x11] ss:$2 sm:$0xff] %v5951_v3 }
 0x1dd   : > { %5952 = vst [vmem:[#allocation62_spill] sm:$0xff] %v5104_v11  ;;  %v5109_v41 = vld.sshfl [vmem:[#allocation1 + $0x30] sm:$0xff pattern:$0x75316420] }
 0x1de   : > { %1740 = vst [vmem:[#allocation1 + $0x20] ss:$2 sm:$0xff] %v5953_v43  ;;  %v3470_v43 = vunpack.i.l.bf16 %v3469_v17  ;;  %v5131_v11 = vld [vmem:[%s3698_s17 + $0x110] sm:$0x3f]  ;;  %v3260_v17 = vunpack.i.l.bf16 %v5963_v52  ;;  %v5968_v52 = vld [vmem:[#allocation77_spill] sm:$0xff] }
 0x1df   : > { %5954 = vst [vmem:[#allocation63_spill] sm:$0xff] %v5109_v41  ;;  %v5137_v41 = vpop.permute.xlu2 %3443  ;;  %v3281_v54 = vunpack.i.h.bf16 %v5968_v52 }
 0x1e0   : > { %1742 = vst [vmem:[#allocation1 + $0x21] ss:$2 sm:$0xff] %v5955_v53  ;;  %v1481_v37 = vsel %vm1408_vm8, %v1473_v58, %v3470_v43  ;;  %v5964_v58 = vld [vmem:[#allocation86_spill] sm:$0xff] }
 0x1e1   : > { %1744 = vst [vmem:[#allocation1 + $0x30] ss:$2 sm:$0xff] %v5956_v8  ;;  %v5118_v0 = vld.sshfl [vmem:[#allocation1] sm:$0xff pattern:$0x75316420]  ;;  %v3331_v43 = vunpack.i.h.bf16 %v5964_v58 }
 0x1e2   : > { %1746 = vst [vmem:[#allocation1 + $0x31] ss:$2 sm:$0xff] %v5959_v62 }
 0x1e3   : > { %5960 = vst [vmem:[#allocation39_spill] sm:$0xff] %v5118_v0  ;;  %v5123_v60 = vld.sshfl [vmem:[#allocation1 + $0x10] sm:$0xff pattern:$0x75316420] }
 0x1e4   : > { %1787 = vst [vmem:[#allocation1] ss:$2 sm:$0xff] %v5899_v5  ;;  %v1482_v5 = vsel %vm1408_vm8, %v1474_v23, %v3471_v33  ;;  %v3330_v23 = vunpack.i.l.bf16 %v5964_v58  ;;  %v5965_v33 = vld [vmem:[#allocation75_spill] sm:$0xff] }
 0x1e5   : > { %5961 = vst [vmem:[#allocation37_spill] sm:$0xff] %v5123_v60  ;;  %v2113_v39 = vpack.c.bf16 %v1482_v5, %v1481_v37  ;;  %v3391_v38 = vunpack.i.h.bf16 %v5965_v33  ;;  %v3390_v37 = vunpack.i.l.bf16 %v5965_v33  ;;  %v3300_v33 = vunpack.i.l.bf16 %v5971_v47 }
 0x1e6   : > { %1789 = vst [vmem:[#allocation1 + $0x1] ss:$2 sm:$0xff] %v3849_v61 }
 0x1e7   : > { %1791 = vst [vmem:[#allocation1 + $0x10] ss:$2 sm:$0xff] %v3857_v18  ;;  %v1749_v19 = vld.sshfl [vmem:[#allocation1 + $0x20] sm:$0xff pattern:$0x75316420]  ;;  %2681 = vmatmul.bf16.vlgmr.msrb.gmra.mxu3 %v2113_v39 }
 0x1e8   : > { %1793 = vst [vmem:[#allocation1 + $0x11] ss:$2 sm:$0xff] %v5962_v32  ;;  %v5970_v39 = vld [vmem:[#allocation13_spill] sm:$0xff] }
 0x1e9   : > { %1755 = vst [vmem:[#allocation1 + $0x20] ss:$2 sm:$0xff] %v4806_v48  ;;  %v1750_v25 = vld.sshfl [vmem:[#allocation1 + $0x30] sm:$0xff pattern:$0x75316420]  ;;  %v5143_v48 = vpop.permute.xlu0 %3463  ;;  %v1393_v49 = vsel %vm1390_vm6, %v5970_v39, %v3260_v17  ;;  %v5977_v17 = vld [vmem:[#allocation57_spill] sm:$0xff]  ;;  %v3441_v39 = vunpack.i.h.bf16 %v5064_v24 }
 0x1ea   : > { %1756 = vst [vmem:[#allocation1 + $0x21] ss:$2 sm:$0xff] %v4817_v7  ;;  %v3542_v16 = vpack.i.bf16 %v1750_v25, %v1749_v19  ;;  %v3280_v19 = vunpack.i.l.bf16 %v5968_v52  ;;  %v5969_v25 = vld [vmem:[#allocation17_spill] sm:$0xff]  ;;  %v1447_v47 = vsel %vm1390_vm6, %v5977_v17, %v3390_v37  ;;  %v3431_v17 = vunpack.i.h.bf16 %v5107_v50 }
 0x1eb   : > { %1757 = vst [vmem:[#allocation1 + $0x30] ss:$2 sm:$0xff] %v4836_v10  ;;  %v1394_v58 = vsel %vm1390_vm6, %v5969_v25, %v3261_v6  ;;  %v5974_v52 = vld [vmem:[#allocation41_spill] sm:$0xff]  ;;  %v5976_v6 = vld [vmem:[#allocation58_spill] sm:$0xff] }
 0x1ec   : > { %5966 = vst [vmem:[#allocation56_spill] sm:$0xff] %v5143_v48  ;;  %3543 = vrot.lane.b32.xlu0 %v3542_v16, %s3661_s18  ;;  %v5973_v16 = vld [vmem:[#allocation42_spill] sm:$0xff]  ;;  %v1448_v25 = vsel %vm1390_vm6, %v5976_v6, %v3391_v38  ;;  %v1402_v6 = vsel %vm1399_vm7, %v1393_v49, %v3280_v19  ;;  %v1403_v37 = vsel %vm1399_vm7, %v1394_v58, %v3281_v54  ;;  %v5985_v19 = vld [vmem:[#allocation24_spill] sm:$0xff] }
 0x1ed   : > { %1758 = vst [vmem:[#allocation1 + $0x31] ss:$2 sm:$0xff] %v5131_v11  ;;  %v5148_v5 = vld.sshfl [vmem:[#allocation1] sm:$0xff pattern:$0x75316420]  ;;  %v5981_v38 = vld [vmem:[#allocation22_spill] sm:$0xff] }
 0x1ee   : > { %5967 = vst [vmem:[#allocation54_spill] sm:$0xff] %v5148_v5  ;;  %v1424_v5 = vsel %vm1390_vm6, %v5973_v16, %v3331_v43  ;;  %v5979_v16 = vld [vmem:[#allocation76_spill] sm:$0xff] }
 0x1ef   : > { %1806 = vst [vmem:[#allocation1] ss:$2 sm:$0xff] %v5905_v45  ;;  %v5159_v44 = vld.sshfl [vmem:[#allocation1 + $0x10] sm:$0xff pattern:$0x75316420]  ;;  %v1423_v45 = vsel %vm1390_vm6, %v5974_v52, %v3330_v23  ;;  %v5980_v23 = vld [vmem:[#allocation9_spill] sm:$0xff] }
 0x1f0   : > { %5972 = vst [vmem:[#allocation21_spill] sm:$0xff] %v5159_v44  ;;  %v3440_v44 = vunpack.i.l.bf16 %v5064_v24  ;;  %v3411_v52 = vunpack.i.h.bf16 %v5980_v23  ;;  %v3410_v60 = vunpack.i.l.bf16 %v5980_v23  ;;  %v3430_v24 = vunpack.i.l.bf16 %v5107_v50  ;;  %v5986_v58 = vld [vmem:[#allocation72_spill] sm:$0xff] }
 0x1f1   : > { %1807 = vst [vmem:[#allocation1 + $0x1] ss:$2 sm:$0xff] %v4380_v59  ;;  %v5175_v43 = vld.sshfl [vmem:[#allocation1 + $0x20] sm:$0xff pattern:$0x75316420]  ;;  %v3350_v23 = vunpack.i.l.bf16 %v5975_v34  ;;  %v1468_v50 = vsel %vm1390_vm6, %v5986_v58, %v3441_v39  ;;  %v5987_v59 = vld [vmem:[#allocation70_spill] sm:$0xff]  ;;  %v3454_v34 = vpop.permute.xlu2 %3453 }
 0x1f2   : > { %1808 = vst [vmem:[#allocation1 + $0x10] ss:$2 sm:$0xff] %v4385_v27  ;;  %v5984_v27 = vld [vmem:[#allocation90_spill] sm:$0xff]  ;;  %v3455_v48 = vunpack.i.l.bf16 %v3454_v34 }
 0x1f3   : > { %5978 = vst [vmem:[#allocation25_spill] sm:$0xff] %v5175_v43  ;;  %v1411_v43 = vsel %vm1408_vm8, %v1402_v6, %v3300_v33  ;;  %v3370_v49 = vunpack.i.l.bf16 %v5984_v27  ;;  %v5988_v33 = vrot.slane %v5131_v11, 4  ;;  %v5989_v6 = vld [vmem:[#allocation38_spill] sm:$0xff] }
 0x1f4   : > { %1809 = vst [vmem:[#allocation1 + $0x11] ss:$2 sm:$0xff] %v5979_v16  ;;  %v5185_v0 = vld.sshfl [vmem:[#allocation1 + $0x30] sm:$0xff pattern:$0x75316420]  ;;  %v1412_v16 = vsel %vm1408_vm8, %v1403_v37, %v3301_v57  ;;  %v3456_v37 = vunpack.i.h.bf16 %v3454_v34 }
 0x1f5   : > { %1795 = vst [vmem:[#allocation1 + $0x20] ss:$2 sm:$0xff] %v5981_v38  ;;  %v3371_v38 = vunpack.i.h.bf16 %v5984_v27  ;;  %v2117_v54 = vpack.c.bf16 %v1412_v16, %v1411_v43  ;;  %v558_v57 = vrot.slane %v5988_v33, 5  ;;  %v3474_v27 = vpop.permute.xlu0 %3473  ;;  %v1455_v43 = vsel %vm1399_vm7, %v1447_v47, %v3410_v60 }
 0x1f6   : > { %5982 = vst [vmem:[#allocation26_spill] sm:$0xff] %v5185_v0  ;;  %v1467_v0 = vsel %vm1390_vm6, %v5987_v59, %v3440_v44  ;;  %v1456_v16 = vsel %vm1399_vm7, %v1448_v25, %v3411_v52  ;;  %v3476_v58 = vunpack.i.h.bf16 %v3474_v27  ;;  %v3475_v59 = vunpack.i.l.bf16 %v3474_v27 }
 0x1f7   : > { %1797 = vst [vmem:[#allocation1 + $0x21] ss:$2 sm:$0xff] %v5983_v42  ;;  %v2937_v42 = vrot.slane %v5131_v11, 9  ;;  %2599 = vmatmul.bf16.gmra.mxu0 %v2117_v54  ;;  %v1463_v44 = vsel %vm1408_vm8, %v1455_v43, %v3430_v24  ;;  %v1476_v54 = vsel %vm1399_vm7, %v1468_v50, %v3456_v37  ;;  %v5991_v24 = vld [vmem:[#allocation11_spill] sm:$0xff] }
 0x1f8   : > { %1799 = vst [vmem:[#allocation1 + $0x30] ss:$2 sm:$0xff] %v5985_v19  ;;  %v5204_v39 = vld.sshfl [vmem:[#allocation1] sm:$0xff pattern:$0x75316420]  ;;  %v1464_v19 = vsel %vm1408_vm8, %v1456_v16, %v3431_v17  ;;  %v1484_v25 = vsel %vm1408_vm8, %v1476_v54, %v3476_v58  ;;  %v1432_v17 = vsel %vm1399_vm7, %v1424_v5, %v3351_v15  ;;  %v5994_v43 = vld [vmem:[#allocation43_spill] sm:$0xff] }
 0x1f9   : > { %1801 = vst [vmem:[#allocation1 + $0x31] ss:$2 sm:$0xff] %v5989_v6  ;;  %v2133_v33 = vpack.c.bf16 %v1464_v19, %v1463_v44  ;;  %v1475_v6 = vsel %vm1399_vm7, %v1467_v0, %v3455_v48  ;;  %v5990_v0 = vld [vmem:[#allocation40_spill] sm:$0xff]  ;;  %v5222_v48 = vsel %vm3751_vm2, %v2937_v42, %v558_v57  ;;  %v1440_v37 = vsel %vm1408_vm8, %v1432_v17, %v3371_v38  ;;  %v5245_v38 = vpop.permute.xlu2 %3483 }
 0x1fa   : > { %1842 = vst [vmem:[#allocation1] ss:$2 sm:$0xff] %v5917_v12  ;;  %v1483_v60 = vsel %vm1408_vm8, %v1475_v6, %v3475_v59  ;;  %v1431_v12 = vsel %vm1399_vm7, %v1423_v45, %v3350_v23  ;;  %v5992_v19 = vld [vmem:[#allocation8_spill] sm:$0xff]  ;;  %v5995_v58 = vrot.slane %v5131_v11, 4 }
 0x1fb   : > { %v5211_v34 = vld.sshfl [vmem:[#allocation1 + $0x10] sm:$0xff pattern:$0x75316420]  ;;  %1844 = vst [vmem:[#allocation1 + $0x1] ss:$2 sm:$0xff] %v3994_v21  ;;  %2667 = vmatmul.bf16.gmra.mxu2 %v2133_v33  ;;  %v2120_v52 = vpack.c.bf16 %v1484_v25, %v1483_v60  ;;  %v3567_v50 = vpack.i.bf16 %v5992_v19, %v5991_v24  ;;  %v1439_v6 = vsel %vm1408_vm8, %v1431_v12, %v3370_v49  ;;  %v3203_v45 = vld [vmem:[%s5670_s1 + $0x138] sm:$0xff]  ;;  %v3460_v12 = vunpack.i.l.bf16 %v5100_v51 }
 0x1fc   : > { %1846 = vst [vmem:[#allocation1 + $0x10] ss:$2 sm:$0xff] %v4001_v9  ;;  %v2132_v15 = vpack.c.bf16 %v1440_v37, %v1439_v6  ;;  %v5993_v49 = vld [vmem:[#allocation79_spill] sm:$0xff]  ;;  %2702 = vmatpush.bf16.msrb.mxu0 %v3203_v45  ;;  %v562_v59 = vrot.slane %v5995_v58, 6  ;;  %v5996_v54 = vld [vmem:[#allocation44_spill] sm:$0xff] }
 0x1fd   : > { %1848 = vst [vmem:[#allocation1 + $0x11] ss:$2 sm:$0xff] %v5990_v0  ;;  %2686 = vmatmul.bf16.gmra.mxu3 %v2120_v52  ;;  %3568 = vrot.lane.b32.xlu0 %v3567_v50, %s3662_s19  ;;  %v3479_v17 = vpop.permute.xlu0 %3478  ;;  %v5997_v19 = vld [vmem:[#allocation68_spill] sm:$0xff] }
 0x1fe   : > { %v1804_v47 = vld.sshfl [vmem:[#allocation1 + $0x20] sm:$0xff pattern:$0x75316420]  ;;  %2638 = vmatmul.bf16.gmra.mxu1 %v2132_v15  ;;  %v3480_v37 = vunpack.i.l.bf16 %v3479_v17  ;;  %v3481_v45 = vunpack.i.h.bf16 %v3479_v17  ;;  %v6003_v17 = vld [vmem:[#allocation74_spill] sm:$0xff] }
 0x1ff   : > { %1810 = vst [vmem:[#allocation1 + $0x20] ss:$2 sm:$0xff] %v4958_v4 }
 0x200   : > { %v1805_v27 = vld.sshfl [vmem:[#allocation1 + $0x30] sm:$0xff pattern:$0x75316420]  ;;  %1811 = vst [vmem:[#allocation1 + $0x21] ss:$2 sm:$0xff] %v4982_v63 }
 0x201   : > { %1812 = vst [vmem:[#allocation1 + $0x30] ss:$2 sm:$0xff] %v4990_v26  ;;  %v3547_v5 = vpack.i.bf16 %v1805_v27, %v1804_v47  ;;  %v5272_v25 = vpop.permute.xlu2 %3488  ;;  %v3461_v27 = vunpack.i.h.bf16 %v5100_v51 }
 0x202   : > { %1813 = vst [vmem:[#allocation1 + $0x31] ss:$2 sm:$0xff] %v5222_v48  ;;  %v5233_v4 = vld.sshfl [vmem:[#allocation1] sm:$0xff pattern:$0x75316420] }
 0x203   : > { %1861 = vst [vmem:[#allocation1] ss:$2 sm:$0xff] %v4414_v40  ;;  %3548 = vrot.lane.b32.xlu2 %v3547_v5, %s3662_s19  ;;  %v3202_v40 = vld [vmem:[%s5670_s1 + $0x130] sm:$0xff] }
 0x204   : > { %v5236_v42 = vld.sshfl [vmem:[#allocation1 + $0x10] sm:$0xff pattern:$0x75316420]  ;;  %1862 = vst [vmem:[#allocation1 + $0x1] ss:$2 sm:$0xff] %v4419_v22  ;;  %2703 = vmatpush.bf16.msrb.mxu0 %v3202_v40  ;;  %v5999_v40 = vld [vmem:[#allocation45_spill] sm:$0xff] }
 0x205   : > { %1863 = vst [vmem:[#allocation1 + $0x10] ss:$2 sm:$0xff] %v4424_v55 }
 0x206   : > { %1864 = vst [vmem:[#allocation1 + $0x11] ss:$2 sm:$0xff] %v5993_v49 }
 0x207   : > { %v5243_v23 = vld.sshfl [vmem:[#allocation1 + $0x20] sm:$0xff pattern:$0x75316420] }
 0x208   : > { %1850 = vst [vmem:[#allocation1 + $0x20] ss:$2 sm:$0xff] %v5932_v36  ;;  %v2938_v36 = vrot.slane %v5131_v11, 10 }
 0x209   : > { %v5253_v57 = vld.sshfl [vmem:[#allocation1 + $0x30] sm:$0xff pattern:$0x75316420]  ;;  %1852 = vst [vmem:[#allocation1 + $0x21] ss:$2 sm:$0xff] %v4057_v1 }
 0x20a   : > { %1854 = vst [vmem:[#allocation1 + $0x30] ss:$2 sm:$0xff] %v4062_v29  ;;  %v5269_v60 = vsel %vm3890_vm5, %v2938_v36, %v562_v59 }
 0x20b   : > { %1856 = vst [vmem:[#allocation1 + $0x31] ss:$2 sm:$0xff] %v5994_v43  ;;  %v5258_v16 = vld.sshfl [vmem:[#allocation1] sm:$0xff pattern:$0x75316420] }
 0x20c   : > { %1897 = vst [vmem:[#allocation1] ss:$2 sm:$0xff] %v5941_v14 }
 0x20d   : > { %v1870_v44 = vld.sshfl [vmem:[#allocation1 + $0x10] sm:$0xff pattern:$0x75316420]  ;;  %1899 = vst [vmem:[#allocation1 + $0x1] ss:$2 sm:$0xff] %v5942_v30  ;;  %v3490_v30 = vunpack.i.l.bf16 %v5272_v25 }
 0x20e   : > { %1901 = vst [vmem:[#allocation1 + $0x10] ss:$2 sm:$0xff] %v5943_v28  ;;  %v3201_v28 = vld [vmem:[%s5670_s1 + $0x128] sm:$0xff] }
 0x20f   : > { %1903 = vst [vmem:[#allocation1 + $0x11] ss:$2 sm:$0xff] %v5996_v54  ;;  %2704 = vmatpush.bf16.msrb.mxu0 %v3201_v28  ;;  %v1469_v50 = vsel %vm1390_vm6, %v5997_v19, %v3490_v30  ;;  %v3592_v54 = vpack.i.bf16 %v1870_v44, %v5258_v16  ;;  %v3445_v30 = vunpack.i.l.bf16 %v5137_v41  ;;  %v6001_v28 = vld [vmem:[#allocation46_spill] sm:$0xff]  ;;  %v6002_v16 = vld [vmem:[#allocation56_spill] sm:$0xff] }
 0x210   : > { %v1859_v33 = vld.sshfl [vmem:[#allocation1 + $0x20] sm:$0xff pattern:$0x75316420]  ;;  %v1477_v5 = vsel %vm1399_vm7, %v1469_v50, %v3460_v12  ;;  %v3466_v44 = vunpack.i.h.bf16 %v6002_v16  ;;  %v3465_v12 = vunpack.i.l.bf16 %v6002_v16 }
 0x211   : > { %1865 = vst [vmem:[#allocation1 + $0x20] ss:$2 sm:$0xff] %v5075_v2  ;;  %v3200_v2 = vld [vmem:[%s5670_s1 + $0x120] sm:$0xff]  ;;  %v1485_v51 = vsel %vm1408_vm8, %v1477_v5, %v3480_v37  ;;  %3593 = vrot.lane.b32.xlu0 %v3592_v54, %s3663_s20  ;;  %v3486_v37 = vunpack.i.h.bf16 %v5245_v38  ;;  %v6005_v5 = vld [vmem:[#allocation64_spill] sm:$0xff] }
 0x212   : > { %v1860_v47 = vld.sshfl [vmem:[#allocation1 + $0x30] sm:$0xff pattern:$0x75316420]  ;;  %1866 = vst [vmem:[#allocation1 + $0x21] ss:$2 sm:$0xff] %v5080_v13  ;;  %v6004_v50 = vld [vmem:[#allocation73_spill] sm:$0xff] }
 0x213   : > { %1867 = vst [vmem:[#allocation1 + $0x30] ss:$2 sm:$0xff] %v5087_v46  ;;  %v3552_v14 = vpack.i.bf16 %v1860_v47, %v1859_v33  ;;  %2705 = vmatpush.bf16.msrb.mxu0 %v3200_v2  ;;  %v3199_v47 = vld [vmem:[%s5670_s1 + $0x118] sm:$0xff] }
 0x214   : > { %1868 = vst [vmem:[#allocation1 + $0x31] ss:$2 sm:$0xff] %v5269_v60  ;;  %v5282_v52 = vld.sshfl [vmem:[#allocation1] sm:$0xff pattern:$0x75316420] }
 0x215   : > { %3553 = vrot.lane.b32.xlu1 %v3552_v14, %s3663_s20  ;;  %1916 = vst [vmem:[#allocation1] ss:$2 sm:$0xff] %v5949_v31  ;;  %v5998_v31 = vld [vmem:[#allocation81_spill] sm:$0xff]  ;;  %v3446_v14 = vunpack.i.h.bf16 %v5137_v41  ;;  %v5331_v2 = vld [vmem:[%s3698_s17 + $0x118] sm:$0x3f]  ;;  %v3198_v41 = vld [vmem:[%s5670_s1 + $0x110] sm:$0xff] }
 0x216   : > { %v5289_v24 = vld.sshfl [vmem:[#allocation1 + $0x10] sm:$0xff pattern:$0x75316420]  ;;  %1917 = vst [vmem:[#allocation1 + $0x1] ss:$2 sm:$0xff] %v5950_v56  ;;  %v5303_v56 = vpop.permute.xlu1 %3498 }
 0x217   : > { %1918 = vst [vmem:[#allocation1 + $0x10] ss:$2 sm:$0xff] %v5951_v3  ;;  %v3501_v3 = vunpack.i.h.bf16 %v5303_v56  ;;  %2706 = vmatpush.bf16.msrb.mxu0 %v3199_v47  ;;  %v1472_v19 = vsel %vm1390_vm6, %v6003_v17, %v3446_v14  ;;  %v3514_v17 = vpop.permute.xlu0 %3513 }
 0x218   : > { %1919 = vst [vmem:[#allocation1 + $0x11] ss:$2 sm:$0xff] %v5998_v31 }
 0x219   : > { %v5295_v6 = vld.sshfl [vmem:[#allocation1 + $0x20] sm:$0xff pattern:$0x75316420] }
 0x21a   : > { %1905 = vst [vmem:[#allocation1 + $0x20] ss:$2 sm:$0xff] %v5955_v53  ;;  %v6000_v53 = vld [vmem:[#allocation69_spill] sm:$0xff] }
 0x21b   : > { %v5300_v15 = vld.sshfl [vmem:[#allocation1 + $0x30] sm:$0xff pattern:$0x75316420]  ;;  %1907 = vst [vmem:[#allocation1 + $0x21] ss:$2 sm:$0xff] %v5956_v8  ;;  %v1470_v36 = vsel %vm1390_vm6, %v6000_v53, %v3501_v3  ;;  %2707 = vmatpush.bf16.msrb.mxu0 %v3198_v41  ;;  %v6007_v53 = vld [vmem:[#allocation76_spill] sm:$0xff]  ;;  %v3491_v41 = vunpack.i.h.bf16 %v5272_v25  ;;  %v3516_v25 = vunpack.i.h.bf16 %v3514_v17 }
 0x21c   : > { %1909 = vst [vmem:[#allocation1 + $0x30] ss:$2 sm:$0xff] %v5959_v62  ;;  %v1478_v8 = vsel %vm1399_vm7, %v1470_v36, %v3461_v27  ;;  %v3485_v27 = vunpack.i.l.bf16 %v5245_v38 }
 0x21d   : > { %1911 = vst [vmem:[#allocation1 + $0x31] ss:$2 sm:$0xff] %v5999_v40  ;;  %v5312_v58 = vld.sshfl [vmem:[#allocation1] sm:$0xff pattern:$0x75316420]  ;;  %v1486_v59 = vsel %vm1408_vm8, %v1478_v8, %v3481_v45  ;;  %v1480_v40 = vsel %vm1399_vm7, %v1472_v19, %v3466_v44  ;;  %v6008_v8 = vld [vmem:[#allocation51_spill] sm:$0xff] }
 0x21e   : > { %1936 = vst [vmem:[#allocation1] ss:$2 sm:$0xff] %v3849_v61  ;;  %v2127_v33 = vpack.c.bf16 %v1486_v59, %v1485_v51  ;;  %v3197_v51 = vld [vmem:[%s5670_s1 + $0x108] sm:$0xff]  ;;  %v3582_v59 = vpack.i.bf16 %v5211_v34, %v5204_v39  ;;  %v1488_v47 = vsel %vm1408_vm8, %v1480_v40, %v3486_v37  ;;  %v6010_v44 = vld [vmem:[#allocation24_spill] sm:$0xff]  ;;  %v3210_v39 = vld [vmem:[%s5670_s1 + $0x170] sm:$0xff] }
 0x21f   : > { %v5317_v62 = vld.sshfl [vmem:[#allocation1 + $0x10] sm:$0xff pattern:$0x75316420]  ;;  %1938 = vst [vmem:[#allocation1 + $0x1] ss:$2 sm:$0xff] %v3857_v18  ;;  %2708 = vmatpush.bf16.msrb.mxu0 %v3197_v51  ;;  %v6011_v19 = vld [vmem:[#allocation38_spill] sm:$0xff]  ;;  %3227 = vmatpush.bf16.msrb.mxu1 %v3210_v39 }
 0x220   : > { %1940 = vst [vmem:[#allocation1 + $0x10] ss:$2 sm:$0xff] %v5962_v32  ;;  %2691 = vmatmul.bf16.gmra.mxu3 %v2127_v33  ;;  %v5338_v32 = vpop.permute.xlu1 %3508  ;;  %v6009_v33 = vld [vmem:[#allocation23_spill] sm:$0xff]  ;;  %v3217_v34 = vld [vmem:[%s5670_s1 + $0x1a8] sm:$0xff] }
 0x221   : > { %1942 = vst [vmem:[#allocation1 + $0x11] ss:$2 sm:$0xff] %v6001_v28  ;;  %v565_v28 = vrot.slane %v5331_v2, 4  ;;  %v6016_v51 = vld [vmem:[#allocation83_spill] sm:$0xff]  ;;  %2762 = vmatpush.bf16.msrb.mxu2 %v3217_v34  ;;  %3234 = vmatpush.bf16.msra.mxu3 %v3217_v34 }
 0x222   : > { %v5327_v61 = vld.sshfl [vmem:[#allocation1 + $0x20] sm:$0xff pattern:$0x75316420] }
 0x223   : > { %1920 = vst [vmem:[#allocation1 + $0x20] ss:$2 sm:$0xff] %v4817_v7  ;;  %v5346_v7 = vpop.permute.xlu2 %3493  ;;  %v568_v40 = vrot.slane %v565_v28, 5 }
 0x224   : > { %v5335_v18 = vld.sshfl [vmem:[#allocation1 + $0x30] sm:$0xff pattern:$0x75316420]  ;;  %1921 = vst [vmem:[#allocation1 + $0x21] ss:$2 sm:$0xff] %v4836_v10  ;;  %v1471_v10 = vsel %vm1390_vm6, %v6004_v50, %v3445_v30  ;;  %v3196_v30 = vld [vmem:[%s5670_s1 + $0x100] sm:$0xff] }
 0x225   : > { %1922 = vst [vmem:[#allocation1 + $0x30] ss:$2 sm:$0xff] %v5131_v11  ;;  %v6006_v11 = vld [vmem:[#allocation65_spill] sm:$0xff]  ;;  %v1479_v45 = vsel %vm1399_vm7, %v1471_v10, %v3465_v12  ;;  %v3495_v12 = vunpack.i.l.bf16 %v5346_v7  ;;  %v6012_v50 = vld [vmem:[#allocation47_spill] sm:$0xff]  ;;  %2709 = vmatpush.bf16.msrb.mxu0 %v3196_v30 }
 0x226   : > { %1923 = vst [vmem:[#allocation1 + $0x31] ss:$2 sm:$0xff] %v5331_v2  ;;  %v1951_v31 = vld.sshfl [vmem:[#allocation1] sm:$0xff pattern:$0x75316420]  ;;  %v1487_v54 = vsel %vm1408_vm8, %v1479_v45, %v3485_v27  ;;  %v6013_v27 = vld [vmem:[#allocation39_spill] sm:$0xff] }
 0x227   : > { %1955 = vst [vmem:[#allocation1] ss:$2 sm:$0xff] %v6005_v5  ;;  %v2134_v10 = vpack.c.bf16 %v1488_v47, %v1487_v54  ;;  %v6014_v5 = vld [vmem:[#allocation37_spill] sm:$0xff]  ;;  %v2939_v45 = vrot.slane %v5331_v2, 9 }
 0x228   : > { %v1952_v3 = vld.sshfl [vmem:[#allocation1 + $0x10] sm:$0xff pattern:$0x75316420]  ;;  %1956 = vst [vmem:[#allocation1 + $0x1] ss:$2 sm:$0xff] %v6006_v11  ;;  %v5372_v14 = vpop.permute.xlu1 %3523  ;;  %v3515_v11 = vunpack.i.l.bf16 %v3514_v17  ;;  %v6017_v54 = vld [vmem:[#allocation49_spill] sm:$0xff] }
 0x229   : > { %1957 = vst [vmem:[#allocation1 + $0x10] ss:$2 sm:$0xff] %v6007_v53  ;;  %v3557_v36 = vpack.i.bf16 %v1952_v3, %v1951_v31  ;;  %v3562_v3 = vpack.i.bf16 %v6014_v5, %v6013_v27  ;;  %v6015_v53 = vld [vmem:[#allocation82_spill] sm:$0xff]  ;;  %v6019_v27 = vld [vmem:[#allocation32_spill] sm:$0xff]  ;;  %2731 = vmatpush.bf16.msra.mxu0 %v3211_v35 }
 0x22a   : > { %1958 = vst [vmem:[#allocation1 + $0x11] ss:$2 sm:$0xff] %v6008_v8  ;;  %v2047_v8 = vsel %vm1390_vm6, %v6016_v51, %v3495_v12  ;;  %v3215_v35 = vld [vmem:[%s5670_s1 + $0x198] sm:$0xff] }
 0x22b   : > { %v5364_v38 = vld.sshfl [vmem:[#allocation1 + $0x20] sm:$0xff pattern:$0x75316420]  ;;  %3558 = vrot.lane.b32.xlu2 %v3557_v36, %s3661_s18  ;;  %v5385_v31 = vpop.permute.xlu2 %3503  ;;  %v2046_v36 = vsel %vm1390_vm6, %v6015_v53, %v3491_v41  ;;  %v2055_v30 = vsel %vm1399_vm7, %v2047_v8, %v3516_v25  ;;  %v6022_v8 = vld [vmem:[#allocation2_spill] sm:$0xff] }
 0x22c   : > { %1944 = vst [vmem:[#allocation1 + $0x20] ss:$2 sm:$0xff] %v6009_v33  ;;  %v2054_v41 = vsel %vm1399_vm7, %v2046_v36, %v3515_v11  ;;  %v3642_v11 = vpack.i.bf16 %v5236_v42, %v5233_v4  ;;  %v6021_v36 = vld [vmem:[#allocation87_spill] sm:$0xff] }
 0x22d   : > { %v5379_v16 = vld.sshfl [vmem:[#allocation1 + $0x30] sm:$0xff pattern:$0x75316420]  ;;  %1946 = vst [vmem:[#allocation1 + $0x21] ss:$2 sm:$0xff] %v6010_v44  ;;  %v569_v44 = vsel %vm3751_vm2, %v2939_v45, %v568_v40  ;;  %v6020_v40 = vld [vmem:[#allocation88_spill] sm:$0xff]  ;;  %2732 = vmatpush.bf16.msra.mxu0 %v3210_v39 }
 0x22e   : > { %1948 = vst [vmem:[#allocation1 + $0x30] ss:$2 sm:$0xff] %v6011_v19 }
 0x22f   : > { %1950 = vst [vmem:[#allocation1 + $0x31] ss:$2 sm:$0xff] %v6012_v50  ;;  %v5387_v37 = vld.sshfl [vmem:[#allocation1] sm:$0xff pattern:$0x75316420] }
 0x230   : > { %1991 = vst [vmem:[#allocation1] ss:$2 sm:$0xff] %v3994_v21  ;;  %2696 = vmatmul.bf16.gmra.mxu3 %v2134_v10  ;;  %v3529_v21 = vpop.permute.xlu1 %3528  ;;  %v6018_v10 = vld [vmem:[#allocation34_spill] sm:$0xff] }
 0x231   : > { %v5399_v33 = vld.sshfl [vmem:[#allocation1 + $0x10] sm:$0xff pattern:$0x75316420]  ;;  %1993 = vst [vmem:[#allocation1 + $0x1] ss:$2 sm:$0xff] %v4001_v9  ;;  %v3531_v12 = vunpack.i.h.bf16 %v3529_v21  ;;  %v3530_v9 = vunpack.i.l.bf16 %v3529_v21  ;;  %v3587_v5 = vpack.i.bf16 %v6019_v27, %v6018_v10  ;;  %v3506_v10 = vunpack.i.h.bf16 %v5385_v31  ;;  %v6025_v27 = vld [vmem:[#allocation18_spill] sm:$0xff] }
 0x232   : > { %1995 = vst [vmem:[#allocation1 + $0x10] ss:$2 sm:$0xff] %v5990_v0  ;;  %v6023_v21 = vld [vmem:[#allocation55_spill] sm:$0xff] }
 0x233   : > { %1997 = vst [vmem:[#allocation1 + $0x11] ss:$2 sm:$0xff] %v6017_v54  ;;  %3563 = vrot.lane.b32.xlu2 %v3562_v3, %s3661_s18  ;;  %v2062_v19 = vsel %vm1408_vm8, %v2054_v41, %v3530_v9  ;;  %v2063_v50 = vsel %vm1408_vm8, %v2055_v30, %v3531_v12  ;;  %v3500_v3 = vunpack.i.l.bf16 %v5303_v56  ;;  %v3534_v54 = vpop.permute.xlu0 %3533  ;;  %v3647_v9 = vpack.i.bf16 %v5300_v15, %v5295_v6  ;;  %v3214_v6 = vld [vmem:[%s5670_s1 + $0x190] sm:$0xff] }
 0x234   : > { %v1953_v47 = vld.sshfl [vmem:[#allocation1 + $0x20] sm:$0xff pattern:$0x75316420]  ;;  %v2114_v20 = vpack.c.bf16 %v2063_v50, %v2062_v19 }
 0x235   : > { %1959 = vst [vmem:[#allocation1 + $0x20] ss:$2 sm:$0xff] %v4982_v63  ;;  %v3496_v63 = vunpack.i.h.bf16 %v5346_v7  ;;  %v2049_v7 = vsel %vm1390_vm6, %v6020_v40, %v3500_v3  ;;  %v6026_v3 = vld [vmem:[#allocation85_spill] sm:$0xff] }
 0x236   : > { %v1954_v17 = vld.sshfl [vmem:[#allocation1 + $0x30] sm:$0xff pattern:$0x75316420]  ;;  %1960 = vst [vmem:[#allocation1 + $0x21] ss:$2 sm:$0xff] %v4990_v26  ;;  %v3519_v26 = vpop.permute.xlu2 %3518  ;;  %2710 = vmatmul.bf16.vlgmr.msrb.gmra.mxu0 %v2114_v20  ;;  %v3525_v20 = vunpack.i.l.bf16 %v5372_v14 }
 0x237   : > { %1961 = vst [vmem:[#allocation1 + $0x30] ss:$2 sm:$0xff] %v5222_v48  ;;  %v3572_v0 = vpack.i.bf16 %v1954_v17, %v1953_v47  ;;  %v3521_v56 = vunpack.i.h.bf16 %v3519_v26  ;;  %v3520_v45 = vunpack.i.l.bf16 %v3519_v26  ;;  %v3535_v47 = vunpack.i.l.bf16 %v3534_v54  ;;  %v2624_v26 = vpop.f32.mrf.mxu1 }
 0x238   : > { %1962 = vst [vmem:[#allocation1 + $0x31] ss:$2 sm:$0xff] %v569_v44  ;;  %v2006_v25 = vld.sshfl [vmem:[#allocation1] sm:$0xff pattern:$0x75316420]  ;;  %v2940_v44 = vrot.slane %v5331_v2, 10 }
 0x239   : > { %3573 = vrot.lane.b32.xlu1 %v3572_v0, %s3661_s18  ;;  %2010 = vst [vmem:[#allocation1] ss:$2 sm:$0xff] %v4419_v22  ;;  %v2048_v22 = vsel %vm1390_vm6, %v6021_v36, %v3496_v63  ;;  %v2057_v41 = vsel %vm1399_vm7, %v2049_v7, %v3521_v56  ;;  %v2051_v63 = vsel %vm1390_vm6, %v6026_v3, %v3506_v10  ;;  %v6028_v7 = vld [vmem:[#allocation25_spill] sm:$0xff]  ;;  %v6033_v3 = vld [vmem:[#allocation15_spill] sm:$0xff] }
 0x23a   : > { %v2007_v48 = vld.sshfl [vmem:[#allocation1 + $0x10] sm:$0xff pattern:$0x75316420]  ;;  %2011 = vst [vmem:[#allocation1 + $0x1] ss:$2 sm:$0xff] %v4424_v55  ;;  %v2056_v30 = vsel %vm1399_vm7, %v2048_v22, %v3520_v45  ;;  %v3597_v45 = vpack.i.bf16 %v5399_v33, %v5387_v37  ;;  %v3637_v37 = vpack.i.bf16 %v5253_v57, %v5243_v23 }
 0x23b   : > { %3588 = vrot.lane.b32.xlu2 %v3587_v5, %s3663_s20  ;;  %2012 = vst [vmem:[#allocation1 + $0x10] ss:$2 sm:$0xff] %v5993_v49  ;;  %v3577_v51 = vpack.i.bf16 %v2007_v48, %v2006_v25  ;;  %v3536_v49 = vunpack.i.h.bf16 %v3534_v54  ;;  %v3539_v25 = vpop.permute.xlu0 %3538  ;;  %v6027_v48 = vld [vmem:[#allocation84_spill] sm:$0xff] }
 0x23c   : > { %2013 = vst [vmem:[#allocation1 + $0x11] ss:$2 sm:$0xff] %v6022_v8  ;;  %v3541_v36 = vunpack.i.h.bf16 %v3539_v25  ;;  %v3540_v22 = vunpack.i.l.bf16 %v3539_v25 }
 0x23d   : > { %v1965_v53 = vld.sshfl [vmem:[#allocation1 + $0x20] sm:$0xff pattern:$0x75316420]  ;;  %v2065_v12 = vsel %vm1408_vm8, %v2057_v41, %v3536_v49  ;;  %v6030_v41 = vld [vmem:[#allocation54_spill] sm:$0xff] }
 0x23e   : > { %1999 = vst [vmem:[#allocation1 + $0x20] ss:$2 sm:$0xff] %v4057_v1  ;;  %v2064_v1 = vsel %vm1408_vm8, %v2056_v30, %v3535_v47  ;;  %v3208_v49 = vld [vmem:[%s5670_s1 + $0x160] sm:$0xff] }
 0x23f   : > { %v1966_v55 = vld.sshfl [vmem:[#allocation1 + $0x30] sm:$0xff pattern:$0x75316420]  ;;  %2001 = vst [vmem:[#allocation1 + $0x21] ss:$2 sm:$0xff] %v4062_v29  ;;  %v572_v29 = vrot.slane %v565_v28, 6  ;;  %v2121_v0 = vpack.c.bf16 %v2065_v12, %v2064_v1  ;;  %v3505_v28 = vunpack.i.l.bf16 %v5385_v31  ;;  %v3526_v31 = vunpack.i.h.bf16 %v5372_v14  ;;  %v2626_v42 = vpop.f32.mrf.mxu1 }
 0x240   : > { %2003 = vst [vmem:[#allocation1 + $0x30] ss:$2 sm:$0xff] %v5994_v43  ;;  %v3602_v43 = vpack.i.bf16 %v1966_v55, %v1965_v53  ;;  %v6029_v53 = vld [vmem:[#allocation26_spill] sm:$0xff]  ;;  %v3207_v1 = vld [vmem:[%s5670_s1 + $0x158] sm:$0xff] }
 0x241   : > { %2005 = vst [vmem:[#allocation1 + $0x31] ss:$2 sm:$0xff] %v6023_v21  ;;  %3578 = vrot.lane.b32.xlu1 %v3577_v51, %s3662_s19  ;;  %v573_v19 = vsel %vm3890_vm5, %v2940_v44, %v572_v29  ;;  %v2050_v56 = vsel %vm1390_vm6, %v6027_v48, %v3505_v28  ;;  %v3617_v14 = vpack.i.bf16 %v6029_v53, %v6028_v7  ;;  %v3209_v51 = vld [vmem:[%s5670_s1 + $0x168] sm:$0xff]  ;;  %v2018_v47 = vld.sshfl [vmem:[#allocation1] sm:$0xff pattern:$0x75316420] }
 0x242   : > { %v2058_v8 = vsel %vm1399_vm7, %v2050_v56, %v3525_v20  ;;  %v2059_v55 = vsel %vm1399_vm7, %v2051_v63, %v3526_v31  ;;  %3228 = vmatpush.bf16.msrb.mxu1 %v3209_v51  ;;  %2733 = vmatpush.bf16.msra.mxu0 %v3209_v51  ;;  %v6031_v21 = vld [vmem:[#allocation21_spill] sm:$0xff]  ;;  %v6032_v31 = vld [vmem:[#allocation16_spill] sm:$0xff]  ;;  %v3511_v51 = vunpack.i.h.bf16 %v5338_v32 }
 0x243   : > { %3603 = vrot.lane.b32.xlu2 %v3602_v43, %s3661_s18  ;;  %v2066_v33 = vsel %vm1408_vm8, %v2058_v8, %v3540_v22  ;;  %v2067_v54 = vsel %vm1408_vm8, %v2059_v55, %v3541_v36  ;;  %v2019_v30 = vld.sshfl [vmem:[#allocation1 + $0x10] sm:$0xff pattern:$0x75316420]  ;;  %v3622_v44 = vpack.i.bf16 %v6031_v21, %v6030_v41  ;;  %v3212_v22 = vld [vmem:[%s5670_s1 + $0x180] sm:$0xff]  ;;  %v3510_v8 = vunpack.i.l.bf16 %v5338_v32 }
 0x244   : > { %v2128_v23 = vpack.c.bf16 %v2067_v54, %v2066_v33  ;;  %v3627_v57 = vpack.i.bf16 %v2019_v30, %v2018_v47  ;;  %v3206_v43 = vld [vmem:[%s5670_s1 + $0x150] sm:$0xff]  ;;  %v6034_v54 = vld [vmem:[#allocation92_spill] sm:$0xff] }
 0x245   : > { %v6035_v47 = vld [vmem:[#allocation91_spill] sm:$0xff] }
 0x246   : > { %v2008_v17 = vld.sshfl [vmem:[#allocation1 + $0x20] sm:$0xff pattern:$0x75316420]  ;;  %2715 = vmatmul.bf16.gmra.mxu0 %v2121_v0  ;;  %3229 = vmatpush.bf16.msrb.mxu1 %v3208_v49  ;;  %v3205_v0 = vld [vmem:[%s5670_s1 + $0x148] sm:$0xff]  ;;  %v2052_v30 = vsel %vm1390_vm6, %v6035_v47, %v3510_v8 }
 0x247   : > { %2014 = vst [vmem:[#allocation1 + $0x20] ss:$2 sm:$0xff] %v5080_v13  ;;  %v6024_v13 = vld [vmem:[#allocation20_spill] sm:$0xff]  ;;  %2734 = vmatpush.bf16.msra.mxu0 %v3208_v49  ;;  %v2053_v49 = vsel %vm1390_vm6, %v6034_v54, %v3511_v51 }
 0x248   : > { %v2009_v50 = vld.sshfl [vmem:[#allocation1 + $0x30] sm:$0xff pattern:$0x75316420]  ;;  %2015 = vst [vmem:[#allocation1 + $0x21] ss:$2 sm:$0xff] %v5087_v46  ;;  %v3607_v5 = vpack.i.bf16 %v6025_v27, %v6024_v13 }
 0x249   : > { %v3612_v2 = vpack.i.bf16 %v2009_v50, %v2008_v17  ;;  %2016 = vst [vmem:[#allocation1 + $0x30] ss:$2 sm:$0xff] %v5269_v60  ;;  %3583 = vrot.lane.b32.xlu1 %v3582_v59, %s3662_s19  ;;  %v5464_v46 = vld [vmem:[%s5671_s2] ss:$0 sm:$0xff]  ;;  %v2595_v60 = vpop.f32.mrf.mxu0 }
 0x24a   : > { %2017 = vst [vmem:[#allocation1 + $0x31] ss:$2 sm:$0xff] %v573_v19  ;;  %v2596_v59 = vadd.f32 %v5464_v46, %v2595_v60  ;;  %3230 = vmatpush.bf16.msrb.mxu1 %v3207_v1  ;;  %v2653_v19 = vpop.f32.mrf.mxu2  ;;  %v3204_v50 = vld [vmem:[%s5670_s1 + $0x140] sm:$0xff] }
 0x24b   : > { %3613 = vrot.lane.b32.xlu0 %v3612_v2, %s3662_s19  ;;  %3608 = vrot.lane.b32.xlu2 %v3607_v5, %s3661_s18  ;;  %v3216_v2 = vld [vmem:[%s5670_s1 + $0x1a0] sm:$0xff] }
 0x24c   : > { %v2625_v40 = vadd.f32 %v2624_v26, %v2596_v59  ;;  %2735 = vmatpush.bf16.msra.mxu0 %v3207_v1  ;;  %2763 = vmatpush.bf16.msrb.mxu2 %v3216_v2 }
 0x24d   : > { %3235 = vmatpush.bf16.msra.mxu3 %v3216_v2 }
 0x24e   : > { %3231 = vmatpush.bf16.msrb.mxu1 %v3206_v43  ;;  %v5529_v28 = vadd.f32 %v2653_v19, %v2625_v40 }
 0x24f   : > { %v2020_v12 = vld.sshfl [vmem:[#allocation1 + $0x20] sm:$0xff pattern:$0x75316420] }
 0x250   : > { %2736 = vmatpush.bf16.msra.mxu0 %v3206_v43  ;;  %2764 = vmatpush.bf16.msrb.mxu2 %v3215_v35 }
 0x251   : > { %3598 = vrot.lane.b32.xlu1 %v3597_v45, %s3661_s18  ;;  %v2021_v29 = vld.sshfl [vmem:[#allocation1 + $0x30] sm:$0xff pattern:$0x75316420]  ;;  %v2597_v10 = vpop.f32.mrf.mxu0  ;;  %3236 = vmatpush.bf16.msra.mxu3 %v3215_v35 }
 0x252   : > { %v3632_v17 = vpack.i.bf16 %v2021_v29, %v2020_v12  ;;  %3232 = vmatpush.bf16.msrb.mxu1 %v3205_v0  ;;  %v2598_v4 = vadd.f32 %v5464_v46, %v2597_v10  ;;  %v2655_v13 = vpop.f32.mrf.mxu2 }
 0x253   : > { %3618 = vrot.lane.b32.xlu0 %v3617_v14, %s3661_s18  ;;  %3638 = vrot.lane.b32.xlu2 %v3637_v37, %s3662_s19 }
 0x254   : > { %2737 = vmatpush.bf16.msra.mxu0 %v3205_v0  ;;  %2765 = vmatpush.bf16.msrb.mxu2 %v3214_v6 }
 0x255   : > { %3237 = vmatpush.bf16.msra.mxu3 %v3214_v6 }
 0x256   : > { %2720 = vmatmul.bf16.gmra.mxu0 %v2128_v23  ;;  %3233 = vmatpush.bf16.msrb.mxu1 %v3204_v50 }
 0x258   : > { %2738 = vmatpush.bf16.msra.mxu0 %v3204_v50 }
 0x259   : > { %3623 = vrot.lane.b32.xlu1 %v3622_v44, %s3662_s19 }
 0x25b   : > { %3628 = vrot.lane.b32.xlu0 %v3627_v57, %s3662_s19 }
 0x25d   : > { %v3549_v15 = vpop.permute.xlu2 %3548 }
 0x25e   : > { %v3544_v5 = vpop.permute.xlu0 %3543  ;;  %v3551_v34 = vunpack.i.h.bf16 %v3549_v15  ;;  %v3550_v59 = vunpack.i.l.bf16 %v3549_v15  ;;  %v6036_v15 = vld [vmem:[#allocation48_spill] sm:$0xff] }
 0x25f   : > { %v3546_v60 = vunpack.i.h.bf16 %v3544_v5  ;;  %v3545_v39 = vunpack.i.l.bf16 %v3544_v5 }
 0x261   : > { %3633 = vrot.lane.b32.xlu1 %v3632_v17, %s3662_s19  ;;  %v2073_v20 = vsel %vm1390_vm6, %v6032_v31, %v3546_v60  ;;  %v2072_v63 = vsel %vm1390_vm6, %v6033_v3, %v3545_v39 }
 0x262   : > { %v2080_v26 = vsel %vm1399_vm7, %v2072_v63, %v3550_v59  ;;  %v2081_v48 = vsel %vm1399_vm7, %v2073_v20, %v3551_v34 }
 0x263   : > { %3643 = vrot.lane.b32.xlu0 %v3642_v11, %s3663_s20  ;;  %v2627_v11 = vadd.f32 %v2626_v42, %v2598_v4 }
 0x265   : > { %v5534_v27 = vadd.f32 %v2655_v13, %v2627_v11 }
 0x269   : > { %3648 = vrot.lane.b32.xlu1 %v3647_v9, %s3663_s20  ;;  %v3213_v9 = vld [vmem:[%s5670_s1 + $0x188] sm:$0xff] }
 0x26a   : > { %2766 = vmatpush.bf16.msrb.mxu2 %v3213_v9  ;;  %3238 = vmatpush.bf16.msra.mxu3 %v3213_v9 }
 0x26e   : > { %2767 = vmatpush.bf16.msrb.mxu2 %v3212_v22  ;;  %3239 = vmatpush.bf16.msra.mxu3 %v3212_v22 }
 0x26f   : > { %v3569_v55 = vpop.permute.xlu0 %3568 }
 0x270   : > { %v3571_v37 = vunpack.i.h.bf16 %v3569_v55  ;;  %v3570_v33 = vunpack.i.l.bf16 %v3569_v55 }
 0x272   : > { %v2060_v23 = vsel %vm1399_vm7, %v2052_v30, %v3570_v33  ;;  %v2061_v57 = vsel %vm1399_vm7, %v2053_v49, %v3571_v37 }
 0x283   : > { %v3594_v50 = vpop.permute.xlu0 %3593 }
 0x284   : > { %v3595_v60 = vunpack.i.l.bf16 %v3594_v50 }
 0x285   : > { %v3559_v25 = vpop.permute.xlu2 %3558 }
 0x286   : > { %v3561_v43 = vunpack.i.h.bf16 %v3559_v25  ;;  %v3560_v17 = vunpack.i.l.bf16 %v3559_v25 }
 0x287   : > { %v3554_v56 = vpop.permute.xlu1 %3553 }
 0x288   : > { %v3556_v45 = vunpack.i.h.bf16 %v3554_v56  ;;  %v3555_v40 = vunpack.i.l.bf16 %v3554_v56  ;;  %v2095_v0 = vsel %vm1390_vm6, %v5289_v24, %v3561_v43  ;;  %v2094_v19 = vsel %vm1390_vm6, %v5282_v52, %v3560_v17  ;;  %v6037_v24 = vld [vmem:[#allocation50_spill] sm:$0xff]  ;;  %v6039_v43 = vld [vmem:[#allocation7_spill] sm:$0xff] }
 0x289   : > { %v3596_v52 = vunpack.i.h.bf16 %v3594_v50 }
 0x28a   : > { %v2088_v7 = vsel %vm1408_vm8, %v2080_v26, %v3555_v40  ;;  %v2089_v53 = vsel %vm1408_vm8, %v2081_v48, %v3556_v45 }
 0x28b   : > { %v2122_v14 = vpack.c.bf16 %v2089_v53, %v2088_v7 }
 0x28d   : > { %2744 = vmatmul.bf16.vlgmr.msrb.gmra.mxu1 %v2122_v14  ;;  %v3564_v36 = vpop.permute.xlu2 %3563 }
 0x28e   : > { %v3566_v35 = vunpack.i.h.bf16 %v3564_v36  ;;  %v3565_v13 = vunpack.i.l.bf16 %v3564_v36 }
 0x290   : > { %v2075_v9 = vsel %vm1390_vm6, %v6036_v15, %v3566_v35  ;;  %v2074_v5 = vsel %vm1390_vm6, %v6037_v24, %v3565_v13 }
 0x295   : > { %v3589_v41 = vpop.permute.xlu2 %3588 }
 0x296   : > { %v3591_v21 = vunpack.i.h.bf16 %v3589_v41  ;;  %v3590_v44 = vunpack.i.l.bf16 %v3589_v41 }
 0x298   : > { %v2068_v1 = vsel %vm1408_vm8, %v2060_v23, %v3590_v44  ;;  %v2069_v32 = vsel %vm1408_vm8, %v2061_v57, %v3591_v21 }
 0x299   : > { %v2135_v12 = vpack.c.bf16 %v2069_v32, %v2068_v1 }
 0x29b   : > { %2725 = vmatmul.bf16.gmra.mxu0 %v2135_v12  ;;  %v6038_v12 = vld [vmem:[#allocation6_spill] sm:$0xff] }
 0x29d   : > { %v3604_v7 = vpop.permute.xlu2 %3603 }
 0x29e   : > { %v3605_v21 = vunpack.i.l.bf16 %v3604_v7 }
 0x2a5   : > { %v3609_v33 = vpop.permute.xlu2 %3608 }
 0x2a6   : > { %v3611_v30 = vunpack.i.h.bf16 %v3609_v33  ;;  %v3610_v41 = vunpack.i.l.bf16 %v3609_v33 }
 0x2a8   : > { %v2070_v17 = vsel %vm1390_vm6, %v6039_v43, %v3610_v41 }
 0x2ab   : > { %v3574_v29 = vpop.permute.xlu1 %3573 }
 0x2ac   : > { %v3576_v63 = vunpack.i.h.bf16 %v3574_v29  ;;  %v3575_v25 = vunpack.i.l.bf16 %v3574_v29  ;;  %v2071_v29 = vsel %vm1390_vm6, %v6038_v12, %v3611_v30 }
 0x2ae   : > { %v2097_v53 = vsel %vm1390_vm6, %v5335_v18, %v3576_v63  ;;  %v2096_v14 = vsel %vm1390_vm6, %v5327_v61, %v3575_v25  ;;  %v3606_v18 = vunpack.i.h.bf16 %v3604_v7 }
 0x2b3   : > { %v3579_v10 = vpop.permute.xlu1 %3578 }
 0x2b4   : > { %v3581_v2 = vunpack.i.h.bf16 %v3579_v10  ;;  %v3580_v4 = vunpack.i.l.bf16 %v3579_v10 }
 0x2b6   : > { %v2103_v42 = vsel %vm1399_vm7, %v2095_v0, %v3581_v2  ;;  %v2102_v11 = vsel %vm1399_vm7, %v2094_v19, %v3580_v4  ;;  %v2101_v0 = vsel %vm1390_vm6, %v5379_v16, %v3606_v18  ;;  %v2100_v19 = vsel %vm1390_vm6, %v5364_v38, %v3605_v21 }
 0x2b7   : > { %v2116_v6 = vpack.c.bf16 %v2103_v42, %v2102_v11 }
 0x2b9   : > { %3157 = vmatmul.msk.bf16.vlgmr.msrb.gmra.mxu2 %vm1408_vm8, %v2116_v6  ;;  %v3639_v6 = vpop.permute.xlu2 %3638 }
 0x2bb   : > { %v3584_v39 = vpop.permute.xlu1 %3583 }
 0x2bc   : > { %v3586_v34 = vunpack.i.h.bf16 %v3584_v39  ;;  %v3585_v59 = vunpack.i.l.bf16 %v3584_v39  ;;  %v3641_v39 = vunpack.i.h.bf16 %v3639_v6 }
 0x2bd   : > { %v3614_v31 = vpop.permute.xlu0 %3613 }
 0x2be   : > { %v2082_v20 = vsel %vm1399_vm7, %v2074_v5, %v3585_v59  ;;  %v2083_v3 = vsel %vm1399_vm7, %v2075_v9, %v3586_v34  ;;  %v3616_v56 = vunpack.i.h.bf16 %v3614_v31  ;;  %v3615_v45 = vunpack.i.l.bf16 %v3614_v31  ;;  %v6040_v31 = vld [vmem:[#allocation63_spill] sm:$0xff] }
 0x2bf   : > { %v2090_v26 = vsel %vm1408_vm8, %v2082_v20, %v3595_v60  ;;  %v2091_v48 = vsel %vm1408_vm8, %v2083_v3, %v3596_v52  ;;  %v3640_v34 = vunpack.i.l.bf16 %v3639_v6  ;;  %v6041_v3 = vld [vmem:[#allocation62_spill] sm:$0xff] }
 0x2c0   : > { %v2129_v40 = vpack.c.bf16 %v2091_v48, %v2090_v26  ;;  %v2104_v22 = vsel %vm1399_vm7, %v2096_v14, %v3615_v45  ;;  %v2105_v51 = vsel %vm1399_vm7, %v2097_v53, %v3616_v56  ;;  %v2605_v14 = vpop.f32.mrf.mxu3 }
 0x2c1   : > { %v2123_v55 = vpack.c.bf16 %v2105_v51, %v2104_v22  ;;  %v2600_v22 = vpop.f32.mrf.mxu0 }
 0x2c2   : > { %2749 = vmatmul.bf16.gmra.mxu1 %v2129_v40 }
 0x2c3   : > { %v3599_v36 = vpop.permute.xlu1 %3598 }
 0x2c4   : > { %v3601_v54 = vunpack.i.h.bf16 %v3599_v36  ;;  %v3600_v49 = vunpack.i.l.bf16 %v3599_v36 }
 0x2c5   : > { %v3619_v8 = vpop.permute.xlu0 %3618 }
 0x2c6   : > { %v2099_v23 = vsel %vm1390_vm6, %v5317_v62, %v3601_v54  ;;  %v2098_v57 = vsel %vm1390_vm6, %v5312_v58, %v3600_v49  ;;  %v3621_v4 = vunpack.i.h.bf16 %v3619_v8  ;;  %v3620_v42 = vunpack.i.l.bf16 %v3619_v8  ;;  %v2629_v8 = vpop.f32.mrf.mxu1 }
 0x2c8   : > { %v2077_v20 = vsel %vm1390_vm6, %v6040_v31, %v3621_v4  ;;  %v2076_v63 = vsel %vm1390_vm6, %v6041_v3, %v3620_v42  ;;  %v2607_v36 = vpop.f32.mrf.mxu3 }
 0x2c9   : > { %3158 = vmatmul.msk.bf16.gmra.mxu2 %vm1408_vm8, %v2123_v55  ;;  %v2084_v56 = vsel %vm1399_vm7, %v2076_v63, %v3640_v34  ;;  %v2085_v45 = vsel %vm1399_vm7, %v2077_v20, %v3641_v39  ;;  %v2658_v55 = vpop.f32.mrf.mxu2  ;;  %v2606_v39 = vadd.f32 %v5464_v46, %v2605_v14 }
 0x2cb   : > { %v3624_v37 = vpop.permute.xlu1 %3623 }
 0x2cc   : > { %v3626_v1 = vunpack.i.h.bf16 %v3624_v37  ;;  %v3625_v32 = vunpack.i.l.bf16 %v3624_v37  ;;  %v2602_v37 = vpop.f32.mrf.mxu0 }
 0x2cd   : > { %v3629_v47 = vpop.permute.xlu0 %3628  ;;  %v2603_v6 = vadd.f32 %v5464_v46, %v2602_v37 }
 0x2ce   : > { %v3631_v44 = vunpack.i.h.bf16 %v3629_v47  ;;  %v3630_v61 = vunpack.i.l.bf16 %v3629_v47  ;;  %v2079_v11 = vsel %vm1399_vm7, %v2071_v29, %v3626_v1  ;;  %v2078_v35 = vsel %vm1399_vm7, %v2070_v17, %v3625_v32  ;;  %v2631_v54 = vpop.f32.mrf.mxu1 }
 0x2d0   : > { %v2106_v2 = vsel %vm1399_vm7, %v2098_v57, %v3630_v61  ;;  %v2107_v58 = vsel %vm1399_vm7, %v2099_v23, %v3631_v44  ;;  %v2610_v51 = vpop.f32.mrf.mxu3 }
 0x2d1   : > { %v2130_v5 = vpack.c.bf16 %v2107_v58, %v2106_v2  ;;  %v2660_v49 = vpop.f32.mrf.mxu2  ;;  %v2611_v63 = vadd.f32 %v5464_v46, %v2610_v51 }
 0x2d3   : > { %v3634_v50 = vpop.permute.xlu1 %3633 }
 0x2d4   : > { %v3636_v10 = vunpack.i.h.bf16 %v3634_v50  ;;  %v3635_v62 = vunpack.i.l.bf16 %v3634_v50  ;;  %v2711_v47 = vpop.f32.mrf.mxu0 }
 0x2d5   : > { %v3644_v13 = vpop.permute.xlu0 %3643 }
 0x2d6   : > { %v3646_v15 = vunpack.i.h.bf16 %v3644_v13  ;;  %v3645_v16 = vunpack.i.l.bf16 %v3644_v13  ;;  %v2109_v9 = vsel %vm1399_vm7, %v2101_v0, %v3636_v10  ;;  %v2108_v38 = vsel %vm1399_vm7, %v2100_v19, %v3635_v62  ;;  %v2634_v41 = vpop.f32.mrf.mxu1 }
 0x2d7   : > { %v2137_v24 = vpack.c.bf16 %v2109_v9, %v2108_v38  ;;  %v2601_v62 = vadd.f32 %v5464_v46, %v2600_v22  ;;  %v2632_v9 = vadd.f32 %v2631_v54, %v2603_v6 }
 0x2d8   : > { %v2087_v52 = vsel %vm1408_vm8, %v2079_v11, %v3646_v15  ;;  %v2086_v60 = vsel %vm1408_vm8, %v2078_v35, %v3645_v16  ;;  %v5615_v33 = vpop.f32.mrf.mxu3 }
 0x2d9   : > { %v2115_v59 = vpack.c.bf16 %v2087_v52, %v2086_v60  ;;  %3159 = vmatmul.msk.bf16.gmra.mxu2 %vm1408_vm8, %v2130_v5  ;;  %3160 = vmatmul.msk.bf16.vlgmr.msra.gmra.mxu3 %vm1408_vm8, %v2137_v24  ;;  %v2663_v18 = vpop.f32.mrf.mxu2  ;;  %v2630_v4 = vadd.f32 %v2629_v8, %v2601_v62  ;;  %v2661_v34 = vadd.f32 %v2660_v49, %v2632_v9 }
 0x2db   : > { %2739 = vmatmul.bf16.vlgmr.msra.gmra.mxu0 %v2115_v59  ;;  %v3649_v25 = vpop.permute.xlu1 %3648  ;;  %v2659_v11 = vadd.f32 %v2658_v55, %v2630_v4 }
 0x2dc   : > { %v3651_v26 = vunpack.i.h.bf16 %v3649_v25  ;;  %v3650_v48 = vunpack.i.l.bf16 %v3649_v25  ;;  %v5617_v21 = vpop.f32.mrf.mxu0  ;;  %v2635_v25 = vadd.f32 %v2634_v41, %v2606_v39  ;;  %v2613_v41 = vadd.f32 %v5464_v46, %v5615_v33 }
 0x2de   : > { %v2092_v40 = vsel %vm1408_vm8, %v2084_v56, %v3650_v48  ;;  %v2093_v7 = vsel %vm1408_vm8, %v2085_v45, %v3651_v26  ;;  %v2636_v61 = vpop.f32.mrf.mxu1  ;;  %v2608_v56 = vadd.f32 %v5464_v46, %v2607_v36 }
 0x2df   : > { %v2136_v53 = vpack.c.bf16 %v2093_v7, %v2092_v40  ;;  %v2664_v40 = vadd.f32 %v2663_v18, %v2635_v25 }
 0x2e0   : > { %v2682_v30 = vpop.f32.mrf.mxu3  ;;  %v2637_v51 = vadd.f32 %v2636_v61, %v2608_v56 }
 0x2e1   : > { %2754 = vmatmul.bf16.gmra.mxu1 %v2136_v53  ;;  %v5621_v23 = vpop.f32.mrf.mxu2  ;;  %v2683_v7 = vadd.f32 %v2682_v30, %v5529_v28 }
 0x2e3   : > { %v2712_v37 = vadd.f32 %v2711_v47, %v2683_v7 }
 0x2e4   : > { %v2716_v57 = vpop.f32.mrf.mxu0 }
 0x2e6   : > { %v2639_v32 = vpop.f32.mrf.mxu1 }
 0x2e7   : > { %v2640_v53 = vadd.f32 %v2639_v32, %v2611_v63  ;;  %v2666_v32 = vadd.f32 %v5621_v23, %v2637_v51 }
 0x2e8   : > { %v5619_v44 = vpop.f32.mrf.mxu3 }
 0x2e9   : > { %v2668_v12 = vpop.f32.mrf.mxu2  ;;  %v2685_v47 = vadd.f32 %v5619_v44, %v5534_v27 }
 0x2ec   : > { %v2718_v29 = vpop.f32.mrf.mxu0 }
 0x2ee   : > { %v2641_v17 = vpop.f32.mrf.mxu1 }
 0x2ef   : > { %v2642_v61 = vadd.f32 %v2641_v17, %v2613_v41 }
 0x2f0   : > { %v2687_v1 = vpop.f32.mrf.mxu3 }
 0x2f1   : > { %v5623_v0 = vpop.f32.mrf.mxu2  ;;  %v2688_v16 = vadd.f32 %v2687_v1, %v2659_v11 }
 0x2f2   : > { %v2671_v27 = vadd.f32 %v5623_v0, %v2642_v61 }
 0x2f3   : > { %v2717_v38 = vadd.f32 %v2716_v57, %v2688_v16  ;;  %v2669_v57 = vadd.f32 %v2668_v12, %v2640_v53 }
 0x2f4   : > { %v2721_v19 = vpop.f32.mrf.mxu0 }
 0x2f8   : > { %v2689_v43 = vpop.f32.mrf.mxu3 }
 0x2f9   : > { %v2690_v31 = vadd.f32 %v2689_v43, %v2661_v34 }
 0x2fb   : > { %v2719_v26 = vadd.f32 %v2718_v29, %v2690_v31 }
 0x2fc   : > { %v5626_v58 = vpop.f32.mrf.mxu0 }
 0x300   : > { %v2692_v50 = vpop.f32.mrf.mxu3 }
 0x301   : > { %v2693_v55 = vadd.f32 %v2692_v50, %v2664_v40 }
 0x303   : > { %v2722_v1 = vadd.f32 %v2721_v19, %v2693_v55 }
 0x308   : > { %v2694_v42 = vpop.f32.mrf.mxu3 }
 0x309   : > { %v2695_v19 = vadd.f32 %v2694_v42, %v2666_v32 }
 0x30a   : > { %v2745_v10 = vpop.f32.mrf.mxu1 }
 0x30b   : > { %v2746_v5 = vadd.f32 %v2745_v10, %v2717_v38  ;;  %v2714_v10 = vadd.f32 %v5617_v21, %v2685_v47  ;;  %v2724_v44 = vadd.f32 %v5626_v58, %v2695_v19 }
 0x310   : > { %v2697_v24 = vpop.f32.mrf.mxu3 }
 0x311   : > { %v2698_v18 = vadd.f32 %v2697_v24, %v2669_v57 }
 0x312   : > { %v2747_v35 = vpop.f32.mrf.mxu1 }
 0x313   : > { %v2748_v48 = vadd.f32 %v2747_v35, %v2719_v26 }
 0x318   : > { %v2726_v15 = vpop.f32.mrf.mxu0  ;;  %v2699_v22 = vpop.f32.mrf.mxu3 }
 0x319   : > { %v2727_v43 = vadd.f32 %v2726_v15, %v2698_v18  ;;  %v2700_v11 = vadd.f32 %v2699_v22, %v2671_v27 }
 0x320   : > { %v2728_v3 = vpop.f32.mrf.mxu0 }
 0x321   : > { %v2729_v15 = vadd.f32 %v2728_v3, %v2700_v11 }
 0x33c   : > { %v2769_v2 = vpop.f32.mrf.mxu2 }
 0x33f   : > { %v2750_v52 = vpop.f32.mrf.mxu1 }
 0x340   : > { %v2751_v28 = vadd.f32 %v2750_v52, %v2722_v1 }
 0x344   : > { %v5628_v13 = vpop.f32.mrf.mxu2 }
 0x347   : > { %v2752_v8 = vpop.f32.mrf.mxu1 }
 0x348   : > { %v2753_v42 = vadd.f32 %v2752_v8, %v2724_v44 }
 0x34c   : > { %v2774_v60 = vpop.f32.mrf.mxu2 }
 0x34d   : > { %v2775_v59 = vadd.f32 %v2774_v60, %v2746_v5 }
 0x34f   : > { %v2791_v20 = vpack.c.bf16 %v2775_v59, %v2775_v59 }
 0x351   : > { %2800 = vst.msk [vmem:[%s5636_s24 + $0x8] sm:$0xf] %vm2797_vm9, %v2791_v20 }
 0x354   : > { %v2776_v45 = vpop.f32.mrf.mxu2 }
 0x355   : > { %v2777_v14 = vadd.f32 %v2776_v45, %v2748_v48 }
 0x357   : > { %v2792_v54 = vpack.c.bf16 %v2777_v14, %v2777_v14 }
 0x358   : > { %v2740_v49 = vpop.f32.mrf.mxu0 }
 0x359   : > { %v2741_v36 = vadd.f32 %v2740_v49, %v2712_v37  ;;  %2801 = vst.msk [vmem:[%s5636_s24 + $0xc] sm:$0xf] %vm2797_vm9, %v2792_v54 }
 0x35b   : > { %v2770_v30 = vadd.f32 %v2769_v2, %v2741_v36 }
 0x35c   : > { %v2779_v29 = vpop.f32.mrf.mxu2  ;;  %v2784_v33 = vpop.f32.mrf.mxu3 }
 0x35d   : > { %v2789_v50 = vpack.c.bf16 %v2770_v30, %v2770_v30  ;;  %v2780_v46 = vadd.f32 %v2779_v29, %v2751_v28 }
 0x35e   : > { %v2755_v12 = vpop.f32.mrf.mxu1 }
 0x35f   : > { %2798 = vst.msk [vmem:[%s5636_s24] sm:$0xf] %vm2797_vm9, %v2789_v50  ;;  %v2793_v62 = vpack.c.bf16 %v2780_v46, %v2780_v46  ;;  %v2756_v2 = vadd.f32 %v2755_v12, %v2727_v43 }
 0x360   : > { %v2742_v23 = vpop.f32.mrf.mxu0 }
 0x361   : > { %v2743_v17 = vadd.f32 %v2742_v23, %v2714_v10  ;;  %2802 = vst.msk [vmem:[%s5636_s24 + $0x10] sm:$0xf] %vm2797_vm9, %v2793_v62  ;;  %v2785_v4 = vadd.f32 %v2784_v33, %v2756_v2 }
 0x363   : > { %v2772_v21 = vadd.f32 %v5628_v13, %v2743_v17  ;;  %v2795_v35 = vpack.c.bf16 %v2785_v4, %v2785_v4 }
 0x364   : > { %v2781_v6 = vpop.f32.mrf.mxu2  ;;  %v2786_v24 = vpop.f32.mrf.mxu3 }
 0x365   : > { %v2790_v16 = vpack.c.bf16 %v2772_v21, %v2772_v21  ;;  %2804 = vst.msk [vmem:[%s5636_s24 + $0x18] sm:$0xf] %vm2797_vm9, %v2795_v35  ;;  %v2782_v9 = vadd.f32 %v2781_v6, %v2753_v42 }
 0x366   : > { %v2757_v0 = vpop.f32.mrf.mxu1 }
 0x367   : > { %2799 = vst.msk [vmem:[%s5636_s24 + $0x4] sm:$0xf] %vm2797_vm9, %v2790_v16  ;;  %v2794_v58 = vpack.c.bf16 %v2782_v9, %v2782_v9  ;;  %v2758_v38 = vadd.f32 %v2757_v0, %v2729_v15 }
 0x369   : > { %2803 = vst.msk [vmem:[%s5636_s24 + $0x14] sm:$0xf] %vm2797_vm9, %v2794_v58  ;;  %v2787_v5 = vadd.f32 %v2786_v24, %v2758_v38 }
 0x36b   : > { %v2796_v52 = vpack.c.bf16 %v2787_v5, %v2787_v5 }
 0x36d   : > { %2805 = vst.msk [vmem:[%s5636_s24 + $0x1c] sm:$0xf] %vm2797_vm9, %v2796_v52 }
 0x36e PF: > { %s13_s12 = sadd.s32 1, %s3659_s12  }
 0x36f   : > { %p10_p4 = scmp.ge.s32.totalorder %s13_s12, 4  }
 0x371   :  { %12 = sbr.rel (!%p10_p4) target bundleno = 1 (0x1), region = 251 }

</bundles_post_ra>
